<compile_context>
chip_gen: v7x
topology: tpu7x:2x2x1
jax: 0.10.0
libtpu: 0.0.40
codegen_flags: <defaults>
</compile_context>

<pallas_src>
import jax
import jax.numpy as jnp
from jax.experimental import pallas as pl
from jax.experimental.pallas import tpu as pltpu

_LANE = 128
_MATMUL_TM_CAP = 512     # M-tile for the MXU matmul kernels
_BN_TM_CAP = 1024        # M-tile for the mem-bound BN+ReLU kernel
_VMEM_LIMIT = 48 * 1024 * 1024
_EPS = 1e-5


def _round_up(x, m):
    return (x + m - 1) // m * m


def _pick_tile(m, cap):
    """Largest divisor of m that is <= cap and a multiple of 8 (or m itself)."""
    if m <= cap:
        return m
    for t in range(cap, 7, -1):
        if m % t == 0 and t % 8 == 0:
            return t
    return m  # fallback: single (large) tile


# ---------------------------------------------------------------------------
# Pallas kernels
# ---------------------------------------------------------------------------

def _phase_matmul_stats_kernel(p_ref, w_ref, y_ref, sum_ref, ssq_ref):
    """Y_tile = P_tile @ Wm[phase] (bf16 in, fp32 acc) + fused BN batch stats."""
    y = jnp.dot(p_ref[0], w_ref[0], preferred_element_type=jnp.float32)
    y_ref[0] = y.astype(y_ref.dtype)

    @pl.when(pl.program_id(1) == 0)
    def _():
        sum_ref[...] = jnp.zeros_like(sum_ref)
        ssq_ref[...] = jnp.zeros_like(ssq_ref)

    sum_ref[...] += jnp.sum(y, axis=0, keepdims=True).reshape(sum_ref.shape)
    ssq_ref[...] += jnp.sum(y * y, axis=0, keepdims=True).reshape(ssq_ref.shape)


def _phase_matmul_tanh_kernel(p_ref, w_ref, o_ref):
    y = jnp.dot(p_ref[0], w_ref[0], preferred_element_type=jnp.float32)
    o_ref[0] = jnp.tanh(y).astype(o_ref.dtype)


def _bn_relu_kernel(y_ref, scale_ref, shift_ref, o_ref):
    y = y_ref[...].astype(jnp.float32)
    o_ref[...] = jnp.maximum(y * scale_ref[...] + shift_ref[...],
                             0.0).astype(o_ref.dtype)


# ---------------------------------------------------------------------------
# pallas_call wrappers
# ---------------------------------------------------------------------------

def _phase_matmul_stats(P, Wm, tm):
    """P: (np_P, M, Kd) bf16 (np_P==1 -> shared across phases),
    Wm: (n_phases, Kd, Cpad) bf16.
    Returns Y (n_phases, M, Cpad) bf16 and per-phase stats (n_phases, 1, Cpad) f32."""
    n_phases, Kd, C = Wm.shape
    np_p, M, _ = P.shape
    shared_p = (np_p == 1)

    def p_map(ph, i):
        return (0 if shared_p else ph, i, 0)

    flops = 2 * n_phases * M * Kd * C
    bytes_accessed = (P.size * 2 + Wm.size * 2 + n_phases * M * C * 2
                      + 2 * n_phases * C * 4)
    return pl.pallas_call(
        _phase_matmul_stats_kernel,
        out_shape=(jax.ShapeDtypeStruct((n_phases, M, C), jnp.bfloat16),
                   jax.ShapeDtypeStruct((n_phases, 1, C), jnp.float32),
                   jax.ShapeDtypeStruct((n_phases, 1, C), jnp.float32)),
        grid_spec=pltpu.PrefetchScalarGridSpec(
            num_scalar_prefetch=0,
            grid=(n_phases, M // tm),
            in_specs=[pl.BlockSpec((1, tm, Kd), p_map),
                      pl.BlockSpec((1, Kd, C), lambda ph, i: (ph, 0, 0))],
            out_specs=(pl.BlockSpec((1, tm, C), lambda ph, i: (ph, i, 0)),
                       pl.BlockSpec((1, 1, C), lambda ph, i: (ph, 0, 0)),
                       pl.BlockSpec((1, 1, C), lambda ph, i: (ph, 0, 0)))),
        compiler_params=pltpu.CompilerParams(
            dimension_semantics=("parallel", "arbitrary"),
            vmem_limit_bytes=_VMEM_LIMIT),
        cost_estimate=pl.CostEstimate(flops=flops, transcendentals=0,
                                      bytes_accessed=bytes_accessed),
    )(P, Wm)


def _phase_matmul_tanh(P, Wm, tm):
    n_phases, Kd, C = Wm.shape
    np_p, M, _ = P.shape
    shared_p = (np_p == 1)

    def p_map(ph, i):
        return (0 if shared_p else ph, i, 0)

    flops = 2 * n_phases * M * Kd * C
    bytes_accessed = P.size * 2 + Wm.size * 2 + n_phases * M * C * 4
    return pl.pallas_call(
        _phase_matmul_tanh_kernel,
        out_shape=jax.ShapeDtypeStruct((n_phases, M, C), jnp.float32),
        grid_spec=pltpu.PrefetchScalarGridSpec(
            num_scalar_prefetch=0,
            grid=(n_phases, M // tm),
            in_specs=[pl.BlockSpec((1, tm, Kd), p_map),
                      pl.BlockSpec((1, Kd, C), lambda ph, i: (ph, 0, 0))],
            out_specs=pl.BlockSpec((1, tm, C), lambda ph, i: (ph, i, 0))),
        compiler_params=pltpu.CompilerParams(
            dimension_semantics=("parallel", "parallel"),
            vmem_limit_bytes=_VMEM_LIMIT),
        cost_estimate=pl.CostEstimate(flops=flops,
                                      transcendentals=n_phases * M * C,
                                      bytes_accessed=bytes_accessed),
    )(P, Wm)


def _bn_relu(Y2d, scale, shift, tm):
    M, C = Y2d.shape
    return pl.pallas_call(
        _bn_relu_kernel,
        out_shape=jax.ShapeDtypeStruct((M, C), jnp.bfloat16),
        grid_spec=pltpu.PrefetchScalarGridSpec(
            num_scalar_prefetch=0,
            grid=(M // tm,),
            in_specs=[pl.BlockSpec((tm, C), lambda i: (i, 0)),
                      pl.BlockSpec((1, C), lambda i: (0, 0)),
                      pl.BlockSpec((1, C), lambda i: (0, 0))],
            out_specs=pl.BlockSpec((tm, C), lambda i: (i, 0))),
        compiler_params=pltpu.CompilerParams(
            dimension_semantics=("parallel",),
            vmem_limit_bytes=_VMEM_LIMIT),
    )(Y2d, scale, shift)


# ---------------------------------------------------------------------------
# JAX glue: phase decomposition of ConvTranspose2d (data movement only)
# ---------------------------------------------------------------------------

def _stride2_phase_weights(W, Cpad):
    """W: (Cin, Cout, 4, 4) ConvTranspose2d weight -> (4 phases, 4*Cin, Cpad) bf16.
    Phase (r,s), tap (dh,dw) uses W[:, :, 3-(2*dh+r), 3-(2*dw+s)]."""
    Cin, Cout, _, _ = W.shape
    mats = []
    for r in (0, 1):
        for s in (0, 1):
            rows = [W[:, :, 3 - (2 * dh + r), 3 - (2 * dw + s)]
                    for dh in (0, 1) for dw in (0, 1)]
            mats.append(jnp.concatenate(rows, axis=0))          # (4*Cin, Cout)
    Wm = jnp.stack(mats, axis=0)                                 # (4, 4*Cin, Cout)
    if Cpad > Cout:
        Wm = jnp.pad(Wm, ((0, 0), (0, 0), (0, Cpad - Cout)))
    return Wm.astype(jnp.bfloat16)


def _layer1_phase_weights(W, Cpad):
    """W: (Cin, Cout, 4, 4) -> (16 phases, Cin, Cpad) bf16; phase kh*4+kw = W[:,:,kh,kw]."""
    Cin, Cout, K, _ = W.shape
    Wm = W.transpose(2, 3, 0, 1).reshape(K * K, Cin, Cout)
    if Cpad > Cout:
        Wm = jnp.pad(Wm, ((0, 0), (0, 0), (0, Cpad - Cout)))
    return Wm.astype(jnp.bfloat16)


def _stride2_phase_patches(x):
    """x: (N, H, W, Cin) NHWC -> (4, N*H*W, 4*Cin) bf16 2x2 windows per phase."""
    N, H, W, Cin = x.shape
    xp = jnp.pad(x, ((0, 0), (1, 1), (1, 1), (0, 0)))
    phases = []
    for r in (0, 1):
        for s in (0, 1):
            taps = [xp[:, r + dh:r + dh + H, s + dw:s + dw + W, :]
                    for dh in (0, 1) for dw in (0, 1)]
            phases.append(jnp.concatenate(taps, axis=-1).reshape(N * H * W, 4 * Cin))
    return jnp.stack(phases, axis=0).astype(jnp.bfloat16)


def _interleave_phases_2x2(Yp, N, H, W, C):
    """Yp: (4, N*H*W, C) phase-major (r,s) -> NHWC (N, 2H, 2W, C)."""
    Y = Yp.reshape(2, 2, N, H, W, C).transpose(2, 3, 0, 4, 1, 5)
    return Y.reshape(N, 2 * H, 2 * W, C)


def _bn_params(sums, ssqs, gamma, beta, count, Cpad):
    s = jnp.sum(sums, axis=(0, 1))                       # (Cpad,)
    q = jnp.sum(ssqs, axis=(0, 1))
    mean = s / count
    var = jnp.maximum(q / count - mean * mean, 0.0)      # biased batch variance
    g = jnp.pad(gamma, (0, Cpad - gamma.shape[0]), constant_values=1.0)
    b = jnp.pad(beta, (0, Cpad - beta.shape[0]))
    inv = g * jax.lax.rsqrt(var + _EPS)
    scale = inv
    shift = b - mean * inv
    return (scale.reshape(1, -1).astype(jnp.float32),
            shift.reshape(1, -1).astype(jnp.float32))


# ---------------------------------------------------------------------------
# Layers
# ---------------------------------------------------------------------------

def _deconv1x1_to_4x4_bn_relu(z2d, W, gamma, beta):
    """ConvTranspose2d(Cin, Cout, 4, 1, 0) on 1x1 input + BN + ReLU. NHWC out."""
    N, _ = z2d.shape
    Cout = W.shape[1]
    Cpad = _round_up(Cout, _LANE)
    Wm = _layer1_phase_weights(W, Cpad)               # (16, Cin, Cpad)
    P = z2d.astype(jnp.bfloat16)[None]                # (1, N, Cin) shared by phases
    tm = _pick_tile(N, _MATMUL_TM_CAP)
    Yp, sums, ssqs = _phase_matmul_stats(P, Wm, tm)   # (16, N, Cpad)
    scale, shift = _bn_params(sums, ssqs, gamma, beta, 16 * N, Cpad)
    A = _bn_relu(Yp.reshape(16 * N, Cpad), scale, shift,
                 _pick_tile(16 * N, _BN_TM_CAP))
    A = A.reshape(4, 4, N, Cpad).transpose(2, 0, 1, 3)   # (N, 4, 4, Cpad)
    return A[..., :Cout]


def _deconv_s2_bn_relu(x, W, gamma, beta):
    """ConvTranspose2d(Cin, Cout, 4, 2, 1) + BN + ReLU, NHWC in/out (bf16)."""
    N, H, Wd, Cin = x.shape
    Cout = W.shape[1]
    Cpad = _round_up(Cout, _LANE)
    P = _stride2_phase_patches(x)                     # (4, N*H*W, 4*Cin)
    Wm = _stride2_phase_weights(W, Cpad)              # (4, 4*Cin, Cpad)
    M = N * H * Wd
    tm = _pick_tile(M, _MATMUL_TM_CAP)
    Yp, sums, ssqs = _phase_matmul_stats(P, Wm, tm)
    scale, shift = _bn_params(sums, ssqs, gamma, beta, 4 * M, Cpad)
    A = _bn_relu(Yp.reshape(4 * M, Cpad), scale, shift,
                 _pick_tile(4 * M, _BN_TM_CAP))
    A = _interleave_phases_2x2(A.reshape(4, M, Cpad), N, H, Wd, Cpad)
    return A[..., :Cout]                              # (N, 2H, 2W, Cout)


def _deconv_s2_tanh(x, W):
    """Final ConvTranspose2d(Cin, nc, 4, 2, 1) + tanh, NHWC in, NHWC f32 out."""
    N, H, Wd, Cin = x.shape
    Cout = W.shape[1]
    Cpad = _round_up(Cout, _LANE)                     # lane-dense (3 -> 128)
    P = _stride2_phase_patches(x)
    Wm = _stride2_phase_weights(W, Cpad)
    M = N * H * Wd
    tm = _pick_tile(M, _MATMUL_TM_CAP)
    Yp = _phase_matmul_tanh(P, Wm, tm)                # (4, M, Cpad) f32
    Y = _interleave_phases_2x2(Yp, N, H, Wd, Cpad)
    return Y[..., :Cout]


# ---------------------------------------------------------------------------
# generator_celeba forward
# ---------------------------------------------------------------------------

def init_params(key, z_size, ngf=64, nc=3):
    shapes = [
        (z_size,  ngf * 8, 4, 4),
        (ngf * 8, ngf * 4, 4, 4),
        (ngf * 4, ngf * 2, 4, 4),
        (ngf * 2, ngf,     4, 4),
        (ngf,     nc,      4, 4),
    ]
    params = {}
    keys = jax.random.split(key, len(shapes))
    for i, (k, shp) in enumerate(zip(keys, shapes)):
        params[f"w{i + 1}"] = 0.02 * jax.random.normal(k, shp, dtype=jnp.float32)
        if i < 4:  # BN after the first 4 deconvs
            cout = shp[1]
            params[f"bn{i + 1}_gamma"] = jnp.ones((cout,), jnp.float32)
            params[f"bn{i + 1}_beta"] = jnp.zeros((cout,), jnp.float32)
    return params


@jax.jit
def generator_celeba_forward(z, params):
    # z: (N, z_size, 1, 1) NCHW (PyTorch convention); internal layout is NHWC.
    N = z.shape[0]
    x = _deconv1x1_to_4x4_bn_relu(z.reshape(N, -1), params["w1"],
                                  params["bn1_gamma"], params["bn1_beta"])
    x = _deconv_s2_bn_relu(x, params["w2"], params["bn2_gamma"], params["bn2_beta"])
    x = _deconv_s2_bn_relu(x, params["w3"], params["bn3_gamma"], params["bn3_beta"])
    x = _deconv_s2_bn_relu(x, params["w4"], params["bn4_gamma"], params["bn4_beta"])
    x = _deconv_s2_tanh(x, params["w5"])              # (N, 64, 64, nc) f32
    return x.transpose(0, 3, 1, 2)                    # single NHWC -> NCHW at the end


if __name__ == "__main__":
    # small shapes: batch=2, z_size=16, ngf=8, nc=3 -> output (2, 3, 64, 64)
    N, Z, NGF, NC = 2, 16, 8, 3
    key = jax.random.PRNGKey(0)
    kz, kp = jax.random.split(key)
    z = jax.random.normal(kz, (N, Z, 1, 1), dtype=jnp.float32)
    params = init_params(kp, Z, ngf=NGF, nc=NC)

    out = jax.block_until_ready(generator_celeba_forward(z, params))

    assert out.shape == (N, NC, 64, 64), out.shape
    assert bool(jnp.all(jnp.isfinite(out)))
    assert bool(jnp.all(jnp.abs(out) <= 1.0))  # tanh range
    print("KERNEL_OK")
</pallas_src>

<mosaic_0001>
module attributes {stable_mosaic.version = 11 : i64} {
  func.func @_bn_relu_kernel(%arg0: i32, %arg1: memref<32x128xbf16, #tpu.memory_space<vmem>>, %arg2: memref<1x128xf32, #tpu.memory_space<vmem>>, %arg3: memref<1x128xf32, #tpu.memory_space<vmem>>, %arg4: memref<32x128xbf16, #tpu.memory_space<vmem>>) attributes {dimension_semantics = [#tpu.dimension_semantics<parallel>], iteration_bounds = array<i64: 1>, scalar_prefetch = 0 : i64, scratch_operands = 0 : i64, tpu.core_type = #tpu.core_type<tc>, window_params = [{transform_indices = @transform_0, window_bounds = array<i64: 32, 128>}, {pipeline_mode = #tpu.pipeline_mode<synchronous>, transform_indices = @transform_1, window_bounds = array<i64: 1, 128>}, {pipeline_mode = #tpu.pipeline_mode<synchronous>, transform_indices = @transform_2, window_bounds = array<i64: 1, 128>}, {transform_indices = @transform_3, window_bounds = array<i64: 32, 128>}]} {
    %c0 = arith.constant 0 : index
    %c0_0 = arith.constant 0 : index
    %0 = vector.load %arg1[%c0, %c0_0] : memref<32x128xbf16, #tpu.memory_space<vmem>>, vector<32x128xbf16>
    %1 = arith.extf %0 : vector<32x128xbf16> to vector<32x128xf32>
    %c0_1 = arith.constant 0 : index
    %c0_2 = arith.constant 0 : index
    %2 = vector.load %arg2[%c0_1, %c0_2] : memref<1x128xf32, #tpu.memory_space<vmem>>, vector<1x128xf32>
    %3 = vector.broadcast %2 : vector<1x128xf32> to vector<32x128xf32>
    %4 = arith.mulf %1, %3 : vector<32x128xf32>
    %c0_3 = arith.constant 0 : index
    %c0_4 = arith.constant 0 : index
    %5 = vector.load %arg3[%c0_3, %c0_4] : memref<1x128xf32, #tpu.memory_space<vmem>>, vector<1x128xf32>
    %6 = vector.broadcast %5 : vector<1x128xf32> to vector<32x128xf32>
    %7 = arith.addf %4, %6 : vector<32x128xf32>
    %cst = arith.constant 0.000000e+00 : f32
    %8 = vector.broadcast %cst : f32 to vector<32x128xf32>
    %9 = arith.maximumf %7, %8 : vector<32x128xf32>
    %10 = arith.truncf %9 : vector<32x128xf32> to vector<32x128xbf16>
    %c0_5 = arith.constant 0 : index
    %c0_6 = arith.constant 0 : index
    %11 = vector.load %arg4[%c0_5, %c0_6] : memref<32x128xbf16, #tpu.memory_space<vmem>>, vector<32x128xbf16>
    tpu.vector_store %arg4[%c0_5, %c0_6], %10 {strides = array<i32>} : memref<32x128xbf16, #tpu.memory_space<vmem>>, vector<32x128xbf16>,
    return
  }
  func.func @transform_0(%arg0: i32) -> (i32, i32) {
    %c0_i32 = arith.constant 0 : i32
    %c0_i32_0 = arith.constant 0 : i32
    return %arg0, %c0_i32 : i32, i32
  }
  func.func @transform_1(%arg0: i32) -> (i32, i32) {
    %c0_i32 = arith.constant 0 : i32
    %c0_i32_0 = arith.constant 0 : i32
    %c0_i32_1 = arith.constant 0 : i32
    return %c0_i32, %c0_i32_0 : i32, i32
  }
  func.func @transform_2(%arg0: i32) -> (i32, i32) {
    %c0_i32 = arith.constant 0 : i32
    %c0_i32_0 = arith.constant 0 : i32
    %c0_i32_1 = arith.constant 0 : i32
    return %c0_i32, %c0_i32_0 : i32, i32
  }
  func.func @transform_3(%arg0: i32) -> (i32, i32) {
    %c0_i32 = arith.constant 0 : i32
    %c0_i32_0 = arith.constant 0 : i32
    return %arg0, %c0_i32 : i32, i32
  }
}

module attributes {stable_mosaic.version = 11 : i64} {
  func.func @_phase_matmul_stats_kernel(%arg0: i32, %arg1: i32, %arg2: memref<1x2x16xbf16, #tpu.memory_space<vmem>>, %arg3: memref<1x16x128xbf16, #tpu.memory_space<vmem>>, %arg4: memref<1x2x128xbf16, #tpu.memory_space<vmem>>, %arg5: memref<1x1x128xf32, #tpu.memory_space<vmem>>, %arg6: memref<1x1x128xf32, #tpu.memory_space<vmem>>) attributes {dimension_semantics = [#tpu.dimension_semantics<parallel>, #tpu.dimension_semantics<arbitrary>], iteration_bounds = array<i64: 16, 1>, scalar_prefetch = 0 : i64, scratch_operands = 0 : i64, tpu.core_type = #tpu.core_type<tc>, window_params = [{transform_indices = @transform_0, window_bounds = array<i64: 1, 2, 16>}, {transform_indices = @transform_1, window_bounds = array<i64: 1, 16, 128>}, {transform_indices = @transform_2, window_bounds = array<i64: 1, 2, 128>}, {transform_indices = @transform_3, window_bounds = array<i64: 1, 1, 128>}, {transform_indices = @transform_4, window_bounds = array<i64: 1, 1, 128>}]} {
    %c0 = arith.constant 0 : index
    %c0_0 = arith.constant 0 : index
    %c0_1 = arith.constant 0 : index
    %0 = vector.load %arg2[%c0, %c0_0, %c0_1] : memref<1x2x16xbf16, #tpu.memory_space<vmem>>, vector<1x2x16xbf16>
    %1 = vector.shape_cast %0 : vector<1x2x16xbf16> to vector<2x16xbf16>
    %c0_2 = arith.constant 0 : index
    %c0_3 = arith.constant 0 : index
    %c0_4 = arith.constant 0 : index
    %2 = vector.load %arg3[%c0_2, %c0_3, %c0_4] : memref<1x16x128xbf16, #tpu.memory_space<vmem>>, vector<1x16x128xbf16>
    %3 = vector.shape_cast %2 : vector<1x16x128xbf16> to vector<16x128xbf16>
    %cst = arith.constant dense<0.000000e+00> : vector<2x128xf32>
    %4 = tpu.matmul %1, %3, %cst {dimension_numbers = #tpu.dot_dimension_numbers<[1], [0], [0], [1], [0, 0, 1, 1], [], []>} : vector<2x16xbf16>, vector<16x128xbf16>, vector<2x128xf32> -> vector<2x128xf32>
    %5 = arith.truncf %4 : vector<2x128xf32> to vector<2x128xbf16>
    %c0_5 = arith.constant 0 : index
    %c0_6 = arith.constant 0 : index
    %c0_7 = arith.constant 0 : index
    %6 = vector.load %arg4[%c0_5, %c0_6, %c0_7] : memref<1x2x128xbf16, #tpu.memory_space<vmem>>, vector<1x2x128xbf16>
    %7 = vector.shape_cast %6 : vector<1x2x128xbf16> to vector<2x128xbf16>
    %8 = vector.shape_cast %5 : vector<2x128xbf16> to vector<1x2x128xbf16>
    tpu.vector_store %arg4[%c0_5, %c0_6, %c0_7], %8 {strides = array<i32>} : memref<1x2x128xbf16, #tpu.memory_space<vmem>>, vector<1x2x128xbf16>,
    %c0_i32 = arith.constant 0 : i32
    %9 = arith.cmpi eq, %arg1, %c0_i32 : i32
    %10 = arith.extui %9 : i1 to i32
    %c0_i32_8 = arith.constant 0 : i32
    %11 = arith.cmpi ne, %10, %c0_i32_8 : i32
    scf.if %11 {
      %cst_23 = arith.constant 0.000000e+00 : f32
      %25 = vector.broadcast %cst_23 : f32 to vector<1x1x128xf32>
      %c0_24 = arith.constant 0 : index
      %c0_25 = arith.constant 0 : index
      %c0_26 = arith.constant 0 : index
      %26 = vector.load %arg5[%c0_24, %c0_25, %c0_26] : memref<1x1x128xf32, #tpu.memory_space<vmem>>, vector<1x1x128xf32>
      tpu.vector_store %arg5[%c0_24, %c0_25, %c0_26], %25 {strides = array<i32>} : memref<1x1x128xf32, #tpu.memory_space<vmem>>, vector<1x1x128xf32>,
      %cst_27 = arith.constant 0.000000e+00 : f32
      %27 = vector.broadcast %cst_27 : f32 to vector<1x1x128xf32>
      %c0_28 = arith.constant 0 : index
      %c0_29 = arith.constant 0 : index
      %c0_30 = arith.constant 0 : index
      %28 = vector.load %arg6[%c0_28, %c0_29, %c0_30] : memref<1x1x128xf32, #tpu.memory_space<vmem>>, vector<1x1x128xf32>
      tpu.vector_store %arg6[%c0_28, %c0_29, %c0_30], %27 {strides = array<i32>} : memref<1x1x128xf32, #tpu.memory_space<vmem>>, vector<1x1x128xf32>,
    } else {
    }
    %c0_9 = arith.constant 0 : index
    %c0_10 = arith.constant 0 : index
    %c0_11 = arith.constant 0 : index
    %12 = vector.load %arg5[%c0_9, %c0_10, %c0_11] : memref<1x1x128xf32, #tpu.memory_space<vmem>>, vector<1x1x128xf32>
    %cst_12 = arith.constant dense<0.000000e+00> : vector<128xf32>
    %13 = vector.multi_reduction <add>, %4, %cst_12 [0] : vector<2x128xf32> to vector<128xf32>
    %14 = vector.shape_cast %13 : vector<128xf32> to vector<1x128xf32>
    %15 = vector.shape_cast %14 : vector<1x128xf32> to vector<1x1x128xf32>
    %16 = arith.addf %12, %15 : vector<1x1x128xf32>
    %c0_13 = arith.constant 0 : index
    %c0_14 = arith.constant 0 : index
    %c0_15 = arith.constant 0 : index
    %17 = vector.load %arg5[%c0_13, %c0_14, %c0_15] : memref<1x1x128xf32, #tpu.memory_space<vmem>>, vector<1x1x128xf32>
    tpu.vector_store %arg5[%c0_13, %c0_14, %c0_15], %16 {strides = array<i32>} : memref<1x1x128xf32, #tpu.memory_space<vmem>>, vector<1x1x128xf32>,
    %c0_16 = arith.constant 0 : index
    %c0_17 = arith.constant 0 : index
    %c0_18 = arith.constant 0 : index
    %18 = vector.load %arg6[%c0_16, %c0_17, %c0_18] : memref<1x1x128xf32, #tpu.memory_space<vmem>>, vector<1x1x128xf32>
    %19 = arith.mulf %4, %4 : vector<2x128xf32>
    %cst_19 = arith.constant dense<0.000000e+00> : vector<128xf32>
    %20 = vector.multi_reduction <add>, %19, %cst_19 [0] : vector<2x128xf32> to vector<128xf32>
    %21 = vector.shape_cast %20 : vector<128xf32> to vector<1x128xf32>
    %22 = vector.shape_cast %21 : vector<1x128xf32> to vector<1x1x128xf32>
    %23 = arith.addf %18, %22 : vector<1x1x128xf32>
    %c0_20 = arith.constant 0 : index
    %c0_21 = arith.constant 0 : index
    %c0_22 = arith.constant 0 : index
    %24 = vector.load %arg6[%c0_20, %c0_21, %c0_22] : memref<1x1x128xf32, #tpu.memory_space<vmem>>, vector<1x1x128xf32>
    tpu.vector_store %arg6[%c0_20, %c0_21, %c0_22], %23 {strides = array<i32>} : memref<1x1x128xf32, #tpu.memory_space<vmem>>, vector<1x1x128xf32>,
    return
  }
  func.func @transform_0(%arg0: i32, %arg1: i32) -> (i32, i32, i32) {
    %c0_i32 = arith.constant 0 : i32
    %c0_i32_0 = arith.constant 0 : i32
    %c0_i32_1 = arith.constant 0 : i32
    return %c0_i32, %arg1, %c0_i32_0 : i32, i32, i32
  }
  func.func @transform_1(%arg0: i32, %arg1: i32) -> (i32, i32, i32) {
    %c0_i32 = arith.constant 0 : i32
    %c0_i32_0 = arith.constant 0 : i32
    %c0_i32_1 = arith.constant 0 : i32
    return %arg0, %c0_i32, %c0_i32_0 : i32, i32, i32
  }
  func.func @transform_2(%arg0: i32, %arg1: i32) -> (i32, i32, i32) {
    %c0_i32 = arith.constant 0 : i32
    %c0_i32_0 = arith.constant 0 : i32
    return %arg0, %arg1, %c0_i32 : i32, i32, i32
  }
  func.func @transform_3(%arg0: i32, %arg1: i32) -> (i32, i32, i32) {
    %c0_i32 = arith.constant 0 : i32
    %c0_i32_0 = arith.constant 0 : i32
    %c0_i32_1 = arith.constant 0 : i32
    return %arg0, %c0_i32, %c0_i32_0 : i32, i32, i32
  }
  func.func @transform_4(%arg0: i32, %arg1: i32) -> (i32, i32, i32) {
    %c0_i32 = arith.constant 0 : i32
    %c0_i32_0 = arith.constant 0 : i32
    %c0_i32_1 = arith.constant 0 : i32
    return %arg0, %c0_i32, %c0_i32_0 : i32, i32, i32
  }
}

module attributes {stable_mosaic.version = 11 : i64} {
  func.func @_phase_matmul_stats_kernel(%arg0: i32, %arg1: i32, %arg2: memref<1x32x256xbf16, #tpu.memory_space<vmem>>, %arg3: memref<1x256x128xbf16, #tpu.memory_space<vmem>>, %arg4: memref<1x32x128xbf16, #tpu.memory_space<vmem>>, %arg5: memref<1x1x128xf32, #tpu.memory_space<vmem>>, %arg6: memref<1x1x128xf32, #tpu.memory_space<vmem>>) attributes {dimension_semantics = [#tpu.dimension_semantics<parallel>, #tpu.dimension_semantics<arbitrary>], iteration_bounds = array<i64: 4, 1>, scalar_prefetch = 0 : i64, scratch_operands = 0 : i64, tpu.core_type = #tpu.core_type<tc>, window_params = [{transform_indices = @transform_0, window_bounds = array<i64: 1, 32, 256>}, {transform_indices = @transform_1, window_bounds = array<i64: 1, 256, 128>}, {transform_indices = @transform_2, window_bounds = array<i64: 1, 32, 128>}, {transform_indices = @transform_3, window_bounds = array<i64: 1, 1, 128>}, {transform_indices = @transform_4, window_bounds = array<i64: 1, 1, 128>}]} {
    %c0 = arith.constant 0 : index
    %c0_0 = arith.constant 0 : index
    %c0_1 = arith.constant 0 : index
    %0 = vector.load %arg2[%c0, %c0_0, %c0_1] : memref<1x32x256xbf16, #tpu.memory_space<vmem>>, vector<1x32x256xbf16>
    %1 = vector.shape_cast %0 : vector<1x32x256xbf16> to vector<32x256xbf16>
    %c0_2 = arith.constant 0 : index
    %c0_3 = arith.constant 0 : index
    %c0_4 = arith.constant 0 : index
    %2 = vector.load %arg3[%c0_2, %c0_3, %c0_4] : memref<1x256x128xbf16, #tpu.memory_space<vmem>>, vector<1x256x128xbf16>
    %3 = vector.shape_cast %2 : vector<1x256x128xbf16> to vector<256x128xbf16>
    %cst = arith.constant dense<0.000000e+00> : vector<32x128xf32>
    %4 = tpu.matmul %1, %3, %cst {dimension_numbers = #tpu.dot_dimension_numbers<[1], [0], [0], [1], [0, 0, 1, 1], [], []>} : vector<32x256xbf16>, vector<256x128xbf16>, vector<32x128xf32> -> vector<32x128xf32>
    %5 = arith.truncf %4 : vector<32x128xf32> to vector<32x128xbf16>
    %c0_5 = arith.constant 0 : index
    %c0_6 = arith.constant 0 : index
    %c0_7 = arith.constant 0 : index
    %6 = vector.load %arg4[%c0_5, %c0_6, %c0_7] : memref<1x32x128xbf16, #tpu.memory_space<vmem>>, vector<1x32x128xbf16>
    %7 = vector.shape_cast %6 : vector<1x32x128xbf16> to vector<32x128xbf16>
    %8 = vector.shape_cast %5 : vector<32x128xbf16> to vector<1x32x128xbf16>
    tpu.vector_store %arg4[%c0_5, %c0_6, %c0_7], %8 {strides = array<i32>} : memref<1x32x128xbf16, #tpu.memory_space<vmem>>, vector<1x32x128xbf16>,
    %c0_i32 = arith.constant 0 : i32
    %9 = arith.cmpi eq, %arg1, %c0_i32 : i32
    %10 = arith.extui %9 : i1 to i32
    %c0_i32_8 = arith.constant 0 : i32
    %11 = arith.cmpi ne, %10, %c0_i32_8 : i32
    scf.if %11 {
      %cst_23 = arith.constant 0.000000e+00 : f32
      %25 = vector.broadcast %cst_23 : f32 to vector<1x1x128xf32>
      %c0_24 = arith.constant 0 : index
      %c0_25 = arith.constant 0 : index
      %c0_26 = arith.constant 0 : index
      %26 = vector.load %arg5[%c0_24, %c0_25, %c0_26] : memref<1x1x128xf32, #tpu.memory_space<vmem>>, vector<1x1x128xf32>
      tpu.vector_store %arg5[%c0_24, %c0_25, %c0_26], %25 {strides = array<i32>} : memref<1x1x128xf32, #tpu.memory_space<vmem>>, vector<1x1x128xf32>,
      %cst_27 = arith.constant 0.000000e+00 : f32
      %27 = vector.broadcast %cst_27 : f32 to vector<1x1x128xf32>
      %c0_28 = arith.constant 0 : index
      %c0_29 = arith.constant 0 : index
      %c0_30 = arith.constant 0 : index
      %28 = vector.load %arg6[%c0_28, %c0_29, %c0_30] : memref<1x1x128xf32, #tpu.memory_space<vmem>>, vector<1x1x128xf32>
      tpu.vector_store %arg6[%c0_28, %c0_29, %c0_30], %27 {strides = array<i32>} : memref<1x1x128xf32, #tpu.memory_space<vmem>>, vector<1x1x128xf32>,
    } else {
    }
    %c0_9 = arith.constant 0 : index
    %c0_10 = arith.constant 0 : index
    %c0_11 = arith.constant 0 : index
    %12 = vector.load %arg5[%c0_9, %c0_10, %c0_11] : memref<1x1x128xf32, #tpu.memory_space<vmem>>, vector<1x1x128xf32>
    %cst_12 = arith.constant dense<0.000000e+00> : vector<128xf32>
    %13 = vector.multi_reduction <add>, %4, %cst_12 [0] : vector<32x128xf32> to vector<128xf32>
    %14 = vector.shape_cast %13 : vector<128xf32> to vector<1x128xf32>
    %15 = vector.shape_cast %14 : vector<1x128xf32> to vector<1x1x128xf32>
    %16 = arith.addf %12, %15 : vector<1x1x128xf32>
    %c0_13 = arith.constant 0 : index
    %c0_14 = arith.constant 0 : index
    %c0_15 = arith.constant 0 : index
    %17 = vector.load %arg5[%c0_13, %c0_14, %c0_15] : memref<1x1x128xf32, #tpu.memory_space<vmem>>, vector<1x1x128xf32>
    tpu.vector_store %arg5[%c0_13, %c0_14, %c0_15], %16 {strides = array<i32>} : memref<1x1x128xf32, #tpu.memory_space<vmem>>, vector<1x1x128xf32>,
    %c0_16 = arith.constant 0 : index
    %c0_17 = arith.constant 0 : index
    %c0_18 = arith.constant 0 : index
    %18 = vector.load %arg6[%c0_16, %c0_17, %c0_18] : memref<1x1x128xf32, #tpu.memory_space<vmem>>, vector<1x1x128xf32>
    %19 = arith.mulf %4, %4 : vector<32x128xf32>
    %cst_19 = arith.constant dense<0.000000e+00> : vector<128xf32>
    %20 = vector.multi_reduction <add>, %19, %cst_19 [0] : vector<32x128xf32> to vector<128xf32>
    %21 = vector.shape_cast %20 : vector<128xf32> to vector<1x128xf32>
    %22 = vector.shape_cast %21 : vector<1x128xf32> to vector<1x1x128xf32>
    %23 = arith.addf %18, %22 : vector<1x1x128xf32>
    %c0_20 = arith.constant 0 : index
    %c0_21 = arith.constant 0 : index
    %c0_22 = arith.constant 0 : index
    %24 = vector.load %arg6[%c0_20, %c0_21, %c0_22] : memref<1x1x128xf32, #tpu.memory_space<vmem>>, vector<1x1x128xf32>
    tpu.vector_store %arg6[%c0_20, %c0_21, %c0_22], %23 {strides = array<i32>} : memref<1x1x128xf32, #tpu.memory_space<vmem>>, vector<1x1x128xf32>,
    return
  }
  func.func @transform_0(%arg0: i32, %arg1: i32) -> (i32, i32, i32) {
    %c0_i32 = arith.constant 0 : i32
    %c0_i32_0 = arith.constant 0 : i32
    return %arg0, %arg1, %c0_i32 : i32, i32, i32
  }
  func.func @transform_1(%arg0: i32, %arg1: i32) -> (i32, i32, i32) {
    %c0_i32 = arith.constant 0 : i32
    %c0_i32_0 = arith.constant 0 : i32
    %c0_i32_1 = arith.constant 0 : i32
    return %arg0, %c0_i32, %c0_i32_0 : i32, i32, i32
  }
  func.func @transform_2(%arg0: i32, %arg1: i32) -> (i32, i32, i32) {
    %c0_i32 = arith.constant 0 : i32
    %c0_i32_0 = arith.constant 0 : i32
    return %arg0, %arg1, %c0_i32 : i32, i32, i32
  }
  func.func @transform_3(%arg0: i32, %arg1: i32) -> (i32, i32, i32) {
    %c0_i32 = arith.constant 0 : i32
    %c0_i32_0 = arith.constant 0 : i32
    %c0_i32_1 = arith.constant 0 : i32
    return %arg0, %c0_i32, %c0_i32_0 : i32, i32, i32
  }
  func.func @transform_4(%arg0: i32, %arg1: i32) -> (i32, i32, i32) {
    %c0_i32 = arith.constant 0 : i32
    %c0_i32_0 = arith.constant 0 : i32
    %c0_i32_1 = arith.constant 0 : i32
    return %arg0, %c0_i32, %c0_i32_0 : i32, i32, i32
  }
}

module attributes {stable_mosaic.version = 11 : i64} {
  func.func @_bn_relu_kernel(%arg0: i32, %arg1: memref<128x128xbf16, #tpu.memory_space<vmem>>, %arg2: memref<1x128xf32, #tpu.memory_space<vmem>>, %arg3: memref<1x128xf32, #tpu.memory_space<vmem>>, %arg4: memref<128x128xbf16, #tpu.memory_space<vmem>>) attributes {dimension_semantics = [#tpu.dimension_semantics<parallel>], iteration_bounds = array<i64: 1>, scalar_prefetch = 0 : i64, scratch_operands = 0 : i64, tpu.core_type = #tpu.core_type<tc>, window_params = [{transform_indices = @transform_0, window_bounds = array<i64: 128, 128>}, {pipeline_mode = #tpu.pipeline_mode<synchronous>, transform_indices = @transform_1, window_bounds = array<i64: 1, 128>}, {pipeline_mode = #tpu.pipeline_mode<synchronous>, transform_indices = @transform_2, window_bounds = array<i64: 1, 128>}, {transform_indices = @transform_3, window_bounds = array<i64: 128, 128>}]} {
    %c0 = arith.constant 0 : index
    %c0_0 = arith.constant 0 : index
    %0 = vector.load %arg1[%c0, %c0_0] : memref<128x128xbf16, #tpu.memory_space<vmem>>, vector<128x128xbf16>
    %1 = arith.extf %0 : vector<128x128xbf16> to vector<128x128xf32>
    %c0_1 = arith.constant 0 : index
    %c0_2 = arith.constant 0 : index
    %2 = vector.load %arg2[%c0_1, %c0_2] : memref<1x128xf32, #tpu.memory_space<vmem>>, vector<1x128xf32>
    %3 = vector.broadcast %2 : vector<1x128xf32> to vector<128x128xf32>
    %4 = arith.mulf %1, %3 : vector<128x128xf32>
    %c0_3 = arith.constant 0 : index
    %c0_4 = arith.constant 0 : index
    %5 = vector.load %arg3[%c0_3, %c0_4] : memref<1x128xf32, #tpu.memory_space<vmem>>, vector<1x128xf32>
    %6 = vector.broadcast %5 : vector<1x128xf32> to vector<128x128xf32>
    %7 = arith.addf %4, %6 : vector<128x128xf32>
    %cst = arith.constant 0.000000e+00 : f32
    %8 = vector.broadcast %cst : f32 to vector<128x128xf32>
    %9 = arith.maximumf %7, %8 : vector<128x128xf32>
    %10 = arith.truncf %9 : vector<128x128xf32> to vector<128x128xbf16>
    %c0_5 = arith.constant 0 : index
    %c0_6 = arith.constant 0 : index
    %11 = vector.load %arg4[%c0_5, %c0_6] : memref<128x128xbf16, #tpu.memory_space<vmem>>, vector<128x128xbf16>
    tpu.vector_store %arg4[%c0_5, %c0_6], %10 {strides = array<i32>} : memref<128x128xbf16, #tpu.memory_space<vmem>>, vector<128x128xbf16>,
    return
  }
  func.func @transform_0(%arg0: i32) -> (i32, i32) {
    %c0_i32 = arith.constant 0 : i32
    %c0_i32_0 = arith.constant 0 : i32
    return %arg0, %c0_i32 : i32, i32
  }
  func.func @transform_1(%arg0: i32) -> (i32, i32) {
    %c0_i32 = arith.constant 0 : i32
    %c0_i32_0 = arith.constant 0 : i32
    %c0_i32_1 = arith.constant 0 : i32
    return %c0_i32, %c0_i32_0 : i32, i32
  }
  func.func @transform_2(%arg0: i32) -> (i32, i32) {
    %c0_i32 = arith.constant 0 : i32
    %c0_i32_0 = arith.constant 0 : i32
    %c0_i32_1 = arith.constant 0 : i32
    return %c0_i32, %c0_i32_0 : i32, i32
  }
  func.func @transform_3(%arg0: i32) -> (i32, i32) {
    %c0_i32 = arith.constant 0 : i32
    %c0_i32_0 = arith.constant 0 : i32
    return %arg0, %c0_i32 : i32, i32
  }
}

module attributes {stable_mosaic.version = 11 : i64} {
  func.func @_phase_matmul_stats_kernel(%arg0: i32, %arg1: i32, %arg2: memref<1x128x128xbf16, #tpu.memory_space<vmem>>, %arg3: memref<1x128x128xbf16, #tpu.memory_space<vmem>>, %arg4: memref<1x128x128xbf16, #tpu.memory_space<vmem>>, %arg5: memref<1x1x128xf32, #tpu.memory_space<vmem>>, %arg6: memref<1x1x128xf32, #tpu.memory_space<vmem>>) attributes {dimension_semantics = [#tpu.dimension_semantics<parallel>, #tpu.dimension_semantics<arbitrary>], iteration_bounds = array<i64: 4, 1>, scalar_prefetch = 0 : i64, scratch_operands = 0 : i64, tpu.core_type = #tpu.core_type<tc>, window_params = [{transform_indices = @transform_0, window_bounds = array<i64: 1, 128, 128>}, {transform_indices = @transform_1, window_bounds = array<i64: 1, 128, 128>}, {transform_indices = @transform_2, window_bounds = array<i64: 1, 128, 128>}, {transform_indices = @transform_3, window_bounds = array<i64: 1, 1, 128>}, {transform_indices = @transform_4, window_bounds = array<i64: 1, 1, 128>}]} {
    %c0 = arith.constant 0 : index
    %c0_0 = arith.constant 0 : index
    %c0_1 = arith.constant 0 : index
    %0 = vector.load %arg2[%c0, %c0_0, %c0_1] : memref<1x128x128xbf16, #tpu.memory_space<vmem>>, vector<1x128x128xbf16>
    %1 = vector.shape_cast %0 : vector<1x128x128xbf16> to vector<128x128xbf16>
    %c0_2 = arith.constant 0 : index
    %c0_3 = arith.constant 0 : index
    %c0_4 = arith.constant 0 : index
    %2 = vector.load %arg3[%c0_2, %c0_3, %c0_4] : memref<1x128x128xbf16, #tpu.memory_space<vmem>>, vector<1x128x128xbf16>
    %3 = vector.shape_cast %2 : vector<1x128x128xbf16> to vector<128x128xbf16>
    %cst = arith.constant dense<0.000000e+00> : vector<128x128xf32>
    %4 = tpu.matmul %1, %3, %cst {dimension_numbers = #tpu.dot_dimension_numbers<[1], [0], [0], [1], [0, 0, 1, 1], [], []>} : vector<128x128xbf16>, vector<128x128xbf16>, vector<128x128xf32> -> vector<128x128xf32>
    %5 = arith.truncf %4 : vector<128x128xf32> to vector<128x128xbf16>
    %c0_5 = arith.constant 0 : index
    %c0_6 = arith.constant 0 : index
    %c0_7 = arith.constant 0 : index
    %6 = vector.load %arg4[%c0_5, %c0_6, %c0_7] : memref<1x128x128xbf16, #tpu.memory_space<vmem>>, vector<1x128x128xbf16>
    %7 = vector.shape_cast %6 : vector<1x128x128xbf16> to vector<128x128xbf16>
    %8 = vector.shape_cast %5 : vector<128x128xbf16> to vector<1x128x128xbf16>
    tpu.vector_store %arg4[%c0_5, %c0_6, %c0_7], %8 {strides = array<i32>} : memref<1x128x128xbf16, #tpu.memory_space<vmem>>, vector<1x128x128xbf16>,
    %c0_i32 = arith.constant 0 : i32
    %9 = arith.cmpi eq, %arg1, %c0_i32 : i32
    %10 = arith.extui %9 : i1 to i32
    %c0_i32_8 = arith.constant 0 : i32
    %11 = arith.cmpi ne, %10, %c0_i32_8 : i32
    scf.if %11 {
      %cst_23 = arith.constant 0.000000e+00 : f32
      %25 = vector.broadcast %cst_23 : f32 to vector<1x1x128xf32>
      %c0_24 = arith.constant 0 : index
      %c0_25 = arith.constant 0 : index
      %c0_26 = arith.constant 0 : index
      %26 = vector.load %arg5[%c0_24, %c0_25, %c0_26] : memref<1x1x128xf32, #tpu.memory_space<vmem>>, vector<1x1x128xf32>
      tpu.vector_store %arg5[%c0_24, %c0_25, %c0_26], %25 {strides = array<i32>} : memref<1x1x128xf32, #tpu.memory_space<vmem>>, vector<1x1x128xf32>,
      %cst_27 = arith.constant 0.000000e+00 : f32
      %27 = vector.broadcast %cst_27 : f32 to vector<1x1x128xf32>
      %c0_28 = arith.constant 0 : index
      %c0_29 = arith.constant 0 : index
      %c0_30 = arith.constant 0 : index
      %28 = vector.load %arg6[%c0_28, %c0_29, %c0_30] : memref<1x1x128xf32, #tpu.memory_space<vmem>>, vector<1x1x128xf32>
      tpu.vector_store %arg6[%c0_28, %c0_29, %c0_30], %27 {strides = array<i32>} : memref<1x1x128xf32, #tpu.memory_space<vmem>>, vector<1x1x128xf32>,
    } else {
    }
    %c0_9 = arith.constant 0 : index
    %c0_10 = arith.constant 0 : index
    %c0_11 = arith.constant 0 : index
    %12 = vector.load %arg5[%c0_9, %c0_10, %c0_11] : memref<1x1x128xf32, #tpu.memory_space<vmem>>, vector<1x1x128xf32>
    %cst_12 = arith.constant dense<0.000000e+00> : vector<128xf32>
    %13 = vector.multi_reduction <add>, %4, %cst_12 [0] : vector<128x128xf32> to vector<128xf32>
    %14 = vector.shape_cast %13 : vector<128xf32> to vector<1x128xf32>
    %15 = vector.shape_cast %14 : vector<1x128xf32> to vector<1x1x128xf32>
    %16 = arith.addf %12, %15 : vector<1x1x128xf32>
    %c0_13 = arith.constant 0 : index
    %c0_14 = arith.constant 0 : index
    %c0_15 = arith.constant 0 : index
    %17 = vector.load %arg5[%c0_13, %c0_14, %c0_15] : memref<1x1x128xf32, #tpu.memory_space<vmem>>, vector<1x1x128xf32>
    tpu.vector_store %arg5[%c0_13, %c0_14, %c0_15], %16 {strides = array<i32>} : memref<1x1x128xf32, #tpu.memory_space<vmem>>, vector<1x1x128xf32>,
    %c0_16 = arith.constant 0 : index
    %c0_17 = arith.constant 0 : index
    %c0_18 = arith.constant 0 : index
    %18 = vector.load %arg6[%c0_16, %c0_17, %c0_18] : memref<1x1x128xf32, #tpu.memory_space<vmem>>, vector<1x1x128xf32>
    %19 = arith.mulf %4, %4 : vector<128x128xf32>
    %cst_19 = arith.constant dense<0.000000e+00> : vector<128xf32>
    %20 = vector.multi_reduction <add>, %19, %cst_19 [0] : vector<128x128xf32> to vector<128xf32>
    %21 = vector.shape_cast %20 : vector<128xf32> to vector<1x128xf32>
    %22 = vector.shape_cast %21 : vector<1x128xf32> to vector<1x1x128xf32>
    %23 = arith.addf %18, %22 : vector<1x1x128xf32>
    %c0_20 = arith.constant 0 : index
    %c0_21 = arith.constant 0 : index
    %c0_22 = arith.constant 0 : index
    %24 = vector.load %arg6[%c0_20, %c0_21, %c0_22] : memref<1x1x128xf32, #tpu.memory_space<vmem>>, vector<1x1x128xf32>
    tpu.vector_store %arg6[%c0_20, %c0_21, %c0_22], %23 {strides = array<i32>} : memref<1x1x128xf32, #tpu.memory_space<vmem>>, vector<1x1x128xf32>,
    return
  }
  func.func @transform_0(%arg0: i32, %arg1: i32) -> (i32, i32, i32) {
    %c0_i32 = arith.constant 0 : i32
    %c0_i32_0 = arith.constant 0 : i32
    return %arg0, %arg1, %c0_i32 : i32, i32, i32
  }
  func.func @transform_1(%arg0: i32, %arg1: i32) -> (i32, i32, i32) {
    %c0_i32 = arith.constant 0 : i32
    %c0_i32_0 = arith.constant 0 : i32
    %c0_i32_1 = arith.constant 0 : i32
    return %arg0, %c0_i32, %c0_i32_0 : i32, i32, i32
  }
  func.func @transform_2(%arg0: i32, %arg1: i32) -> (i32, i32, i32) {
    %c0_i32 = arith.constant 0 : i32
    %c0_i32_0 = arith.constant 0 : i32
    return %arg0, %arg1, %c0_i32 : i32, i32, i32
  }
  func.func @transform_3(%arg0: i32, %arg1: i32) -> (i32, i32, i32) {
    %c0_i32 = arith.constant 0 : i32
    %c0_i32_0 = arith.constant 0 : i32
    %c0_i32_1 = arith.constant 0 : i32
    return %arg0, %c0_i32, %c0_i32_0 : i32, i32, i32
  }
  func.func @transform_4(%arg0: i32, %arg1: i32) -> (i32, i32, i32) {
    %c0_i32 = arith.constant 0 : i32
    %c0_i32_0 = arith.constant 0 : i32
    %c0_i32_1 = arith.constant 0 : i32
    return %arg0, %c0_i32, %c0_i32_0 : i32, i32, i32
  }
}

module attributes {stable_mosaic.version = 11 : i64} {
  func.func @_bn_relu_kernel(%arg0: i32, %arg1: memref<512x128xbf16, #tpu.memory_space<vmem>>, %arg2: memref<1x128xf32, #tpu.memory_space<vmem>>, %arg3: memref<1x128xf32, #tpu.memory_space<vmem>>, %arg4: memref<512x128xbf16, #tpu.memory_space<vmem>>) attributes {dimension_semantics = [#tpu.dimension_semantics<parallel>], iteration_bounds = array<i64: 1>, scalar_prefetch = 0 : i64, scratch_operands = 0 : i64, tpu.core_type = #tpu.core_type<tc>, window_params = [{transform_indices = @transform_0, window_bounds = array<i64: 512, 128>}, {pipeline_mode = #tpu.pipeline_mode<synchronous>, transform_indices = @transform_1, window_bounds = array<i64: 1, 128>}, {pipeline_mode = #tpu.pipeline_mode<synchronous>, transform_indices = @transform_2, window_bounds = array<i64: 1, 128>}, {transform_indices = @transform_3, window_bounds = array<i64: 512, 128>}]} {
    %c0 = arith.constant 0 : index
    %c0_0 = arith.constant 0 : index
    %0 = vector.load %arg1[%c0, %c0_0] : memref<512x128xbf16, #tpu.memory_space<vmem>>, vector<512x128xbf16>
    %1 = arith.extf %0 : vector<512x128xbf16> to vector<512x128xf32>
    %c0_1 = arith.constant 0 : index
    %c0_2 = arith.constant 0 : index
    %2 = vector.load %arg2[%c0_1, %c0_2] : memref<1x128xf32, #tpu.memory_space<vmem>>, vector<1x128xf32>
    %3 = vector.broadcast %2 : vector<1x128xf32> to vector<512x128xf32>
    %4 = arith.mulf %1, %3 : vector<512x128xf32>
    %c0_3 = arith.constant 0 : index
    %c0_4 = arith.constant 0 : index
    %5 = vector.load %arg3[%c0_3, %c0_4] : memref<1x128xf32, #tpu.memory_space<vmem>>, vector<1x128xf32>
    %6 = vector.broadcast %5 : vector<1x128xf32> to vector<512x128xf32>
    %7 = arith.addf %4, %6 : vector<512x128xf32>
    %cst = arith.constant 0.000000e+00 : f32
    %8 = vector.broadcast %cst : f32 to vector<512x128xf32>
    %9 = arith.maximumf %7, %8 : vector<512x128xf32>
    %10 = arith.truncf %9 : vector<512x128xf32> to vector<512x128xbf16>
    %c0_5 = arith.constant 0 : index
    %c0_6 = arith.constant 0 : index
    %11 = vector.load %arg4[%c0_5, %c0_6] : memref<512x128xbf16, #tpu.memory_space<vmem>>, vector<512x128xbf16>
    tpu.vector_store %arg4[%c0_5, %c0_6], %10 {strides = array<i32>} : memref<512x128xbf16, #tpu.memory_space<vmem>>, vector<512x128xbf16>,
    return
  }
  func.func @transform_0(%arg0: i32) -> (i32, i32) {
    %c0_i32 = arith.constant 0 : i32
    %c0_i32_0 = arith.constant 0 : i32
    return %arg0, %c0_i32 : i32, i32
  }
  func.func @transform_1(%arg0: i32) -> (i32, i32) {
    %c0_i32 = arith.constant 0 : i32
    %c0_i32_0 = arith.constant 0 : i32
    %c0_i32_1 = arith.constant 0 : i32
    return %c0_i32, %c0_i32_0 : i32, i32
  }
  func.func @transform_2(%arg0: i32) -> (i32, i32) {
    %c0_i32 = arith.constant 0 : i32
    %c0_i32_0 = arith.constant 0 : i32
    %c0_i32_1 = arith.constant 0 : i32
    return %c0_i32, %c0_i32_0 : i32, i32
  }
  func.func @transform_3(%arg0: i32) -> (i32, i32) {
    %c0_i32 = arith.constant 0 : i32
    %c0_i32_0 = arith.constant 0 : i32
    return %arg0, %c0_i32 : i32, i32
  }
}

module attributes {stable_mosaic.version = 11 : i64} {
  func.func @_phase_matmul_stats_kernel(%arg0: i32, %arg1: i32, %arg2: memref<1x512x64xbf16, #tpu.memory_space<vmem>>, %arg3: memref<1x64x128xbf16, #tpu.memory_space<vmem>>, %arg4: memref<1x512x128xbf16, #tpu.memory_space<vmem>>, %arg5: memref<1x1x128xf32, #tpu.memory_space<vmem>>, %arg6: memref<1x1x128xf32, #tpu.memory_space<vmem>>) attributes {dimension_semantics = [#tpu.dimension_semantics<parallel>, #tpu.dimension_semantics<arbitrary>], iteration_bounds = array<i64: 4, 1>, scalar_prefetch = 0 : i64, scratch_operands = 0 : i64, tpu.core_type = #tpu.core_type<tc>, window_params = [{transform_indices = @transform_0, window_bounds = array<i64: 1, 512, 64>}, {transform_indices = @transform_1, window_bounds = array<i64: 1, 64, 128>}, {transform_indices = @transform_2, window_bounds = array<i64: 1, 512, 128>}, {transform_indices = @transform_3, window_bounds = array<i64: 1, 1, 128>}, {transform_indices = @transform_4, window_bounds = array<i64: 1, 1, 128>}]} {
    %c0 = arith.constant 0 : index
    %c0_0 = arith.constant 0 : index
    %c0_1 = arith.constant 0 : index
    %0 = vector.load %arg2[%c0, %c0_0, %c0_1] : memref<1x512x64xbf16, #tpu.memory_space<vmem>>, vector<1x512x64xbf16>
    %1 = vector.shape_cast %0 : vector<1x512x64xbf16> to vector<512x64xbf16>
    %c0_2 = arith.constant 0 : index
    %c0_3 = arith.constant 0 : index
    %c0_4 = arith.constant 0 : index
    %2 = vector.load %arg3[%c0_2, %c0_3, %c0_4] : memref<1x64x128xbf16, #tpu.memory_space<vmem>>, vector<1x64x128xbf16>
    %3 = vector.shape_cast %2 : vector<1x64x128xbf16> to vector<64x128xbf16>
    %cst = arith.constant dense<0.000000e+00> : vector<512x128xf32>
    %4 = tpu.matmul %1, %3, %cst {dimension_numbers = #tpu.dot_dimension_numbers<[1], [0], [0], [1], [0, 0, 1, 1], [], []>} : vector<512x64xbf16>, vector<64x128xbf16>, vector<512x128xf32> -> vector<512x128xf32>
    %5 = arith.truncf %4 : vector<512x128xf32> to vector<512x128xbf16>
    %c0_5 = arith.constant 0 : index
    %c0_6 = arith.constant 0 : index
    %c0_7 = arith.constant 0 : index
    %6 = vector.load %arg4[%c0_5, %c0_6, %c0_7] : memref<1x512x128xbf16, #tpu.memory_space<vmem>>, vector<1x512x128xbf16>
    %7 = vector.shape_cast %6 : vector<1x512x128xbf16> to vector<512x128xbf16>
    %8 = vector.shape_cast %5 : vector<512x128xbf16> to vector<1x512x128xbf16>
    tpu.vector_store %arg4[%c0_5, %c0_6, %c0_7], %8 {strides = array<i32>} : memref<1x512x128xbf16, #tpu.memory_space<vmem>>, vector<1x512x128xbf16>,
    %c0_i32 = arith.constant 0 : i32
    %9 = arith.cmpi eq, %arg1, %c0_i32 : i32
    %10 = arith.extui %9 : i1 to i32
    %c0_i32_8 = arith.constant 0 : i32
    %11 = arith.cmpi ne, %10, %c0_i32_8 : i32
    scf.if %11 {
      %cst_23 = arith.constant 0.000000e+00 : f32
      %25 = vector.broadcast %cst_23 : f32 to vector<1x1x128xf32>
      %c0_24 = arith.constant 0 : index
      %c0_25 = arith.constant 0 : index
      %c0_26 = arith.constant 0 : index
      %26 = vector.load %arg5[%c0_24, %c0_25, %c0_26] : memref<1x1x128xf32, #tpu.memory_space<vmem>>, vector<1x1x128xf32>
      tpu.vector_store %arg5[%c0_24, %c0_25, %c0_26], %25 {strides = array<i32>} : memref<1x1x128xf32, #tpu.memory_space<vmem>>, vector<1x1x128xf32>,
      %cst_27 = arith.constant 0.000000e+00 : f32
      %27 = vector.broadcast %cst_27 : f32 to vector<1x1x128xf32>
      %c0_28 = arith.constant 0 : index
      %c0_29 = arith.constant 0 : index
      %c0_30 = arith.constant 0 : index
      %28 = vector.load %arg6[%c0_28, %c0_29, %c0_30] : memref<1x1x128xf32, #tpu.memory_space<vmem>>, vector<1x1x128xf32>
      tpu.vector_store %arg6[%c0_28, %c0_29, %c0_30], %27 {strides = array<i32>} : memref<1x1x128xf32, #tpu.memory_space<vmem>>, vector<1x1x128xf32>,
    } else {
    }
    %c0_9 = arith.constant 0 : index
    %c0_10 = arith.constant 0 : index
    %c0_11 = arith.constant 0 : index
    %12 = vector.load %arg5[%c0_9, %c0_10, %c0_11] : memref<1x1x128xf32, #tpu.memory_space<vmem>>, vector<1x1x128xf32>
    %cst_12 = arith.constant dense<0.000000e+00> : vector<128xf32>
    %13 = vector.multi_reduction <add>, %4, %cst_12 [0] : vector<512x128xf32> to vector<128xf32>
    %14 = vector.shape_cast %13 : vector<128xf32> to vector<1x128xf32>
    %15 = vector.shape_cast %14 : vector<1x128xf32> to vector<1x1x128xf32>
    %16 = arith.addf %12, %15 : vector<1x1x128xf32>
    %c0_13 = arith.constant 0 : index
    %c0_14 = arith.constant 0 : index
    %c0_15 = arith.constant 0 : index
    %17 = vector.load %arg5[%c0_13, %c0_14, %c0_15] : memref<1x1x128xf32, #tpu.memory_space<vmem>>, vector<1x1x128xf32>
    tpu.vector_store %arg5[%c0_13, %c0_14, %c0_15], %16 {strides = array<i32>} : memref<1x1x128xf32, #tpu.memory_space<vmem>>, vector<1x1x128xf32>,
    %c0_16 = arith.constant 0 : index
    %c0_17 = arith.constant 0 : index
    %c0_18 = arith.constant 0 : index
    %18 = vector.load %arg6[%c0_16, %c0_17, %c0_18] : memref<1x1x128xf32, #tpu.memory_space<vmem>>, vector<1x1x128xf32>
    %19 = arith.mulf %4, %4 : vector<512x128xf32>
    %cst_19 = arith.constant dense<0.000000e+00> : vector<128xf32>
    %20 = vector.multi_reduction <add>, %19, %cst_19 [0] : vector<512x128xf32> to vector<128xf32>
    %21 = vector.shape_cast %20 : vector<128xf32> to vector<1x128xf32>
    %22 = vector.shape_cast %21 : vector<1x128xf32> to vector<1x1x128xf32>
    %23 = arith.addf %18, %22 : vector<1x1x128xf32>
    %c0_20 = arith.constant 0 : index
    %c0_21 = arith.constant 0 : index
    %c0_22 = arith.constant 0 : index
    %24 = vector.load %arg6[%c0_20, %c0_21, %c0_22] : memref<1x1x128xf32, #tpu.memory_space<vmem>>, vector<1x1x128xf32>
    tpu.vector_store %arg6[%c0_20, %c0_21, %c0_22], %23 {strides = array<i32>} : memref<1x1x128xf32, #tpu.memory_space<vmem>>, vector<1x1x128xf32>,
    return
  }
  func.func @transform_0(%arg0: i32, %arg1: i32) -> (i32, i32, i32) {
    %c0_i32 = arith.constant 0 : i32
    %c0_i32_0 = arith.constant 0 : i32
    return %arg0, %arg1, %c0_i32 : i32, i32, i32
  }
  func.func @transform_1(%arg0: i32, %arg1: i32) -> (i32, i32, i32) {
    %c0_i32 = arith.constant 0 : i32
    %c0_i32_0 = arith.constant 0 : i32
    %c0_i32_1 = arith.constant 0 : i32
    return %arg0, %c0_i32, %c0_i32_0 : i32, i32, i32
  }
  func.func @transform_2(%arg0: i32, %arg1: i32) -> (i32, i32, i32) {
    %c0_i32 = arith.constant 0 : i32
    %c0_i32_0 = arith.constant 0 : i32
    return %arg0, %arg1, %c0_i32 : i32, i32, i32
  }
  func.func @transform_3(%arg0: i32, %arg1: i32) -> (i32, i32, i32) {
    %c0_i32 = arith.constant 0 : i32
    %c0_i32_0 = arith.constant 0 : i32
    %c0_i32_1 = arith.constant 0 : i32
    return %arg0, %c0_i32, %c0_i32_0 : i32, i32, i32
  }
  func.func @transform_4(%arg0: i32, %arg1: i32) -> (i32, i32, i32) {
    %c0_i32 = arith.constant 0 : i32
    %c0_i32_0 = arith.constant 0 : i32
    %c0_i32_1 = arith.constant 0 : i32
    return %arg0, %c0_i32, %c0_i32_0 : i32, i32, i32
  }
}

module attributes {stable_mosaic.version = 11 : i64} {
  func.func @_bn_relu_kernel(%arg0: i32, %arg1: memref<1024x128xbf16, #tpu.memory_space<vmem>>, %arg2: memref<1x128xf32, #tpu.memory_space<vmem>>, %arg3: memref<1x128xf32, #tpu.memory_space<vmem>>, %arg4: memref<1024x128xbf16, #tpu.memory_space<vmem>>) attributes {dimension_semantics = [#tpu.dimension_semantics<parallel>], iteration_bounds = array<i64: 2>, scalar_prefetch = 0 : i64, scratch_operands = 0 : i64, tpu.core_type = #tpu.core_type<tc>, window_params = [{transform_indices = @transform_0, window_bounds = array<i64: 1024, 128>}, {pipeline_mode = #tpu.pipeline_mode<synchronous>, transform_indices = @transform_1, window_bounds = array<i64: 1, 128>}, {pipeline_mode = #tpu.pipeline_mode<synchronous>, transform_indices = @transform_2, window_bounds = array<i64: 1, 128>}, {transform_indices = @transform_3, window_bounds = array<i64: 1024, 128>}]} {
    %c0 = arith.constant 0 : index
    %c0_0 = arith.constant 0 : index
    %0 = vector.load %arg1[%c0, %c0_0] : memref<1024x128xbf16, #tpu.memory_space<vmem>>, vector<1024x128xbf16>
    %1 = arith.extf %0 : vector<1024x128xbf16> to vector<1024x128xf32>
    %c0_1 = arith.constant 0 : index
    %c0_2 = arith.constant 0 : index
    %2 = vector.load %arg2[%c0_1, %c0_2] : memref<1x128xf32, #tpu.memory_space<vmem>>, vector<1x128xf32>
    %3 = vector.broadcast %2 : vector<1x128xf32> to vector<1024x128xf32>
    %4 = arith.mulf %1, %3 : vector<1024x128xf32>
    %c0_3 = arith.constant 0 : index
    %c0_4 = arith.constant 0 : index
    %5 = vector.load %arg3[%c0_3, %c0_4] : memref<1x128xf32, #tpu.memory_space<vmem>>, vector<1x128xf32>
    %6 = vector.broadcast %5 : vector<1x128xf32> to vector<1024x128xf32>
    %7 = arith.addf %4, %6 : vector<1024x128xf32>
    %cst = arith.constant 0.000000e+00 : f32
    %8 = vector.broadcast %cst : f32 to vector<1024x128xf32>
    %9 = arith.maximumf %7, %8 : vector<1024x128xf32>
    %10 = arith.truncf %9 : vector<1024x128xf32> to vector<1024x128xbf16>
    %c0_5 = arith.constant 0 : index
    %c0_6 = arith.constant 0 : index
    %11 = vector.load %arg4[%c0_5, %c0_6] : memref<1024x128xbf16, #tpu.memory_space<vmem>>, vector<1024x128xbf16>
    tpu.vector_store %arg4[%c0_5, %c0_6], %10 {strides = array<i32>} : memref<1024x128xbf16, #tpu.memory_space<vmem>>, vector<1024x128xbf16>,
    return
  }
  func.func @transform_0(%arg0: i32) -> (i32, i32) {
    %c0_i32 = arith.constant 0 : i32
    %c0_i32_0 = arith.constant 0 : i32
    return %arg0, %c0_i32 : i32, i32
  }
  func.func @transform_1(%arg0: i32) -> (i32, i32) {
    %c0_i32 = arith.constant 0 : i32
    %c0_i32_0 = arith.constant 0 : i32
    %c0_i32_1 = arith.constant 0 : i32
    return %c0_i32, %c0_i32_0 : i32, i32
  }
  func.func @transform_2(%arg0: i32) -> (i32, i32) {
    %c0_i32 = arith.constant 0 : i32
    %c0_i32_0 = arith.constant 0 : i32
    %c0_i32_1 = arith.constant 0 : i32
    return %c0_i32, %c0_i32_0 : i32, i32
  }
  func.func @transform_3(%arg0: i32) -> (i32, i32) {
    %c0_i32 = arith.constant 0 : i32
    %c0_i32_0 = arith.constant 0 : i32
    return %arg0, %c0_i32 : i32, i32
  }
}

module attributes {stable_mosaic.version = 11 : i64} {
  func.func @_phase_matmul_tanh_kernel(%arg0: i32, %arg1: i32, %arg2: memref<1x512x32xbf16, #tpu.memory_space<vmem>>, %arg3: memref<1x32x128xbf16, #tpu.memory_space<vmem>>, %arg4: memref<1x512x128xf32, #tpu.memory_space<vmem>>) attributes {dimension_semantics = [#tpu.dimension_semantics<parallel>, #tpu.dimension_semantics<parallel>], iteration_bounds = array<i64: 4, 4>, scalar_prefetch = 0 : i64, scratch_operands = 0 : i64, tpu.core_type = #tpu.core_type<tc>, window_params = [{transform_indices = @transform_0, window_bounds = array<i64: 1, 512, 32>}, {transform_indices = @transform_1, window_bounds = array<i64: 1, 32, 128>}, {transform_indices = @transform_2, window_bounds = array<i64: 1, 512, 128>}]} {
    %c0 = arith.constant 0 : index
    %c0_0 = arith.constant 0 : index
    %c0_1 = arith.constant 0 : index
    %0 = vector.load %arg2[%c0, %c0_0, %c0_1] : memref<1x512x32xbf16, #tpu.memory_space<vmem>>, vector<1x512x32xbf16>
    %1 = vector.shape_cast %0 : vector<1x512x32xbf16> to vector<512x32xbf16>
    %c0_2 = arith.constant 0 : index
    %c0_3 = arith.constant 0 : index
    %c0_4 = arith.constant 0 : index
    %2 = vector.load %arg3[%c0_2, %c0_3, %c0_4] : memref<1x32x128xbf16, #tpu.memory_space<vmem>>, vector<1x32x128xbf16>
    %3 = vector.shape_cast %2 : vector<1x32x128xbf16> to vector<32x128xbf16>
    %cst = arith.constant dense<0.000000e+00> : vector<512x128xf32>
    %4 = tpu.matmul %1, %3, %cst {dimension_numbers = #tpu.dot_dimension_numbers<[1], [0], [0], [1], [0, 0, 1, 1], [], []>} : vector<512x32xbf16>, vector<32x128xbf16>, vector<512x128xf32> -> vector<512x128xf32>
    %5 = math.tanh %4 : vector<512x128xf32>
    %c0_5 = arith.constant 0 : index
    %c0_6 = arith.constant 0 : index
    %c0_7 = arith.constant 0 : index
    %6 = vector.load %arg4[%c0_5, %c0_6, %c0_7] : memref<1x512x128xf32, #tpu.memory_space<vmem>>, vector<1x512x128xf32>
    %7 = vector.shape_cast %6 : vector<1x512x128xf32> to vector<512x128xf32>
    %8 = vector.shape_cast %5 : vector<512x128xf32> to vector<1x512x128xf32>
    tpu.vector_store %arg4[%c0_5, %c0_6, %c0_7], %8 {strides = array<i32>} : memref<1x512x128xf32, #tpu.memory_space<vmem>>, vector<1x512x128xf32>,
    return
  }
  func.func @transform_0(%arg0: i32, %arg1: i32) -> (i32, i32, i32) {
    %c0_i32 = arith.constant 0 : i32
    %c0_i32_0 = arith.constant 0 : i32
    return %arg0, %arg1, %c0_i32 : i32, i32, i32
  }
  func.func @transform_1(%arg0: i32, %arg1: i32) -> (i32, i32, i32) {
    %c0_i32 = arith.constant 0 : i32
    %c0_i32_0 = arith.constant 0 : i32
    %c0_i32_1 = arith.constant 0 : i32
    return %arg0, %c0_i32, %c0_i32_0 : i32, i32, i32
  }
  func.func @transform_2(%arg0: i32, %arg1: i32) -> (i32, i32, i32) {
    %c0_i32 = arith.constant 0 : i32
    %c0_i32_0 = arith.constant 0 : i32
    return %arg0, %arg1, %c0_i32 : i32, i32, i32
  }
}

</mosaic_0001>

<bundles_post_ra>
// kernel: generator_celeba_forward.10
= control target key start
LH: loop header
LB: loop body
LE: loop exit
PB: predicated region body
PF: predicated region fallthrough
CT: control target
= control target key end

     0   :  { %s140_s0 = inlined_call_operand.vmem [shape: bf16[32,128], index: 0, kind: input, shape index: {}]   ;;  %s141_s1 = inlined_call_operand.vmem [shape: f32[1,128], index: 1, kind: input, shape index: {}]   ;;  %s142_s2 = inlined_call_operand.vmem [shape: f32[1,128], index: 2, kind: input, shape index: {}]   ;;  %s143_s3 = inlined_call_operand.vmem [shape: bf16[32,128], index: 3, kind: output, shape index: {}]  }
   0x1   :  { %v83_v0 = vld [vmem:[%s140_s0] sm:$0xff]   ;;  %v100_v4 = vld [vmem:[%s140_s0 + $0x8] sm:$0xff]  }
   0x2   :  { %v72_v1 = vld [vmem:[%s141_s1] ss:$0 sm:$0xff]  ;;  %v84_v2 = vunpack.c.l.bf16 %v83_v0  ;;  %v85_v3 = vunpack.c.h.bf16 %v83_v0  ;;  %v88_v6 = vunpack.c.l.bf16 %v100_v4  ;;  %v89_v7 = vunpack.c.h.bf16 %v100_v4 }
   0x3   :  { %v73_v5 = vld [vmem:[%s142_s2] ss:$0 sm:$0xff] }
   0x4   :  { %v29_v8 = vmul.f32 %v84_v2, %v72_v1  ;;  %v30_v9 = vmul.f32 %v85_v3, %v72_v1  ;;  %v31_v10 = vmul.f32 %v88_v6, %v72_v1  ;;  %v32_v11 = vmul.f32 %v89_v7, %v72_v1 }
   0x6   :  { %v40_v12 = vadd.f32 %v73_v5, %v29_v8  ;;  %v41_v13 = vadd.f32 %v73_v5, %v30_v9  ;;  %v42_v14 = vadd.f32 %v73_v5, %v31_v10  ;;  %v43_v15 = vadd.f32 %v73_v5, %v32_v11 }
   0x8   :  { %v44_v16 = vmax.f32 %v40_v12, 0.0  ;;  %v45_v17 = vmax.f32 %v41_v13, 0.0  ;;  %v46_v18 = vmax.f32 %v42_v14, 0.0  ;;  %v47_v19 = vmax.f32 %v43_v15, 0.0 }
   0xa   :  { %v93_v20 = vpack.c.bf16 %v45_v17, %v44_v16  ;;  %v98_v21 = vpack.c.bf16 %v47_v19, %v46_v18 }
   0xc   :  { %94 = vst [vmem:[%s143_s3] sm:$0xff] %v93_v20   ;;  %101 = vst [vmem:[%s143_s3 + $0x8] sm:$0xff] %v98_v21  }

// kernel: generator_celeba_forward.9
= control target key start
LH: loop header
LB: loop body
LE: loop exit
PB: predicated region body
PF: predicated region fallthrough
CT: control target
= control target key end

     0   :  { %s556_s15 = smov 0   ;;  %s558_s16 = smov 0   ;;  %s608_s0 = inlined_call_operand.vmem [shape: bf16[1,2,16], index: 0, kind: input, shape index: {}]   ;;  %s609_s1 = inlined_call_operand.vmem [shape: bf16[16,16,128], index: 1, kind: input, shape index: {}]   ;;  %s610_s2 = inlined_call_operand.vmem [shape: bf16[16,2,128], index: 2, kind: output, shape index: {0}]   ;;  %s611_s3 = inlined_call_operand.vmem [shape: f32[16,1,128], index: 3, kind: output, shape index: {1}]   ;;  %s612_s4 = inlined_call_operand.vmem [shape: f32[16,1,128], index: 4, kind: output, shape index: {2}]  }
   0x1   :  { %s560_s17 = smov 0  }
   0x2 LB: > { %s27_s18 = sadd.s32 1, %s523_s16  ;;  %p462_p0 = scmp.ge.s32.totalorder %s527_s17, 1  ;;  %s527_s17 = sphi %s560_s17, %s15_s17   ;;  %s523_s16 = sphi %s558_s16, %s614_s16   ;;  %s519_s15 = sphi %s556_s15, %s613_s15  }
   0x3   : > { %p29_p1 = scmp.ge.s32.totalorder %s27_s18, 16  ;;  %p189_p2 = scmp.lt.s32.totalorder %s527_s17, 17 }
   0x5   : > { %s616_s18 = smov (%p29_p1, %s27_s18), 0  ;;  %p190_p3 = pnand %p462_p0, %p189_p2 }
   0x6   : > { %p228_p4 = scmp.lt.s32.totalorder (!%p190_p3), %s519_s15, 15  ;;  %v529_v0 = vmov (!%p190_p3), 0.0   ;;  %vm530_vm0 = vmmov (!%p190_p3), 0   ;;  %v246_v2 = vld [vmem:[%s608_s0] sm:$0x1] (!%p190_p3)  ;;  %vm255_vm1 = vcmask (!%p190_p3), 130048  }
   0x7   : > { %193 = sbr.rel (%p190_p3) target bundleno = 252 (0xfc), region = 28  ;;  %472 = vmatprep.subr.bf16.mxu0 (!%p190_p3), %v529_v0  ;;  %474 = vmatprep.mubr.msk.bf16.mxu0 (!%p190_p3), %vm530_vm0, %v529_v0  ;;  %vm308_vm2 = vcmask (!%p190_p3), 1041408  }
   0xe   : > { %s618_s15 = smov (!%p228_p4, %s519_s15), 15 }
   0xf   : > { %s577_s21 = scalar_lea.vmem %s611_s3, %s618_s15  ;;  %s582_s24 = scalar_lea.vmem %s612_s4, %s618_s15 }
  0x10   : > { %305 = vst [vmem:[%s577_s21] sm:$0x1] %v529_v0  ;;  %306 = vst [vmem:[%s582_s24] sm:$0x1] %v529_v0  ;;  %s469_s25 = sshll.u32 %s618_s15, 3  ;;  %s238_s7 = scalar_lea.vmem %s610_s2, %s618_s15 }
  0x11   : > { %s232_s28 = scalar_lea.vmem %s609_s1, %s469_s25 }
  0x12   : > { %v504_v1 = vld [vmem:[%s232_s28] sm:$0xff]  }
  0x13   : > { %473 = vmatpush3.bf16.msra.mxu0 %v504_v1 }
  0x16   : > { %475 = vmatmul.mubr.msk.bf16.vlgmr.msra.gmra.mrb[0].mxu0 %vm255_vm1, %v246_v2 }
  0x17   : > { %v307_v20 = vld [vmem:[%s577_s21] sm:$0x1] }
  0x18   : > { %v318_v23 = vld [vmem:[%s582_s24] sm:$0x1] }
  0xe9   : > { %v293_v3 = vpop.f32.mrb[0].mxu0 }
  0xea   : > { %v299_v4 = vpack.c.bf16 %v293_v3, %v293_v3  ;;  %v309_v5 = vsel %vm308_vm2, %v293_v3, 0.0  ;;  %v319_v6 = vmul.f32 %v293_v3, %v293_v3  ;;  %v476_v7 = vpop.f32.mrb[1].mxu0 }
  0xeb   : > { %v310_v8 = vrot.slane %v309_v5, 4  ;;  %v296_v9 = vpop.f32.mrb[2].mxu0 }
  0xec   : > { %300 = vst [vmem:[%s238_s7] sm:$0x1] %v299_v4  ;;  %v320_v10 = vsel %vm308_vm2, %v319_v6, 0.0  ;;  %v477_v11 = vpop.f32.mrb[3].mxu0 }
  0xed   : > { %v311_v12 = vadd.f32 %v310_v8, %v309_v5  ;;  %v321_v13 = vrot.slane %v320_v10, 4 }
  0xef   : > { %v312_v14 = vrot.slane %v311_v12, 2  ;;  %v322_v15 = vadd.f32 %v321_v13, %v320_v10 }
  0xf1   : > { %v313_v16 = vadd.f32 %v312_v14, %v311_v12  ;;  %v323_v17 = vrot.slane %v322_v15, 2 }
  0xf3   : > { %v314_v18 = vrot.slane %v313_v16, 1  ;;  %v324_v19 = vadd.f32 %v323_v17, %v322_v15 }
  0xf5   : > { %v315_v21 = vadd.f32 %v314_v18, %v313_v16  ;;  %v325_v22 = vrot.slane %v324_v19, 1 }
  0xf7   : > { %v316_v24 = vadd.f32 %v315_v21, %v307_v20  ;;  %v326_v25 = vadd.f32 %v325_v22, %v324_v19 }
  0xf9   : > { %317 = vst [vmem:[%s577_s21] sm:$0x1] %v316_v24  ;;  %v327_v26 = vadd.f32 %v326_v25, %v318_v23 }
  0xfb   : > { %328 = vst [vmem:[%s582_s24] sm:$0x1] %v327_v26 }
  0xfc PF: > { %s15_s17 = sadd.s32 1, %s527_s17   ;;  %s613_s15 = smov %s523_s16 }
  0xfd   : > { %p12_p5 = scmp.ge.s32.totalorder %s15_s17, 18   ;;  %s614_s16 = smov %s616_s18 }
  0xff   :  { %14 = sbr.rel (!%p12_p5) target bundleno = 2 (0x2), region = 89 }

// kernel: generator_celeba_forward.12
= control target key start
LH: loop header
LB: loop body
LE: loop exit
PB: predicated region body
PF: predicated region fallthrough
CT: control target
= control target key end

     0   :  { %s422_s0 = inlined_call_operand.vmem [shape: bf16[128,128], index: 0, kind: input, shape index: {}]   ;;  %s423_s1 = inlined_call_operand.vmem [shape: f32[1,128], index: 1, kind: input, shape index: {}]   ;;  %s424_s2 = inlined_call_operand.vmem [shape: f32[1,128], index: 2, kind: input, shape index: {}]   ;;  %s425_s3 = inlined_call_operand.vmem [shape: bf16[128,128], index: 3, kind: output, shape index: {}]  }
   0x1   :  { %v227_v0 = vld [vmem:[%s422_s0] sm:$0xff]   ;;  %v298_v4 = vld [vmem:[%s422_s0 + $0x8] sm:$0xff]   ;;  %v299_v5 = vld [vmem:[%s422_s0 + $0x10] sm:$0xff]  }
   0x2   :  { %v338_v1 = vld [vmem:[%s423_s1] ss:$0 sm:$0xff]  ;;  %v228_v2 = vunpack.c.l.bf16 %v227_v0  ;;  %v229_v3 = vunpack.c.h.bf16 %v227_v0  ;;  %v300_v6 = vld [vmem:[%s422_s0 + $0x18] sm:$0xff]   ;;  %v232_v8 = vunpack.c.l.bf16 %v298_v4  ;;  %v233_v9 = vunpack.c.h.bf16 %v298_v4  ;;  %v302_v33 = vld [vmem:[%s422_s0 + $0x28] sm:$0xff]  }
   0x3   :  { %v352_v7 = vld [vmem:[%s424_s2] ss:$0 sm:$0xff]  ;;  %v236_v10 = vunpack.c.l.bf16 %v299_v5  ;;  %v237_v11 = vunpack.c.h.bf16 %v299_v5  ;;  %v240_v14 = vunpack.c.l.bf16 %v300_v6  ;;  %v241_v15 = vunpack.c.h.bf16 %v300_v6  ;;  %v303_v38 = vld [vmem:[%s422_s0 + $0x30] sm:$0xff]   ;;  %v304_v43 = vld [vmem:[%s422_s0 + $0x38] sm:$0xff]  }
   0x4   :  { %v53_v12 = vmul.f32 %v228_v2, %v338_v1  ;;  %v54_v13 = vmul.f32 %v229_v3, %v338_v1  ;;  %v55_v16 = vmul.f32 %v232_v8, %v338_v1  ;;  %v56_v17 = vmul.f32 %v233_v9, %v338_v1  ;;  %v301_v28 = vld [vmem:[%s422_s0 + $0x20] sm:$0xff]  }
   0x5   :  { %v57_v18 = vmul.f32 %v236_v10, %v338_v1  ;;  %v58_v19 = vmul.f32 %v237_v11, %v338_v1  ;;  %v59_v22 = vmul.f32 %v240_v14, %v338_v1  ;;  %v60_v23 = vmul.f32 %v241_v15, %v338_v1 }
   0x6   :  { %v76_v20 = vadd.f32 %v352_v7, %v53_v12  ;;  %v77_v21 = vadd.f32 %v352_v7, %v54_v13  ;;  %v78_v24 = vadd.f32 %v352_v7, %v55_v16  ;;  %v79_v25 = vadd.f32 %v352_v7, %v56_v17 }
   0x7   :  { %v80_v26 = vadd.f32 %v352_v7, %v57_v18  ;;  %v81_v27 = vadd.f32 %v352_v7, %v58_v19  ;;  %v82_v31 = vadd.f32 %v352_v7, %v59_v22  ;;  %v83_v32 = vadd.f32 %v352_v7, %v60_v23 }
   0x8   :  { %v92_v29 = vmax.f32 %v76_v20, 0.0  ;;  %v93_v30 = vmax.f32 %v77_v21, 0.0  ;;  %v94_v34 = vmax.f32 %v78_v24, 0.0  ;;  %v95_v35 = vmax.f32 %v79_v25, 0.0 }
   0x9   :  { %v96_v36 = vmax.f32 %v80_v26, 0.0  ;;  %v97_v37 = vmax.f32 %v81_v27, 0.0  ;;  %v98_v40 = vmax.f32 %v82_v31, 0.0  ;;  %v99_v41 = vmax.f32 %v83_v32, 0.0 }
   0xa   :  { %v261_v39 = vpack.c.bf16 %v93_v30, %v92_v29  ;;  %v244_v42 = vunpack.c.l.bf16 %v301_v28  ;;  %v266_v44 = vpack.c.bf16 %v95_v35, %v94_v34  ;;  %v245_v46 = vunpack.c.h.bf16 %v301_v28 }
   0xb   :  { %v271_v45 = vpack.c.bf16 %v97_v37, %v96_v36  ;;  %v248_v47 = vunpack.c.l.bf16 %v302_v33  ;;  %v276_v48 = vpack.c.bf16 %v99_v41, %v98_v40  ;;  %v249_v50 = vunpack.c.h.bf16 %v302_v33 }
   0xc   :  { %262 = vst [vmem:[%s425_s3] sm:$0xff] %v261_v39   ;;  %v61_v49 = vmul.f32 %v244_v42, %v338_v1  ;;  %v252_v51 = vunpack.c.l.bf16 %v303_v38  ;;  %305 = vst [vmem:[%s425_s3 + $0x8] sm:$0xff] %v266_v44   ;;  %v62_v52 = vmul.f32 %v245_v46, %v338_v1  ;;  %v253_v54 = vunpack.c.h.bf16 %v303_v38 }
   0xd   :  { %306 = vst [vmem:[%s425_s3 + $0x10] sm:$0xff] %v271_v45   ;;  %v63_v53 = vmul.f32 %v248_v47, %v338_v1  ;;  %v256_v55 = vunpack.c.l.bf16 %v304_v43  ;;  %307 = vst [vmem:[%s425_s3 + $0x18] sm:$0xff] %v276_v48   ;;  %v64_v57 = vmul.f32 %v249_v50, %v338_v1  ;;  %v257_v59 = vunpack.c.h.bf16 %v304_v43 }
   0xe   :  { %v84_v56 = vadd.f32 %v352_v7, %v61_v49  ;;  %v65_v58 = vmul.f32 %v252_v51, %v338_v1  ;;  %v85_v60 = vadd.f32 %v352_v7, %v62_v52  ;;  %v66_v62 = vmul.f32 %v253_v54, %v338_v1 }
   0xf   :  { %v86_v61 = vadd.f32 %v352_v7, %v63_v53  ;;  %v67_v63 = vmul.f32 %v256_v55, %v338_v1  ;;  %v87_v2 = vadd.f32 %v352_v7, %v64_v57  ;;  %v68_v4 = vmul.f32 %v257_v59, %v338_v1 }
  0x10   :  { %v100_v0 = vmax.f32 %v84_v56, 0.0  ;;  %v88_v3 = vadd.f32 %v352_v7, %v65_v58  ;;  %v101_v5 = vmax.f32 %v85_v60, 0.0  ;;  %v89_v8 = vadd.f32 %v352_v7, %v66_v62 }
  0x11   :  { %v102_v6 = vmax.f32 %v86_v61, 0.0  ;;  %v90_v9 = vadd.f32 %v352_v7, %v67_v63  ;;  %v103_v10 = vmax.f32 %v87_v2, 0.0  ;;  %v91_v12 = vadd.f32 %v352_v7, %v68_v4 }
  0x12   :  { %v104_v11 = vmax.f32 %v88_v3, 0.0  ;;  %v281_v13 = vpack.c.bf16 %v101_v5, %v100_v0  ;;  %v105_v14 = vmax.f32 %v89_v8, 0.0 }
  0x13   :  { %v106_v15 = vmax.f32 %v90_v9, 0.0  ;;  %v286_v16 = vpack.c.bf16 %v103_v10, %v102_v6  ;;  %v107_v17 = vmax.f32 %v91_v12, 0.0 }
  0x14   :  { %308 = vst [vmem:[%s425_s3 + $0x20] sm:$0xff] %v281_v13   ;;  %v291_v1 = vpack.c.bf16 %v105_v14, %v104_v11 }
  0x15   :  { %309 = vst [vmem:[%s425_s3 + $0x28] sm:$0xff] %v286_v16   ;;  %v296_v18 = vpack.c.bf16 %v107_v17, %v106_v15 }
  0x16   :  { %310 = vst [vmem:[%s425_s3 + $0x30] sm:$0xff] %v291_v1  }
  0x17   :  { %311 = vst [vmem:[%s425_s3 + $0x38] sm:$0xff] %v296_v18  }

// kernel: generator_celeba_forward.11
= control target key start
LH: loop header
LB: loop body
LE: loop exit
PB: predicated region body
PF: predicated region fallthrough
CT: control target
= control target key end

     0   :  { %s881_s15 = smov 0   ;;  %s883_s16 = smov 0   ;;  %s958_s0 = inlined_call_operand.vmem [shape: bf16[4,32,256], index: 0, kind: input, shape index: {}]   ;;  %s959_s1 = inlined_call_operand.vmem [shape: bf16[4,256,128], index: 1, kind: input, shape index: {}]   ;;  %s960_s2 = inlined_call_operand.vmem [shape: bf16[4,32,128], index: 2, kind: output, shape index: {0}]   ;;  %s961_s3 = inlined_call_operand.vmem [shape: f32[4,1,128], index: 3, kind: output, shape index: {1}]   ;;  %s962_s4 = inlined_call_operand.vmem [shape: f32[4,1,128], index: 4, kind: output, shape index: {2}]  }
   0x1   :  { %s885_s17 = smov 0  }
   0x2 LB: > { %s27_s18 = sadd.s32 1, %s849_s16  ;;  %p689_p0 = scmp.ge.s32.totalorder %s853_s17, 1  ;;  %s853_s17 = sphi %s885_s17, %s15_s17   ;;  %s849_s16 = sphi %s883_s16, %s964_s16   ;;  %s845_s15 = sphi %s881_s15, %s963_s15  }
   0x3   : > { %p29_p1 = scmp.ge.s32.totalorder %s27_s18, 4  ;;  %p199_p2 = scmp.lt.s32.totalorder %s853_s17, 5 }
   0x5   : > { %s966_s18 = smov (%p29_p1, %s27_s18), 0  ;;  %p200_p3 = pnand %p689_p0, %p199_p2 }
   0x6   : > { %p246_p4 = scmp.lt.s32.totalorder (!%p200_p3), %s845_s15, 3  ;;  %v855_v20 = vmov (!%p200_p3), 0.0  }
   0x7   : > { %203 = sbr.rel (%p200_p3) target bundleno = 290 (0x122), region = 28 }
   0xe   : > { %s968_s15 = smov (!%p246_p4, %s845_s15), 3 }
   0xf   : > { %s723_s19 = sshll.u32 %s968_s15, 7  ;;  %s722_s23 = sshll.u32 %s968_s15, 5 }
  0x10   : > { %s905_s22 = scalar_lea.vmem %s959_s1, %s723_s19  ;;  %s254_s26 = scalar_lea.vmem %s958_s0, %s722_s23 }
  0x11   : > { %v809_v0 = vld [vmem:[%s905_s22 + $0x40] sm:$0xff]   ;;  %v811_v2 = vld [vmem:[%s905_s22 + $0x48] sm:$0xff]   ;;  %v813_v4 = vld [vmem:[%s905_s22 + $0x50] sm:$0xff]   ;;  %s931_s29 = scalar_lea.vmem %s961_s3, %s968_s15  ;;  %s937_s6 = scalar_lea.vmem %s962_s4, %s968_s15 }
  0x12   : > { %v810_v1 = vld [vmem:[%s905_s22] sm:$0xff]   ;;  %740 = vmatprep.subr.bf16.mxu0 %v809_v0  ;;  %768 = vmatprep.subr.bf16.mxu1 %v809_v0  ;;  %v812_v3 = vld [vmem:[%s905_s22 + $0x8] sm:$0xff]   ;;  %v814_v5 = vld [vmem:[%s905_s22 + $0x10] sm:$0xff]   ;;  %503 = vst [vmem:[%s931_s29] sm:$0x1] %v855_v20  ;;  %s724_s7 = sshll.u32 %s968_s15, 4 }
  0x13   : > { %741 = vmatpush3.bf16.msra.mxu0 %v810_v1  ;;  %776 = vmatpush3.bf16.msra.mxu1 %v810_v1  ;;  %v815_v6 = vld [vmem:[%s905_s22 + $0x58] sm:$0xff]   ;;  %v817_v8 = vld [vmem:[%s905_s22 + $0x60] sm:$0xff]   ;;  %v819_v10 = vld [vmem:[%s905_s22 + $0x68] sm:$0xff]   ;;  %504 = vst [vmem:[%s937_s6] sm:$0x1] %v855_v20  ;;  %s269_s10 = scalar_lea.vmem %s960_s2, %s724_s7 }
  0x14   : > { %742 = vmatprep.subr.bf16.mxu0 %v811_v2  ;;  %769 = vmatprep.subr.bf16.mxu1 %v811_v2  ;;  %v816_v7 = vld [vmem:[%s905_s22 + $0x18] sm:$0xff]   ;;  %v818_v9 = vld [vmem:[%s905_s22 + $0x20] sm:$0xff]   ;;  %v820_v13 = vld [vmem:[%s905_s22 + $0x28] sm:$0xff]  }
  0x15   : > { %v827_v11 = vld [vmem:[%s254_s26 + $0x4] ss:$8 sps:$4 sm:$0xff]   ;;  %v830_v12 = vld [vmem:[%s254_s26 + $0x14] ss:$8 sps:$4 sm:$0xff]   ;;  %v825_v18 = vld [vmem:[%s254_s26] ss:$8 sps:$4 sm:$0xff]  }
  0x16   : > { %v821_v14 = vld [vmem:[%s905_s22 + $0x70] sm:$0xff]   ;;  %462 = vmatprep.mubr.bf16.mxu0 %v827_v11  ;;  %470 = vmatprep.mubr.bf16.mxu1 %v830_v12  ;;  %v823_v16 = vld [vmem:[%s905_s22 + $0x78] sm:$0xff]  }
  0x17   : > { %743 = vmatpush3.bf16.msra.mxu0 %v812_v3  ;;  %777 = vmatpush3.bf16.msra.mxu1 %v812_v3  ;;  %v822_v15 = vld [vmem:[%s905_s22 + $0x30] sm:$0xff]   ;;  %v824_v17 = vld [vmem:[%s905_s22 + $0x38] sm:$0xff]  }
  0x18   : > { %744 = vmatprep.subr.bf16.mxu0 %v813_v4  ;;  %770 = vmatprep.subr.bf16.mxu1 %v813_v4  ;;  %v828_v19 = vld [vmem:[%s254_s26 + $0x10] ss:$8 sps:$4 sm:$0xff]  }
  0x19   : > { %v505_v54 = vld [vmem:[%s931_s29] sm:$0x1] }
  0x1a   : > { %v517_v57 = vld [vmem:[%s937_s6] sm:$0x1] }
  0x1b   : > { %745 = vmatpush3.bf16.msra.mxu0 %v814_v5  ;;  %778 = vmatpush3.bf16.msra.mxu1 %v814_v5 }
  0x1c   : > { %746 = vmatprep.subr.bf16.mxu0 %v815_v6  ;;  %771 = vmatprep.subr.bf16.mxu1 %v815_v6 }
  0x1f   : > { %747 = vmatpush3.bf16.msra.mxu0 %v816_v7  ;;  %779 = vmatpush3.bf16.msra.mxu1 %v816_v7 }
  0x20   : > { %748 = vmatprep.subr.bf16.mxu0 %v817_v8  ;;  %772 = vmatprep.subr.bf16.mxu1 %v817_v8 }
  0x23   : > { %749 = vmatpush3.bf16.msra.mxu0 %v818_v9  ;;  %780 = vmatpush3.bf16.msra.mxu1 %v818_v9 }
  0x24   : > { %750 = vmatprep.subr.bf16.mxu0 %v819_v10  ;;  %773 = vmatprep.subr.bf16.mxu1 %v819_v10 }
  0x27   : > { %751 = vmatpush3.bf16.msra.mxu0 %v820_v13  ;;  %781 = vmatpush3.bf16.msra.mxu1 %v820_v13 }
  0x28   : > { %752 = vmatprep.subr.bf16.mxu0 %v821_v14  ;;  %774 = vmatprep.subr.bf16.mxu1 %v821_v14 }
  0x2b   : > { %753 = vmatpush3.bf16.msra.mxu0 %v822_v15  ;;  %782 = vmatpush3.bf16.msra.mxu1 %v822_v15 }
  0x2c   : > { %754 = vmatprep.subr.bf16.mxu0 %v823_v16  ;;  %775 = vmatprep.subr.bf16.mxu1 %v823_v16 }
  0x2f   : > { %755 = vmatpush3.bf16.msra.mxu0 %v824_v17  ;;  %783 = vmatpush3.bf16.msra.mxu1 %v824_v17 }
  0x32   : > { %463 = vmatmul.mubr.bf16.vlgmr.msra.gmra.mrb[0].mxu0 %v825_v18  ;;  %471 = vmatmul.mubr.bf16.vlgmr.msra.gmra.mrb[0].mxu1 %v828_v19 }
 0x105   : > { %v756_v21 = vpop.f32.mrb[0].mxu0  ;;  %v762_v22 = vpop.f32.mrb[0].mxu1 }
 0x106   : > { %v757_v23 = vpop.f32.mrb[1].mxu0  ;;  %v763_v24 = vpop.f32.mrb[1].mxu1 }
 0x107   : > { %v758_v25 = vadd.f32 %v757_v23, %v756_v21  ;;  %v759_v26 = vpop.f32.mrb[2].mxu0  ;;  %v764_v27 = vadd.f32 %v763_v24, %v762_v22  ;;  %v765_v28 = vpop.f32.mrb[2].mxu1 }
 0x108   : > { %v760_v29 = vpop.f32.mrb[3].mxu0  ;;  %v766_v30 = vpop.f32.mrb[3].mxu1 }
 0x109   : > { %v761_v31 = vadd.f32 %v760_v29, %v759_v26  ;;  %v767_v32 = vadd.f32 %v766_v30, %v765_v28  ;;  %v518_v33 = vmul.f32 %v758_v25, %v758_v25  ;;  %v520_v34 = vmul.f32 %v764_v27, %v764_v27 }
 0x10b   : > { %v732_v35 = vpack.c.bf16 %v761_v31, %v758_v25  ;;  %v506_v36 = vadd.f32 %v761_v31, %v758_v25  ;;  %v519_v37 = vmul.f32 %v761_v31, %v761_v31  ;;  %v737_v38 = vpack.c.bf16 %v767_v32, %v764_v27 }
 0x10c   : > { %v521_v42 = vmul.f32 %v767_v32, %v767_v32 }
 0x10d   : > { %733 = vst [vmem:[%s269_s10] sm:$0xff] %v732_v35   ;;  %v522_v39 = vadd.f32 %v519_v37, %v518_v33  ;;  %739 = vst [vmem:[%s269_s10 + $0x8] sm:$0xff] %v737_v38   ;;  %v507_v40 = vadd.f32 %v764_v27, %v506_v36 }
 0x10f   : > { %v508_v41 = vadd.f32 %v767_v32, %v507_v40  ;;  %v523_v43 = vadd.f32 %v522_v39, %v520_v34 }
 0x111   : > { %v509_v44 = vrot.slane %v508_v41, 4  ;;  %v524_v45 = vadd.f32 %v523_v43, %v521_v42 }
 0x113   : > { %v510_v46 = vadd.f32 %v509_v44, %v508_v41  ;;  %v525_v47 = vrot.slane %v524_v45, 4 }
 0x115   : > { %v511_v48 = vrot.slane %v510_v46, 2  ;;  %v526_v49 = vadd.f32 %v525_v47, %v524_v45 }
 0x117   : > { %v512_v50 = vadd.f32 %v511_v48, %v510_v46  ;;  %v527_v51 = vrot.slane %v526_v49, 2 }
 0x119   : > { %v513_v52 = vrot.slane %v512_v50, 1  ;;  %v528_v53 = vadd.f32 %v527_v51, %v526_v49 }
 0x11b   : > { %v514_v55 = vadd.f32 %v513_v52, %v512_v50  ;;  %v529_v56 = vrot.slane %v528_v53, 1 }
 0x11d   : > { %v515_v58 = vadd.f32 %v514_v55, %v505_v54  ;;  %v530_v59 = vadd.f32 %v529_v56, %v528_v53 }
 0x11f   : > { %516 = vst [vmem:[%s931_s29] sm:$0x1] %v515_v58  ;;  %v531_v60 = vadd.f32 %v530_v59, %v517_v57 }
 0x121   : > { %532 = vst [vmem:[%s937_s6] sm:$0x1] %v531_v60 }
 0x122 PF: > { %s15_s17 = sadd.s32 1, %s853_s17   ;;  %s963_s15 = smov %s849_s16 }
 0x123   : > { %p12_p5 = scmp.ge.s32.totalorder %s15_s17, 6   ;;  %s964_s16 = smov %s966_s18 }
 0x125   :  { %14 = sbr.rel (!%p12_p5) target bundleno = 2 (0x2), region = 89 }

// kernel: generator_celeba_forward.13
= control target key start
LH: loop header
LB: loop body
LE: loop exit
PB: predicated region body
PF: predicated region fallthrough
CT: control target
= control target key end

     0   :  { %s1065_s15 = smov 0   ;;  %s1067_s16 = smov 0   ;;  %s1157_s0 = inlined_call_operand.vmem [shape: bf16[4,128,128], index: 0, kind: input, shape index: {}]   ;;  %s1158_s1 = inlined_call_operand.vmem [shape: bf16[4,128,128], index: 1, kind: input, shape index: {}]   ;;  %s1159_s2 = inlined_call_operand.vmem [shape: bf16[4,128,128], index: 2, kind: output, shape index: {0}]   ;;  %s1160_s3 = inlined_call_operand.vmem [shape: f32[4,1,128], index: 3, kind: output, shape index: {1}]   ;;  %s1161_s4 = inlined_call_operand.vmem [shape: f32[4,1,128], index: 4, kind: output, shape index: {2}]  }
   0x1   :  { %s1069_s17 = smov 0  }
   0x2 LB: > { %s27_s18 = sadd.s32 1, %s1033_s16  ;;  %p803_p0 = scmp.ge.s32.totalorder %s1037_s17, 1  ;;  %s1037_s17 = sphi %s1069_s17, %s15_s17   ;;  %s1033_s16 = sphi %s1067_s16, %s1163_s16   ;;  %s1029_s15 = sphi %s1065_s15, %s1162_s15  }
   0x3   : > { %p29_p1 = scmp.ge.s32.totalorder %s27_s18, 4  ;;  %p198_p2 = scmp.lt.s32.totalorder %s1037_s17, 5 }
   0x5   : > { %s1165_s18 = smov (%p29_p1, %s27_s18), 0  ;;  %p199_p3 = pnand %p803_p0, %p198_p2 }
   0x6   : > { %p244_p4 = scmp.lt.s32.totalorder (!%p199_p3), %s1029_s15, 3  ;;  %v1039_v16 = vmov (!%p199_p3), 0.0  }
   0x7   : > { %202 = sbr.rel (%p199_p3) target bundleno = 312 (0x138), region = 28 }
   0xe   : > { %s1167_s15 = smov (!%p244_p4, %s1029_s15), 3 }
   0xf   : > { %s1086_s19 = sshll.u32 %s1167_s15, 6  ;;  %s1120_s28 = scalar_lea.vmem %s1160_s3, %s1167_s15 }
  0x10   : > { %s1092_s22 = scalar_lea.vmem %s1158_s1, %s1086_s19  ;;  %s1101_s25 = scalar_lea.vmem %s1157_s0, %s1086_s19  ;;  %584 = vst [vmem:[%s1120_s28] sm:$0x1] %v1039_v16 }
  0x11   : > { %v999_v0 = vld [vmem:[%s1092_s22] sm:$0xff]   ;;  %v1000_v1 = vld [vmem:[%s1092_s22 + $0x8] sm:$0xff]   ;;  %v1001_v2 = vld [vmem:[%s1092_s22 + $0x10] sm:$0xff]   ;;  %s1126_s5 = scalar_lea.vmem %s1161_s4, %s1167_s15  ;;  %s1134_s8 = scalar_lea.vmem %s1159_s2, %s1086_s19 }
  0x12   : > { %926 = vmatprep.subr.bf16.mxu0 %v999_v0  ;;  %958 = vmatprep.subr.bf16.mxu1 %v999_v0  ;;  %v1002_v3 = vld [vmem:[%s1092_s22 + $0x18] sm:$0xff]   ;;  %v1007_v4 = vld [vmem:[%s1101_s25] sm:$0xff]   ;;  %v1004_v7 = vld [vmem:[%s1092_s22 + $0x28] sm:$0xff]   ;;  %585 = vst [vmem:[%s1126_s5] sm:$0x1] %v1039_v16 }
  0x13   : > { %927 = vmatpush3.bf16.msra.mxu0 %v999_v0  ;;  %966 = vmatpush3.bf16.msra.mxu1 %v999_v0  ;;  %v1003_v5 = vld [vmem:[%s1092_s22 + $0x20] sm:$0xff]   ;;  %v1005_v8 = vld [vmem:[%s1092_s22 + $0x30] sm:$0xff]   ;;  %v1006_v9 = vld [vmem:[%s1092_s22 + $0x38] sm:$0xff]  }
  0x14   : > { %928 = vmatprep.subr.bf16.mxu0 %v1000_v1  ;;  %959 = vmatprep.subr.bf16.mxu1 %v1000_v1  ;;  %v1011_v6 = vld [vmem:[%s1101_s25 + $0x20] sm:$0xff]   ;;  %v1008_v10 = vld [vmem:[%s1101_s25 + $0x8] sm:$0xff]   ;;  %v1009_v12 = vld [vmem:[%s1101_s25 + $0x10] sm:$0xff]  }
  0x15   : > { %942 = vmatprep.mubr.bf16.mxu0 %v1007_v4  ;;  %950 = vmatprep.mubr.bf16.mxu1 %v1011_v6  ;;  %v1012_v11 = vld [vmem:[%s1101_s25 + $0x28] sm:$0xff]   ;;  %v1013_v13 = vld [vmem:[%s1101_s25 + $0x30] sm:$0xff]   ;;  %v1010_v14 = vld [vmem:[%s1101_s25 + $0x18] sm:$0xff]  }
  0x16   : > { %v1014_v15 = vld [vmem:[%s1101_s25 + $0x38] sm:$0xff]  }
  0x17   : > { %929 = vmatpush3.bf16.msra.mxu0 %v1000_v1  ;;  %967 = vmatpush3.bf16.msra.mxu1 %v1000_v1 }
  0x18   : > { %930 = vmatprep.subr.bf16.mxu0 %v1001_v2  ;;  %960 = vmatprep.subr.bf16.mxu1 %v1001_v2 }
  0x1b   : > { %931 = vmatpush3.bf16.msra.mxu0 %v1001_v2  ;;  %968 = vmatpush3.bf16.msra.mxu1 %v1001_v2 }
  0x1c   : > { %932 = vmatprep.subr.bf16.mxu0 %v1002_v3  ;;  %961 = vmatprep.subr.bf16.mxu1 %v1002_v3 }
  0x1f   : > { %933 = vmatpush3.bf16.msra.mxu0 %v1002_v3  ;;  %969 = vmatpush3.bf16.msra.mxu1 %v1002_v3 }
  0x20   : > { %934 = vmatprep.subr.bf16.mxu0 %v1003_v5  ;;  %962 = vmatprep.subr.bf16.mxu1 %v1003_v5 }
  0x23   : > { %935 = vmatpush3.bf16.msra.mxu0 %v1003_v5  ;;  %970 = vmatpush3.bf16.msra.mxu1 %v1003_v5 }
  0x24   : > { %936 = vmatprep.subr.bf16.mxu0 %v1004_v7  ;;  %963 = vmatprep.subr.bf16.mxu1 %v1004_v7 }
  0x27   : > { %937 = vmatpush3.bf16.msra.mxu0 %v1004_v7  ;;  %971 = vmatpush3.bf16.msra.mxu1 %v1004_v7 }
  0x28   : > { %938 = vmatprep.subr.bf16.mxu0 %v1005_v8  ;;  %964 = vmatprep.subr.bf16.mxu1 %v1005_v8 }
  0x2b   : > { %939 = vmatpush3.bf16.msra.mxu0 %v1005_v8  ;;  %972 = vmatpush3.bf16.msra.mxu1 %v1005_v8 }
  0x2c   : > { %940 = vmatprep.subr.bf16.mxu0 %v1006_v9  ;;  %965 = vmatprep.subr.bf16.mxu1 %v1006_v9 }
  0x2f   : > { %941 = vmatpush3.bf16.msra.mxu0 %v1006_v9  ;;  %973 = vmatpush3.bf16.msra.mxu1 %v1006_v9 }
  0x32   : > { %943 = vmatmul.mubr.bf16.vlgmr.msra.gmra.mrb[0].mxu0 %v1008_v10  ;;  %951 = vmatmul.mubr.bf16.vlgmr.msra.gmra.mrb[0].mxu1 %v1012_v11 }
  0x33   : > { %946 = vmatprep.mubr.bf16.mxu0 %v1009_v12  ;;  %954 = vmatprep.mubr.bf16.mxu1 %v1013_v13 }
  0x3a   : > { %947 = vmatmul.mubr.bf16.gmra.mrb[4].mxu0 %v1010_v14  ;;  %955 = vmatmul.mubr.bf16.gmra.mrb[4].mxu1 %v1014_v15 }
 0x105   : > { %v944_v17 = vpop.f32.mrb[0].mxu0  ;;  %v952_v18 = vpop.f32.mrb[0].mxu1 }
 0x106   : > { %v437_v19 = vpop.f32.mrb[1].mxu0  ;;  %v469_v20 = vpop.f32.mrb[1].mxu1  ;;  %v613_v32 = vmul.f32 %v944_v17, %v944_v17  ;;  %v621_v4 = vmul.f32 %v952_v18, %v952_v18 }
 0x107   : > { %v945_v21 = vpop.f32.mrb[2].mxu0  ;;  %v953_v22 = vpop.f32.mrb[2].mxu1  ;;  %v611_v23 = vmul.f32 %v437_v19, %v437_v19  ;;  %v619_v62 = vmul.f32 %v469_v20, %v469_v20 }
 0x108   : > { %v871_v24 = vpack.c.bf16 %v945_v21, %v944_v17  ;;  %v440_v25 = vpop.f32.mrb[3].mxu0  ;;  %v891_v26 = vpack.c.bf16 %v953_v22, %v952_v18  ;;  %v472_v27 = vpop.f32.mrb[3].mxu1  ;;  %v614_v35 = vmul.f32 %v945_v21, %v945_v21  ;;  %v622_v7 = vmul.f32 %v953_v22, %v953_v22 }
 0x109   : > { %v866_v28 = vpack.c.bf16 %v440_v25, %v437_v19  ;;  %v587_v29 = vadd.f32 %v440_v25, %v437_v19  ;;  %v612_v30 = vmul.f32 %v440_v25, %v440_v25  ;;  %v886_v31 = vpack.c.bf16 %v472_v27, %v469_v20 }
 0x10a   : > { %903 = vst [vmem:[%s1134_s8 + $0x8] sm:$0xff] %v871_v24   ;;  %907 = vst [vmem:[%s1134_s8 + $0x28] sm:$0xff] %v891_v26   ;;  %v620_v3 = vmul.f32 %v472_v27, %v472_v27 }
 0x10b   : > { %867 = vst [vmem:[%s1134_s8] sm:$0xff] %v866_v28   ;;  %v588_v33 = vadd.f32 %v944_v17, %v587_v29  ;;  %v627_v34 = vadd.f32 %v612_v30, %v611_v23  ;;  %906 = vst [vmem:[%s1134_s8 + $0x20] sm:$0xff] %v886_v31  }
 0x10d   : > { %v628_v36 = vadd.f32 %v627_v34, %v613_v32  ;;  %v948_v37 = vpop.f32.mrb[4].mxu0  ;;  %v589_v38 = vadd.f32 %v945_v21, %v588_v33  ;;  %v956_v39 = vpop.f32.mrb[4].mxu1  ;;  %v586_v32 = vld [vmem:[%s1120_s28] sm:$0x1] }
 0x10e   : > { %v453_v40 = vpop.f32.mrb[5].mxu0  ;;  %v485_v41 = vpop.f32.mrb[5].mxu1  ;;  %v617_v56 = vmul.f32 %v948_v37, %v948_v37  ;;  %v625_v16 = vmul.f32 %v956_v39, %v956_v39 }
 0x10f   : > { %v590_v42 = vadd.f32 %v589_v38, %v453_v40  ;;  %v615_v43 = vmul.f32 %v453_v40, %v453_v40  ;;  %v629_v44 = vadd.f32 %v628_v36, %v614_v35  ;;  %v949_v45 = vpop.f32.mrb[6].mxu0  ;;  %v957_v46 = vpop.f32.mrb[6].mxu1  ;;  %v623_v10 = vmul.f32 %v485_v41, %v485_v41  ;;  %v610_v35 = vld [vmem:[%s1126_s5] sm:$0x1] }
 0x110   : > { %v881_v47 = vpack.c.bf16 %v949_v45, %v948_v37  ;;  %v456_v48 = vpop.f32.mrb[7].mxu0  ;;  %v901_v49 = vpack.c.bf16 %v957_v46, %v956_v39  ;;  %v488_v50 = vpop.f32.mrb[7].mxu1  ;;  %v618_v59 = vmul.f32 %v949_v45, %v949_v45 }
 0x111   : > { %v630_v51 = vadd.f32 %v629_v44, %v615_v43  ;;  %v876_v52 = vpack.c.bf16 %v456_v48, %v453_v40  ;;  %v591_v53 = vadd.f32 %v590_v42, %v456_v48  ;;  %v616_v54 = vmul.f32 %v456_v48, %v456_v48 }
 0x112   : > { %905 = vst [vmem:[%s1134_s8 + $0x18] sm:$0xff] %v881_v47   ;;  %909 = vst [vmem:[%s1134_s8 + $0x38] sm:$0xff] %v901_v49   ;;  %v896_v55 = vpack.c.bf16 %v488_v50, %v485_v41  ;;  %v624_v15 = vmul.f32 %v488_v50, %v488_v50 }
 0x113   : > { %904 = vst [vmem:[%s1134_s8 + $0x10] sm:$0xff] %v876_v52   ;;  %v592_v57 = vadd.f32 %v948_v37, %v591_v53  ;;  %v631_v58 = vadd.f32 %v630_v51, %v616_v54 }
 0x114   : > { %908 = vst [vmem:[%s1134_s8 + $0x30] sm:$0xff] %v896_v55  }
 0x115   : > { %v632_v60 = vadd.f32 %v631_v58, %v617_v56  ;;  %v593_v61 = vadd.f32 %v949_v45, %v592_v57 }
 0x117   : > { %v594_v63 = vadd.f32 %v593_v61, %v469_v20  ;;  %v633_v0 = vadd.f32 %v632_v60, %v618_v59  ;;  %v626_v20 = vmul.f32 %v957_v46, %v957_v46 }
 0x119   : > { %v634_v1 = vadd.f32 %v633_v0, %v619_v62  ;;  %v595_v2 = vadd.f32 %v594_v63, %v472_v27 }
 0x11b   : > { %v596_v5 = vadd.f32 %v952_v18, %v595_v2  ;;  %v635_v6 = vadd.f32 %v634_v1, %v620_v3 }
 0x11d   : > { %v636_v8 = vadd.f32 %v635_v6, %v621_v4  ;;  %v597_v9 = vadd.f32 %v953_v22, %v596_v5 }
 0x11f   : > { %v598_v11 = vadd.f32 %v597_v9, %v485_v41  ;;  %v637_v12 = vadd.f32 %v636_v8, %v622_v7 }
 0x121   : > { %v638_v13 = vadd.f32 %v637_v12, %v623_v10  ;;  %v599_v14 = vadd.f32 %v598_v11, %v488_v50 }
 0x123   : > { %v600_v17 = vadd.f32 %v956_v39, %v599_v14  ;;  %v639_v19 = vadd.f32 %v638_v13, %v624_v15 }
 0x125   : > { %v601_v21 = vadd.f32 %v957_v46, %v600_v17  ;;  %v640_v23 = vadd.f32 %v639_v19, %v625_v16 }
 0x127   : > { %v602_v24 = vrot.slane %v601_v21, 4  ;;  %v641_v18 = vadd.f32 %v640_v23, %v626_v20 }
 0x129   : > { %v603_v25 = vadd.f32 %v602_v24, %v601_v21  ;;  %v642_v22 = vrot.slane %v641_v18, 4 }
 0x12b   : > { %v604_v26 = vrot.slane %v603_v25, 2  ;;  %v643_v27 = vadd.f32 %v642_v22, %v641_v18 }
 0x12d   : > { %v605_v28 = vadd.f32 %v604_v26, %v603_v25  ;;  %v644_v29 = vrot.slane %v643_v27, 2 }
 0x12f   : > { %v606_v30 = vrot.slane %v605_v28, 1  ;;  %v645_v31 = vadd.f32 %v644_v29, %v643_v27 }
 0x131   : > { %v607_v33 = vadd.f32 %v606_v30, %v605_v28  ;;  %v646_v34 = vrot.slane %v645_v31, 1 }
 0x133   : > { %v608_v36 = vadd.f32 %v607_v33, %v586_v32  ;;  %v647_v37 = vadd.f32 %v646_v34, %v645_v31 }
 0x135   : > { %609 = vst [vmem:[%s1120_s28] sm:$0x1] %v608_v36  ;;  %v648_v38 = vadd.f32 %v647_v37, %v610_v35 }
 0x137   : > { %649 = vst [vmem:[%s1126_s5] sm:$0x1] %v648_v38 }
 0x138 PF: > { %s15_s17 = sadd.s32 1, %s1037_s17   ;;  %s1162_s15 = smov %s1033_s16 }
 0x139   : > { %p12_p5 = scmp.ge.s32.totalorder %s15_s17, 6   ;;  %s1163_s16 = smov %s1165_s18 }
 0x13b   :  { %14 = sbr.rel (!%p12_p5) target bundleno = 2 (0x2), region = 89 }

// kernel: generator_celeba_forward.14
= control target key start
LH: loop header
LB: loop body
LE: loop exit
PB: predicated region body
PF: predicated region fallthrough
CT: control target
= control target key end

     0   :  { %s1502_s0 = inlined_call_operand.vmem [shape: bf16[512,128], index: 0, kind: input, shape index: {}]   ;;  %s1503_s1 = inlined_call_operand.vmem [shape: f32[1,128], index: 1, kind: input, shape index: {}]   ;;  %s1504_s2 = inlined_call_operand.vmem [shape: f32[1,128], index: 2, kind: input, shape index: {}]   ;;  %s1505_s3 = inlined_call_operand.vmem [shape: bf16[512,128], index: 3, kind: output, shape index: {}]  }
   0x1   :  { %v803_v0 = vld [vmem:[%s1502_s0] sm:$0xff]   ;;  %v1090_v4 = vld [vmem:[%s1502_s0 + $0x8] sm:$0xff]   ;;  %v1091_v5 = vld [vmem:[%s1502_s0 + $0x10] sm:$0xff]  }
   0x2   :  { %v1178_v1 = vld [vmem:[%s1503_s1] ss:$0 sm:$0xff]  ;;  %v804_v2 = vunpack.c.l.bf16 %v803_v0  ;;  %v805_v3 = vunpack.c.h.bf16 %v803_v0  ;;  %v1092_v6 = vld [vmem:[%s1502_s0 + $0x18] sm:$0xff]   ;;  %v808_v8 = vunpack.c.l.bf16 %v1090_v4  ;;  %v809_v9 = vunpack.c.h.bf16 %v1090_v4  ;;  %v1094_v33 = vld [vmem:[%s1502_s0 + $0x28] sm:$0xff]  }
   0x3   :  { %v1192_v7 = vld [vmem:[%s1504_s2] ss:$0 sm:$0xff]  ;;  %v812_v10 = vunpack.c.l.bf16 %v1091_v5  ;;  %v813_v11 = vunpack.c.h.bf16 %v1091_v5  ;;  %v816_v14 = vunpack.c.l.bf16 %v1092_v6  ;;  %v817_v15 = vunpack.c.h.bf16 %v1092_v6  ;;  %v1095_v38 = vld [vmem:[%s1502_s0 + $0x30] sm:$0xff]   ;;  %v1096_v43 = vld [vmem:[%s1502_s0 + $0x38] sm:$0xff]  }
   0x4   :  { %v149_v12 = vmul.f32 %v804_v2, %v1178_v1  ;;  %v150_v13 = vmul.f32 %v805_v3, %v1178_v1  ;;  %v151_v16 = vmul.f32 %v808_v8, %v1178_v1  ;;  %v152_v17 = vmul.f32 %v809_v9, %v1178_v1  ;;  %v1093_v28 = vld [vmem:[%s1502_s0 + $0x20] sm:$0xff]  }
   0x5   :  { %v153_v18 = vmul.f32 %v812_v10, %v1178_v1  ;;  %v154_v19 = vmul.f32 %v813_v11, %v1178_v1  ;;  %v155_v22 = vmul.f32 %v816_v14, %v1178_v1  ;;  %v156_v23 = vmul.f32 %v817_v15, %v1178_v1  ;;  %v1097_v0 = vld [vmem:[%s1502_s0 + $0x40] sm:$0xff]   ;;  %v1098_v11 = vld [vmem:[%s1502_s0 + $0x48] sm:$0xff]  }
   0x6   :  { %v220_v20 = vadd.f32 %v1192_v7, %v149_v12  ;;  %v221_v21 = vadd.f32 %v1192_v7, %v150_v13  ;;  %v222_v24 = vadd.f32 %v1192_v7, %v151_v16  ;;  %v223_v25 = vadd.f32 %v1192_v7, %v152_v17  ;;  %v1099_v16 = vld [vmem:[%s1502_s0 + $0x50] sm:$0xff]  }
   0x7   :  { %v224_v26 = vadd.f32 %v1192_v7, %v153_v18  ;;  %v225_v27 = vadd.f32 %v1192_v7, %v154_v19  ;;  %v226_v31 = vadd.f32 %v1192_v7, %v155_v22  ;;  %v227_v32 = vadd.f32 %v1192_v7, %v156_v23 }
   0x8   :  { %v284_v29 = vmax.f32 %v220_v20, 0.0  ;;  %v285_v30 = vmax.f32 %v221_v21, 0.0  ;;  %v286_v34 = vmax.f32 %v222_v24, 0.0  ;;  %v287_v35 = vmax.f32 %v223_v25, 0.0  ;;  %v1100_v25 = vld [vmem:[%s1502_s0 + $0x58] sm:$0xff]  }
   0x9   :  { %v288_v36 = vmax.f32 %v224_v26, 0.0  ;;  %v289_v37 = vmax.f32 %v225_v27, 0.0  ;;  %v290_v40 = vmax.f32 %v226_v31, 0.0  ;;  %v291_v41 = vmax.f32 %v227_v32, 0.0 }
   0xa   :  { %v933_v39 = vpack.c.bf16 %v285_v30, %v284_v29  ;;  %v820_v42 = vunpack.c.l.bf16 %v1093_v28  ;;  %v938_v44 = vpack.c.bf16 %v287_v35, %v286_v34  ;;  %v821_v46 = vunpack.c.h.bf16 %v1093_v28 }
   0xb   :  { %v943_v45 = vpack.c.bf16 %v289_v37, %v288_v36  ;;  %v824_v47 = vunpack.c.l.bf16 %v1094_v33  ;;  %v948_v48 = vpack.c.bf16 %v291_v41, %v290_v40  ;;  %v825_v50 = vunpack.c.h.bf16 %v1094_v33 }
   0xc   :  { %934 = vst [vmem:[%s1505_s3] sm:$0xff] %v933_v39   ;;  %v157_v49 = vmul.f32 %v820_v42, %v1178_v1  ;;  %v828_v51 = vunpack.c.l.bf16 %v1095_v38  ;;  %1121 = vst [vmem:[%s1505_s3 + $0x8] sm:$0xff] %v938_v44   ;;  %v158_v52 = vmul.f32 %v821_v46, %v1178_v1  ;;  %v829_v54 = vunpack.c.h.bf16 %v1095_v38  ;;  %v1101_v38 = vld [vmem:[%s1502_s0 + $0x60] sm:$0xff]  }
   0xd   :  { %1122 = vst [vmem:[%s1505_s3 + $0x10] sm:$0xff] %v943_v45   ;;  %v159_v53 = vmul.f32 %v824_v47, %v1178_v1  ;;  %v832_v55 = vunpack.c.l.bf16 %v1096_v43  ;;  %1123 = vst [vmem:[%s1505_s3 + $0x18] sm:$0xff] %v948_v48   ;;  %v160_v57 = vmul.f32 %v825_v50, %v1178_v1  ;;  %v833_v59 = vunpack.c.h.bf16 %v1096_v43 }
   0xe   :  { %v228_v56 = vadd.f32 %v1192_v7, %v157_v49  ;;  %v161_v58 = vmul.f32 %v828_v51, %v1178_v1  ;;  %v229_v60 = vadd.f32 %v1192_v7, %v158_v52  ;;  %v162_v62 = vmul.f32 %v829_v54, %v1178_v1  ;;  %v1102_v51 = vld [vmem:[%s1502_s0 + $0x68] sm:$0xff]  }
   0xf   :  { %v230_v61 = vadd.f32 %v1192_v7, %v159_v53  ;;  %v163_v63 = vmul.f32 %v832_v55, %v1178_v1  ;;  %v231_v3 = vadd.f32 %v1192_v7, %v160_v57  ;;  %v164_v5 = vmul.f32 %v833_v59, %v1178_v1 }
  0x10   :  { %v292_v2 = vmax.f32 %v228_v56, 0.0  ;;  %v232_v4 = vadd.f32 %v1192_v7, %v161_v58  ;;  %v293_v6 = vmax.f32 %v229_v60, 0.0  ;;  %v233_v9 = vadd.f32 %v1192_v7, %v162_v62  ;;  %v1103_v60 = vld [vmem:[%s1502_s0 + $0x70] sm:$0xff]  }
  0x11   :  { %v294_v8 = vmax.f32 %v230_v61, 0.0  ;;  %v234_v10 = vadd.f32 %v1192_v7, %v163_v63  ;;  %v295_v12 = vmax.f32 %v231_v3, 0.0  ;;  %v235_v14 = vadd.f32 %v1192_v7, %v164_v5 }
  0x12   :  { %v296_v13 = vmax.f32 %v232_v4, 0.0  ;;  %v836_v15 = vunpack.c.l.bf16 %v1097_v0  ;;  %v953_v17 = vpack.c.bf16 %v293_v6, %v292_v2  ;;  %v297_v18 = vmax.f32 %v233_v9, 0.0  ;;  %v1104_v2 = vld [vmem:[%s1502_s0 + $0x78] sm:$0xff]  }
  0x13   :  { %v298_v19 = vmax.f32 %v234_v10, 0.0  ;;  %v837_v20 = vunpack.c.h.bf16 %v1097_v0  ;;  %v958_v21 = vpack.c.bf16 %v295_v12, %v294_v8  ;;  %v299_v22 = vmax.f32 %v235_v14, 0.0  ;;  %v1105_v12 = vld [vmem:[%s1502_s0 + $0x80] sm:$0xff]  }
  0x14   :  { %v165_v23 = vmul.f32 %v836_v15, %v1178_v1  ;;  %v840_v24 = vunpack.c.l.bf16 %v1098_v11  ;;  %1124 = vst [vmem:[%s1505_s3 + $0x20] sm:$0xff] %v953_v17   ;;  %v963_v26 = vpack.c.bf16 %v297_v18, %v296_v13  ;;  %v841_v28 = vunpack.c.h.bf16 %v1098_v11 }
  0x15   :  { %v166_v27 = vmul.f32 %v837_v20, %v1178_v1  ;;  %v844_v29 = vunpack.c.l.bf16 %v1099_v16  ;;  %1125 = vst [vmem:[%s1505_s3 + $0x28] sm:$0xff] %v958_v21   ;;  %v968_v30 = vpack.c.bf16 %v299_v22, %v298_v19  ;;  %v845_v33 = vunpack.c.h.bf16 %v1099_v16 }
  0x16   :  { %v236_v31 = vadd.f32 %v1192_v7, %v165_v23  ;;  %v167_v32 = vmul.f32 %v840_v24, %v1178_v1  ;;  %1126 = vst [vmem:[%s1505_s3 + $0x30] sm:$0xff] %v963_v26   ;;  %v168_v35 = vmul.f32 %v841_v28, %v1178_v1  ;;  %v848_v37 = vunpack.c.l.bf16 %v1100_v25 }
  0x17   :  { %v237_v34 = vadd.f32 %v1192_v7, %v166_v27  ;;  %v169_v36 = vmul.f32 %v844_v29, %v1178_v1  ;;  %1127 = vst [vmem:[%s1505_s3 + $0x38] sm:$0xff] %v968_v30   ;;  %v170_v41 = vmul.f32 %v845_v33, %v1178_v1  ;;  %v849_v42 = vunpack.c.h.bf16 %v1100_v25  ;;  %v1106_v29 = vld [vmem:[%s1502_s0 + $0x88] sm:$0xff]  }
  0x18   :  { %v300_v39 = vmax.f32 %v236_v31, 0.0  ;;  %v238_v40 = vadd.f32 %v1192_v7, %v167_v32  ;;  %v239_v44 = vadd.f32 %v1192_v7, %v168_v35  ;;  %v171_v46 = vmul.f32 %v848_v37, %v1178_v1 }
  0x19   :  { %v301_v43 = vmax.f32 %v237_v34, 0.0  ;;  %v240_v45 = vadd.f32 %v1192_v7, %v169_v36  ;;  %v241_v48 = vadd.f32 %v1192_v7, %v170_v41  ;;  %v172_v49 = vmul.f32 %v849_v42, %v1178_v1  ;;  %v1107_v34 = vld [vmem:[%s1502_s0 + $0x90] sm:$0xff]  }
  0x1a   :  { %v302_v47 = vmax.f32 %v238_v40, 0.0  ;;  %v852_v50 = vunpack.c.l.bf16 %v1101_v38  ;;  %v303_v53 = vmax.f32 %v239_v44, 0.0  ;;  %v242_v55 = vadd.f32 %v1192_v7, %v171_v46 }
  0x1b   :  { %v973_v52 = vpack.c.bf16 %v301_v43, %v300_v39  ;;  %v304_v54 = vmax.f32 %v240_v45, 0.0  ;;  %v305_v56 = vmax.f32 %v241_v48, 0.0  ;;  %v243_v57 = vadd.f32 %v1192_v7, %v172_v49  ;;  %v1108_v43 = vld [vmem:[%s1502_s0 + $0x98] sm:$0xff]  }
  0x1c   :  { %v853_v58 = vunpack.c.h.bf16 %v1101_v38  ;;  %v173_v59 = vmul.f32 %v852_v50, %v1178_v1  ;;  %v978_v61 = vpack.c.bf16 %v303_v53, %v302_v47  ;;  %v306_v62 = vmax.f32 %v242_v55, 0.0 }
  0x1d   :  { %1128 = vst [vmem:[%s1505_s3 + $0x40] sm:$0xff] %v973_v52   ;;  %v856_v63 = vunpack.c.l.bf16 %v1102_v51  ;;  %v857_v0 = vunpack.c.h.bf16 %v1102_v51  ;;  %v983_v3 = vpack.c.bf16 %v305_v56, %v304_v54  ;;  %v307_v4 = vmax.f32 %v243_v57, 0.0  ;;  %v1109_v56 = vld [vmem:[%s1502_s0 + $0xa0] sm:$0xff]  }
  0x1e   :  { %v174_v5 = vmul.f32 %v853_v58, %v1178_v1  ;;  %v244_v6 = vadd.f32 %v1192_v7, %v173_v59  ;;  %1129 = vst [vmem:[%s1505_s3 + $0x48] sm:$0xff] %v978_v61   ;;  %v860_v10 = vunpack.c.l.bf16 %v1103_v60  ;;  %v861_v11 = vunpack.c.h.bf16 %v1103_v60 }
  0x1f   :  { %v175_v8 = vmul.f32 %v856_v63, %v1178_v1  ;;  %v176_v9 = vmul.f32 %v857_v0, %v1178_v1  ;;  %1130 = vst [vmem:[%s1505_s3 + $0x50] sm:$0xff] %v983_v3   ;;  %v988_v13 = vpack.c.bf16 %v307_v4, %v306_v62  ;;  %v864_v16 = vunpack.c.l.bf16 %v1104_v2 }
  0x20   :  { %v245_v14 = vadd.f32 %v1192_v7, %v174_v5  ;;  %v308_v15 = vmax.f32 %v244_v6, 0.0  ;;  %v177_v19 = vmul.f32 %v860_v10, %v1178_v1  ;;  %v178_v20 = vmul.f32 %v861_v11, %v1178_v1 }
  0x21   :  { %v246_v17 = vadd.f32 %v1192_v7, %v175_v8  ;;  %v247_v18 = vadd.f32 %v1192_v7, %v176_v9  ;;  %1131 = vst [vmem:[%s1505_s3 + $0x58] sm:$0xff] %v988_v13   ;;  %v865_v22 = vunpack.c.h.bf16 %v1104_v2  ;;  %v179_v23 = vmul.f32 %v864_v16, %v1178_v1  ;;  %v1110_v2 = vld [vmem:[%s1502_s0 + $0xa8] sm:$0xff]   ;;  %v1111_v16 = vld [vmem:[%s1502_s0 + $0xb0] sm:$0xff]  }
  0x22   :  { %v309_v21 = vmax.f32 %v245_v14, 0.0  ;;  %v868_v24 = vunpack.c.l.bf16 %v1105_v12  ;;  %v248_v27 = vadd.f32 %v1192_v7, %v177_v19  ;;  %v249_v28 = vadd.f32 %v1192_v7, %v178_v20 }
  0x23   :  { %v310_v25 = vmax.f32 %v246_v17, 0.0  ;;  %v311_v26 = vmax.f32 %v247_v18, 0.0  ;;  %v180_v31 = vmul.f32 %v865_v22, %v1178_v1  ;;  %v250_v32 = vadd.f32 %v1192_v7, %v179_v23 }
  0x24   :  { %v993_v30 = vpack.c.bf16 %v309_v21, %v308_v15  ;;  %v869_v33 = vunpack.c.h.bf16 %v1105_v12  ;;  %v312_v36 = vmax.f32 %v248_v27, 0.0  ;;  %v313_v37 = vmax.f32 %v249_v28, 0.0  ;;  %v1112_v21 = vld [vmem:[%s1502_s0 + $0xb8] sm:$0xff]  }
  0x25   :  { %v998_v35 = vpack.c.bf16 %v311_v26, %v310_v25  ;;  %v181_v38 = vmul.f32 %v868_v24, %v1178_v1  ;;  %v251_v39 = vadd.f32 %v1192_v7, %v180_v31  ;;  %v314_v40 = vmax.f32 %v250_v32, 0.0 }
  0x26   :  { %1132 = vst [vmem:[%s1505_s3 + $0x60] sm:$0xff] %v993_v30   ;;  %v182_v41 = vmul.f32 %v869_v33, %v1178_v1  ;;  %v872_v42 = vunpack.c.l.bf16 %v1106_v29  ;;  %v1003_v44 = vpack.c.bf16 %v313_v37, %v312_v36  ;;  %v873_v46 = vunpack.c.h.bf16 %v1106_v29 }
  0x27   :  { %1133 = vst [vmem:[%s1505_s3 + $0x68] sm:$0xff] %v998_v35   ;;  %v252_v45 = vadd.f32 %v1192_v7, %v181_v38  ;;  %v876_v47 = vunpack.c.l.bf16 %v1107_v34  ;;  %v315_v48 = vmax.f32 %v251_v39, 0.0  ;;  %v877_v51 = vunpack.c.h.bf16 %v1107_v34  ;;  %v1113_v34 = vld [vmem:[%s1502_s0 + $0xc0] sm:$0xff]  }
  0x28   :  { %v253_v49 = vadd.f32 %v1192_v7, %v182_v41  ;;  %v183_v50 = vmul.f32 %v872_v42, %v1178_v1  ;;  %1134 = vst [vmem:[%s1505_s3 + $0x70] sm:$0xff] %v1003_v44   ;;  %v184_v53 = vmul.f32 %v873_v46, %v1178_v1  ;;  %v880_v55 = vunpack.c.l.bf16 %v1108_v43 }
  0x29   :  { %v316_v52 = vmax.f32 %v252_v45, 0.0  ;;  %v185_v54 = vmul.f32 %v876_v47, %v1178_v1  ;;  %v1008_v57 = vpack.c.bf16 %v315_v48, %v314_v40  ;;  %v186_v60 = vmul.f32 %v877_v51, %v1178_v1  ;;  %v1114_v47 = vld [vmem:[%s1502_s0 + $0xc8] sm:$0xff]  }
  0x2a   :  { %v317_v58 = vmax.f32 %v253_v49, 0.0  ;;  %v254_v59 = vadd.f32 %v1192_v7, %v183_v50  ;;  %v255_v61 = vadd.f32 %v1192_v7, %v184_v53  ;;  %v881_v63 = vunpack.c.h.bf16 %v1108_v43 }
  0x2b   :  { %v256_v62 = vadd.f32 %v1192_v7, %v185_v54  ;;  %v187_v0 = vmul.f32 %v880_v55, %v1178_v1  ;;  %1135 = vst [vmem:[%s1505_s3 + $0x78] sm:$0xff] %v1008_v57   ;;  %v257_v5 = vadd.f32 %v1192_v7, %v186_v60  ;;  %v884_v6 = vunpack.c.l.bf16 %v1109_v56 }
  0x2c   :  { %v1013_v3 = vpack.c.bf16 %v317_v58, %v316_v52  ;;  %v318_v4 = vmax.f32 %v254_v59, 0.0  ;;  %v319_v8 = vmax.f32 %v255_v61, 0.0  ;;  %v188_v10 = vmul.f32 %v881_v63, %v1178_v1  ;;  %v1115_v52 = vld [vmem:[%s1502_s0 + $0xd0] sm:$0xff]   ;;  %v1116_v61 = vld [vmem:[%s1502_s0 + $0xd8] sm:$0xff]  }
  0x2d   :  { %v320_v9 = vmax.f32 %v256_v62, 0.0  ;;  %v258_v11 = vadd.f32 %v1192_v7, %v187_v0  ;;  %v321_v12 = vmax.f32 %v257_v5, 0.0  ;;  %v885_v13 = vunpack.c.h.bf16 %v1109_v56 }
  0x2e   :  { %1136 = vst [vmem:[%s1505_s3 + $0x80] sm:$0xff] %v1013_v3   ;;  %v189_v14 = vmul.f32 %v884_v6, %v1178_v1  ;;  %v888_v15 = vunpack.c.l.bf16 %v1110_v2  ;;  %v1018_v17 = vpack.c.bf16 %v319_v8, %v318_v4  ;;  %v259_v18 = vadd.f32 %v1192_v7, %v188_v10 }
  0x2f   :  { %v322_v19 = vmax.f32 %v258_v11, 0.0  ;;  %v889_v20 = vunpack.c.h.bf16 %v1110_v2  ;;  %v1023_v22 = vpack.c.bf16 %v321_v12, %v320_v9  ;;  %v190_v23 = vmul.f32 %v885_v13, %v1178_v1  ;;  %v1117_v12 = vld [vmem:[%s1502_s0 + $0xe0] sm:$0xff]  }
  0x30   :  { %v260_v24 = vadd.f32 %v1192_v7, %v189_v14  ;;  %v191_v25 = vmul.f32 %v888_v15, %v1178_v1  ;;  %1137 = vst [vmem:[%s1505_s3 + $0x88] sm:$0xff] %v1018_v17   ;;  %v323_v26 = vmax.f32 %v259_v18, 0.0  ;;  %v892_v28 = vunpack.c.l.bf16 %v1111_v16 }
  0x31   :  { %v192_v27 = vmul.f32 %v889_v20, %v1178_v1  ;;  %v893_v29 = vunpack.c.h.bf16 %v1111_v16  ;;  %1138 = vst [vmem:[%s1505_s3 + $0x90] sm:$0xff] %v1023_v22   ;;  %v261_v30 = vadd.f32 %v1192_v7, %v190_v23  ;;  %v896_v33 = vunpack.c.l.bf16 %v1112_v21 }
  0x32   :  { %v324_v31 = vmax.f32 %v260_v24, 0.0  ;;  %v262_v32 = vadd.f32 %v1192_v7, %v191_v25  ;;  %v1028_v35 = vpack.c.bf16 %v323_v26, %v322_v19  ;;  %v193_v37 = vmul.f32 %v892_v28, %v1178_v1 }
  0x33   :  { %v263_v36 = vadd.f32 %v1192_v7, %v192_v27  ;;  %v194_v38 = vmul.f32 %v893_v29, %v1178_v1  ;;  %v325_v39 = vmax.f32 %v261_v30, 0.0  ;;  %v897_v41 = vunpack.c.h.bf16 %v1112_v21  ;;  %v1118_v21 = vld [vmem:[%s1502_s0 + $0xe8] sm:$0xff]  }
  0x34   :  { %v326_v40 = vmax.f32 %v262_v32, 0.0  ;;  %v195_v42 = vmul.f32 %v896_v33, %v1178_v1  ;;  %1139 = vst [vmem:[%s1505_s3 + $0x98] sm:$0xff] %v1028_v35   ;;  %v264_v44 = vadd.f32 %v1192_v7, %v193_v37  ;;  %v900_v46 = vunpack.c.l.bf16 %v1113_v34 }
  0x35   :  { %v327_v43 = vmax.f32 %v263_v36, 0.0  ;;  %v265_v45 = vadd.f32 %v1192_v7, %v194_v38  ;;  %v1033_v48 = vpack.c.bf16 %v325_v39, %v324_v31  ;;  %v196_v49 = vmul.f32 %v897_v41, %v1178_v1  ;;  %v1120_v39 = vld [vmem:[%s1502_s0 + $0xf8] sm:$0xff]  }
  0x36   :  { %v266_v50 = vadd.f32 %v1192_v7, %v195_v42  ;;  %v901_v51 = vunpack.c.h.bf16 %v1113_v34  ;;  %v328_v54 = vmax.f32 %v264_v44, 0.0  ;;  %v197_v56 = vmul.f32 %v900_v46, %v1178_v1  ;;  %v1119_v34 = vld [vmem:[%s1502_s0 + $0xf0] sm:$0xff]  }
  0x37   :  { %v1038_v53 = vpack.c.bf16 %v327_v43, %v326_v40  ;;  %v329_v55 = vmax.f32 %v265_v45, 0.0  ;;  %1140 = vst [vmem:[%s1505_s3 + $0xa0] sm:$0xff] %v1033_v48   ;;  %v267_v57 = vadd.f32 %v1192_v7, %v196_v49  ;;  %v904_v60 = vunpack.c.l.bf16 %v1114_v47 }
  0x38   :  { %v330_v58 = vmax.f32 %v266_v50, 0.0  ;;  %v198_v59 = vmul.f32 %v901_v51, %v1178_v1  ;;  %v268_v63 = vadd.f32 %v1192_v7, %v197_v56  ;;  %v905_v0 = vunpack.c.h.bf16 %v1114_v47 }
  0x39   :  { %1141 = vst [vmem:[%s1505_s3 + $0xa8] sm:$0xff] %v1038_v53   ;;  %v1043_v62 = vpack.c.bf16 %v329_v55, %v328_v54  ;;  %v908_v2 = vunpack.c.l.bf16 %v1115_v52  ;;  %v331_v3 = vmax.f32 %v267_v57, 0.0  ;;  %v199_v5 = vmul.f32 %v904_v60, %v1178_v1 }
  0x3a   :  { %v269_v4 = vadd.f32 %v1192_v7, %v198_v59  ;;  %v909_v6 = vunpack.c.h.bf16 %v1115_v52  ;;  %v332_v8 = vmax.f32 %v268_v63, 0.0  ;;  %v200_v9 = vmul.f32 %v905_v0, %v1178_v1 }
  0x3b   :  { %1142 = vst [vmem:[%s1505_s3 + $0xb0] sm:$0xff] %v1043_v62   ;;  %v201_v10 = vmul.f32 %v908_v2, %v1178_v1  ;;  %v912_v11 = vunpack.c.l.bf16 %v1116_v61  ;;  %v1048_v13 = vpack.c.bf16 %v331_v3, %v330_v58  ;;  %v270_v15 = vadd.f32 %v1192_v7, %v199_v5 }
  0x3c   :  { %v333_v14 = vmax.f32 %v269_v4, 0.0  ;;  %v202_v16 = vmul.f32 %v909_v6, %v1178_v1  ;;  %v271_v17 = vadd.f32 %v1192_v7, %v200_v9  ;;  %v913_v19 = vunpack.c.h.bf16 %v1116_v61 }
  0x3d   :  { %v272_v18 = vadd.f32 %v1192_v7, %v201_v10  ;;  %v203_v20 = vmul.f32 %v912_v11, %v1178_v1  ;;  %1143 = vst [vmem:[%s1505_s3 + $0xb8] sm:$0xff] %v1048_v13   ;;  %v334_v23 = vmax.f32 %v270_v15, 0.0  ;;  %v916_v25 = vunpack.c.l.bf16 %v1117_v12 }
  0x3e   :  { %v1053_v22 = vpack.c.bf16 %v333_v14, %v332_v8  ;;  %v273_v24 = vadd.f32 %v1192_v7, %v202_v16  ;;  %v335_v26 = vmax.f32 %v271_v17, 0.0  ;;  %v204_v28 = vmul.f32 %v913_v19, %v1178_v1 }
  0x3f   :  { %v336_v27 = vmax.f32 %v272_v18, 0.0  ;;  %v274_v29 = vadd.f32 %v1192_v7, %v203_v20  ;;  %v917_v31 = vunpack.c.h.bf16 %v1117_v12  ;;  %v205_v32 = vmul.f32 %v916_v25, %v1178_v1 }
  0x40   :  { %1144 = vst [vmem:[%s1505_s3 + $0xc0] sm:$0xff] %v1053_v22   ;;  %v337_v30 = vmax.f32 %v273_v24, 0.0  ;;  %v920_v33 = vunpack.c.l.bf16 %v1118_v21  ;;  %v1058_v35 = vpack.c.bf16 %v335_v26, %v334_v23  ;;  %v275_v36 = vadd.f32 %v1192_v7, %v204_v28 }
  0x41   :  { %v338_v37 = vmax.f32 %v274_v29, 0.0  ;;  %v921_v38 = vunpack.c.h.bf16 %v1118_v21  ;;  %v206_v41 = vmul.f32 %v917_v31, %v1178_v1  ;;  %v276_v42 = vadd.f32 %v1192_v7, %v205_v32 }
  0x42   :  { %v1063_v40 = vpack.c.bf16 %v337_v30, %v336_v27  ;;  %v207_v43 = vmul.f32 %v920_v33, %v1178_v1  ;;  %1145 = vst [vmem:[%s1505_s3 + $0xc8] sm:$0xff] %v1058_v35   ;;  %v339_v44 = vmax.f32 %v275_v36, 0.0  ;;  %v924_v46 = vunpack.c.l.bf16 %v1119_v34 }
  0x43   :  { %v208_v45 = vmul.f32 %v921_v38, %v1178_v1  ;;  %v925_v47 = vunpack.c.h.bf16 %v1119_v34  ;;  %v277_v48 = vadd.f32 %v1192_v7, %v206_v41  ;;  %v340_v49 = vmax.f32 %v276_v42, 0.0 }
  0x44   :  { %1146 = vst [vmem:[%s1505_s3 + $0xd0] sm:$0xff] %v1063_v40   ;;  %v278_v50 = vadd.f32 %v1192_v7, %v207_v43  ;;  %v928_v51 = vunpack.c.l.bf16 %v1120_v39  ;;  %v1068_v52 = vpack.c.bf16 %v339_v44, %v338_v37  ;;  %v209_v54 = vmul.f32 %v924_v46, %v1178_v1 }
  0x45   :  { %v279_v53 = vadd.f32 %v1192_v7, %v208_v45  ;;  %v210_v55 = vmul.f32 %v925_v47, %v1178_v1  ;;  %v341_v56 = vmax.f32 %v277_v48, 0.0  ;;  %v929_v58 = vunpack.c.h.bf16 %v1120_v39 }
  0x46   :  { %v342_v57 = vmax.f32 %v278_v50, 0.0  ;;  %v211_v59 = vmul.f32 %v928_v51, %v1178_v1  ;;  %1147 = vst [vmem:[%s1505_s3 + $0xd8] sm:$0xff] %v1068_v52   ;;  %v280_v61 = vadd.f32 %v1192_v7, %v209_v54 }
  0x47   :  { %v343_v60 = vmax.f32 %v279_v53, 0.0  ;;  %v281_v62 = vadd.f32 %v1192_v7, %v210_v55  ;;  %v1073_v63 = vpack.c.bf16 %v341_v56, %v340_v49  ;;  %v212_v0 = vmul.f32 %v929_v58, %v1178_v1 }
  0x48   :  { %v282_v2 = vadd.f32 %v1192_v7, %v211_v59  ;;  %v344_v4 = vmax.f32 %v280_v61, 0.0 }
  0x49   :  { %v1078_v3 = vpack.c.bf16 %v343_v60, %v342_v57  ;;  %v345_v5 = vmax.f32 %v281_v62, 0.0  ;;  %1148 = vst [vmem:[%s1505_s3 + $0xe0] sm:$0xff] %v1073_v63   ;;  %v283_v6 = vadd.f32 %v1192_v7, %v212_v0 }
  0x4a   :  { %v346_v8 = vmax.f32 %v282_v2, 0.0 }
  0x4b   :  { %1149 = vst [vmem:[%s1505_s3 + $0xe8] sm:$0xff] %v1078_v3   ;;  %v1083_v9 = vpack.c.bf16 %v345_v5, %v344_v4  ;;  %v347_v10 = vmax.f32 %v283_v6, 0.0 }
  0x4d   :  { %1150 = vst [vmem:[%s1505_s3 + $0xf0] sm:$0xff] %v1083_v9   ;;  %v1088_v1 = vpack.c.bf16 %v347_v10, %v346_v8 }
  0x4f   :  { %1151 = vst [vmem:[%s1505_s3 + $0xf8] sm:$0xff] %v1088_v1  }

// kernel: generator_celeba_forward.15
= control target key start
LH: loop header
LB: loop body
LE: loop exit
PB: predicated region body
PF: predicated region fallthrough
CT: control target
= control target key end

     0   :  { %s2230_s15 = smov 0   ;;  %s2232_s16 = smov 0   ;;  %s2584_s0 = inlined_call_operand.vmem [shape: bf16[4,512,64], index: 0, kind: input, shape index: {}]   ;;  %s2585_s1 = inlined_call_operand.vmem [shape: bf16[4,64,128], index: 1, kind: input, shape index: {}]   ;;  %s2586_s2 = inlined_call_operand.vmem [shape: bf16[4,512,128], index: 2, kind: output, shape index: {0}]   ;;  %s2587_s3 = inlined_call_operand.vmem [shape: f32[4,1,128], index: 3, kind: output, shape index: {1}]   ;;  %s2588_s4 = inlined_call_operand.vmem [shape: f32[4,1,128], index: 4, kind: output, shape index: {2}]  }
   0x1   :  { %s2234_s17 = smov 0  }
   0x2 LB: > { %s27_s18 = sadd.s32 1, %s2198_s16  ;;  %p1604_p0 = scmp.ge.s32.totalorder %s2202_s17, 1  ;;  %s2202_s17 = sphi %s2234_s17, %s15_s17   ;;  %s2198_s16 = sphi %s2232_s16, %s2590_s16   ;;  %s2194_s15 = sphi %s2230_s15, %s2589_s15  }
   0x3   : > { %p29_p1 = scmp.ge.s32.totalorder %s27_s18, 4  ;;  %p198_p2 = scmp.lt.s32.totalorder %s2202_s17, 5 }
   0x5   : > { %s2592_s18 = smov (%p29_p1, %s27_s18), 0  ;;  %p199_p3 = pnand %p1604_p0, %p198_p2 }
   0x6   : > { %p244_p4 = scmp.lt.s32.totalorder (!%p199_p3), %s2194_s15, 3  ;;  %vm531_vm0 = vcmask (!%p199_p3), 523264   ;;  %v2204_v36 = vmov (!%p199_p3), 0.0  }
   0x7   : > { %202 = sbr.rel (%p199_p3) target bundleno = 392 (0x188), region = 28 }
   0xe   : > { %s2594_s15 = smov (!%p244_p4, %s2194_s15), 3 }
   0xf   : > { %s1745_s19 = sshll.u32 %s2594_s15, 8  ;;  %s1746_s20 = sshll.u32 %s2594_s15, 5 }
  0x10   : > { %s257_s23 = scalar_lea.vmem %s2585_s1, %s1746_s20  ;;  %s2260_s26 = scalar_lea.vmem %s2584_s0, %s1745_s19 }
  0x11   : > { %v2144_v0 = vld [vmem:[%s257_s23] sm:$0xff]   ;;  %v2145_v1 = vld [vmem:[%s257_s23 + $0x8] sm:$0xff]   ;;  %v2146_v2 = vld [vmem:[%s257_s23 + $0x10] sm:$0xff]   ;;  %s2330_s29 = scalar_lea.vmem %s2587_s3, %s2594_s15  ;;  %s2336_s6 = scalar_lea.vmem %s2588_s4, %s2594_s15 }
  0x12   : > { %2039 = vmatprep.subr.bf16.mxu0 %v2144_v0  ;;  %2111 = vmatprep.subr.bf16.mxu1 %v2144_v0  ;;  %v2148_v3 = vld [vmem:[%s2260_s26] sm:$0xff]   ;;  %v2147_v4 = vld [vmem:[%s257_s23 + $0x18] sm:$0xff]   ;;  %v2149_v5 = vld [vmem:[%s2260_s26 + $0x8] sm:$0xff]   ;;  %1241 = vst [vmem:[%s2330_s29] sm:$0x1] %v2204_v36  ;;  %s2345_s9 = scalar_lea.vmem %s2586_s2, %s1745_s19 }
  0x13   : > { %2040 = vmatpush3.bf16.msra.mxu0 %v2144_v0  ;;  %2115 = vmatpush3.bf16.msra.mxu1 %v2144_v0  ;;  %v2150_v6 = vld [vmem:[%s2260_s26 + $0x10] sm:$0xff]   ;;  %v2151_v7 = vld [vmem:[%s2260_s26 + $0x18] sm:$0xff]   ;;  %v2164_v8 = vld [vmem:[%s2260_s26 + $0x80] sm:$0xff]   ;;  %1242 = vst [vmem:[%s2336_s6] sm:$0x1] %v2204_v36 }
  0x14   : > { %2041 = vmatprep.subr.bf16.mxu0 %v2145_v1  ;;  %2112 = vmatprep.subr.bf16.mxu1 %v2145_v1  ;;  %v2165_v9 = vld [vmem:[%s2260_s26 + $0x88] sm:$0xff]   ;;  %v2166_v10 = vld [vmem:[%s2260_s26 + $0x90] sm:$0xff]   ;;  %v2152_v11 = vld [vmem:[%s2260_s26 + $0x20] sm:$0xff]  }
  0x15   : > { %2047 = vmatprep.mubr.msk.bf16.mxu0 %vm531_vm0, %v2148_v3  ;;  %2079 = vmatprep.mubr.msk.bf16.mxu1 %vm531_vm0, %v2164_v8  ;;  %v2167_v12 = vld [vmem:[%s2260_s26 + $0x98] sm:$0xff]   ;;  %v2168_v13 = vld [vmem:[%s2260_s26 + $0xa0] sm:$0xff]   ;;  %v2153_v14 = vld [vmem:[%s2260_s26 + $0x28] sm:$0xff]  }
  0x16   : > { %v2154_v15 = vld [vmem:[%s2260_s26 + $0x30] sm:$0xff]   ;;  %v2169_v16 = vld [vmem:[%s2260_s26 + $0xa8] sm:$0xff]   ;;  %v2155_v18 = vld [vmem:[%s2260_s26 + $0x38] sm:$0xff]  }
  0x17   : > { %2042 = vmatpush3.bf16.msra.mxu0 %v2145_v1  ;;  %2116 = vmatpush3.bf16.msra.mxu1 %v2145_v1  ;;  %v2170_v17 = vld [vmem:[%s2260_s26 + $0xb0] sm:$0xff]   ;;  %v2156_v19 = vld [vmem:[%s2260_s26 + $0x40] sm:$0xff]   ;;  %v2171_v20 = vld [vmem:[%s2260_s26 + $0xb8] sm:$0xff]  }
  0x18   : > { %2043 = vmatprep.subr.bf16.mxu0 %v2146_v2  ;;  %2113 = vmatprep.subr.bf16.mxu1 %v2146_v2  ;;  %v2172_v21 = vld [vmem:[%s2260_s26 + $0xc0] sm:$0xff]   ;;  %v2157_v22 = vld [vmem:[%s2260_s26 + $0x48] sm:$0xff]   ;;  %v2158_v23 = vld [vmem:[%s2260_s26 + $0x50] sm:$0xff]  }
  0x19   : > { %v2173_v24 = vld [vmem:[%s2260_s26 + $0xc8] sm:$0xff]   ;;  %v2174_v25 = vld [vmem:[%s2260_s26 + $0xd0] sm:$0xff]   ;;  %v2159_v26 = vld [vmem:[%s2260_s26 + $0x58] sm:$0xff]  }
  0x1a   : > { %v2160_v27 = vld [vmem:[%s2260_s26 + $0x60] sm:$0xff]   ;;  %v2175_v28 = vld [vmem:[%s2260_s26 + $0xd8] sm:$0xff]   ;;  %v2161_v30 = vld [vmem:[%s2260_s26 + $0x68] sm:$0xff]  }
  0x1b   : > { %2044 = vmatpush3.bf16.msra.mxu0 %v2146_v2  ;;  %2117 = vmatpush3.bf16.msra.mxu1 %v2146_v2  ;;  %v2176_v29 = vld [vmem:[%s2260_s26 + $0xe0] sm:$0xff]   ;;  %v2162_v31 = vld [vmem:[%s2260_s26 + $0x70] sm:$0xff]   ;;  %v2177_v32 = vld [vmem:[%s2260_s26 + $0xe8] sm:$0xff]  }
  0x1c   : > { %2045 = vmatprep.subr.bf16.mxu0 %v2147_v4  ;;  %2114 = vmatprep.subr.bf16.mxu1 %v2147_v4  ;;  %v2178_v33 = vld [vmem:[%s2260_s26 + $0xf0] sm:$0xff]   ;;  %v2163_v34 = vld [vmem:[%s2260_s26 + $0x78] sm:$0xff]  }
  0x1d   : > { %v2179_v35 = vld [vmem:[%s2260_s26 + $0xf8] sm:$0xff]  }
  0x1f   : > { %2046 = vmatpush3.bf16.msra.mxu0 %v2147_v4  ;;  %2118 = vmatpush3.bf16.msra.mxu1 %v2147_v4 }
  0x22   : > { %2048 = vmatmul.mubr.msk.bf16.vlgmr.msra.gmra.mrb[0].mxu0 %vm531_vm0, %v2149_v5  ;;  %2080 = vmatmul.mubr.msk.bf16.vlgmr.msra.gmra.mrb[0].mxu1 %vm531_vm0, %v2165_v9 }
  0x23   : > { %2051 = vmatprep.mubr.msk.bf16.mxu0 %vm531_vm0, %v2150_v6  ;;  %2083 = vmatprep.mubr.msk.bf16.mxu1 %vm531_vm0, %v2166_v10 }
  0x2a   : > { %2052 = vmatmul.mubr.msk.bf16.gmra.mrb[4].mxu0 %vm531_vm0, %v2151_v7  ;;  %2084 = vmatmul.mubr.msk.bf16.gmra.mrb[4].mxu1 %vm531_vm0, %v2167_v12 }
  0x2b   : > { %2055 = vmatprep.mubr.msk.bf16.mxu0 %vm531_vm0, %v2152_v11  ;;  %2087 = vmatprep.mubr.msk.bf16.mxu1 %vm531_vm0, %v2168_v13 }
  0x32   : > { %2056 = vmatmul.mubr.msk.bf16.gmra.mrb[8].mxu0 %vm531_vm0, %v2153_v14  ;;  %2088 = vmatmul.mubr.msk.bf16.gmra.mrb[8].mxu1 %vm531_vm0, %v2169_v16 }
  0x33   : > { %2059 = vmatprep.mubr.msk.bf16.mxu0 %vm531_vm0, %v2154_v15  ;;  %2091 = vmatprep.mubr.msk.bf16.mxu1 %vm531_vm0, %v2170_v17 }
  0x3a   : > { %2060 = vmatmul.mubr.msk.bf16.gmra.mrb[12].mxu0 %vm531_vm0, %v2155_v18  ;;  %2092 = vmatmul.mubr.msk.bf16.gmra.mrb[12].mxu1 %vm531_vm0, %v2171_v20 }
  0x3b   : > { %2063 = vmatprep.mubr.msk.bf16.mxu0 %vm531_vm0, %v2156_v19  ;;  %2095 = vmatprep.mubr.msk.bf16.mxu1 %vm531_vm0, %v2172_v21 }
  0x42   : > { %2064 = vmatmul.mubr.msk.bf16.gmra.mrb[16].mxu0 %vm531_vm0, %v2157_v22  ;;  %2096 = vmatmul.mubr.msk.bf16.gmra.mrb[16].mxu1 %vm531_vm0, %v2173_v24 }
  0x43   : > { %2067 = vmatprep.mubr.msk.bf16.mxu0 %vm531_vm0, %v2158_v23  ;;  %2099 = vmatprep.mubr.msk.bf16.mxu1 %vm531_vm0, %v2174_v25 }
  0x4a   : > { %2068 = vmatmul.mubr.msk.bf16.gmra.mrb[20].mxu0 %vm531_vm0, %v2159_v26  ;;  %2100 = vmatmul.mubr.msk.bf16.gmra.mrb[20].mxu1 %vm531_vm0, %v2175_v28 }
  0x4b   : > { %2071 = vmatprep.mubr.msk.bf16.mxu0 %vm531_vm0, %v2160_v27  ;;  %2103 = vmatprep.mubr.msk.bf16.mxu1 %vm531_vm0, %v2176_v29 }
  0x52   : > { %2072 = vmatmul.mubr.msk.bf16.gmra.mrb[24].mxu0 %vm531_vm0, %v2161_v30  ;;  %2104 = vmatmul.mubr.msk.bf16.gmra.mrb[24].mxu1 %vm531_vm0, %v2177_v32 }
  0x53   : > { %2075 = vmatprep.mubr.msk.bf16.mxu0 %vm531_vm0, %v2162_v31  ;;  %2107 = vmatprep.mubr.msk.bf16.mxu1 %vm531_vm0, %v2178_v33 }
  0x5a   : > { %2076 = vmatmul.mubr.msk.bf16.gmra.mrb[28].mxu0 %vm531_vm0, %v2163_v34  ;;  %2108 = vmatmul.mubr.msk.bf16.gmra.mrb[28].mxu1 %vm531_vm0, %v2179_v35 }
  0xf5   : > { %v2049_v37 = vpop.f32.mrb[0].mxu0  ;;  %v2348_v46 = vpop.f32.mrb[0].mxu1 }
  0xf6   : > { %v662_v38 = vpop.f32.mrb[1].mxu0  ;;  %v1318_v47 = vmul.f32 %v2049_v37, %v2049_v37  ;;  %v2351_v50 = vpop.f32.mrb[1].mxu1 }
  0xf7   : > { %v2050_v39 = vpop.f32.mrb[2].mxu0  ;;  %v1316_v42 = vmul.f32 %v662_v38, %v662_v38  ;;  %v2353_v51 = vpop.f32.mrb[2].mxu1 }
  0xf8   : > { %v1820_v40 = vpack.c.bf16 %v2050_v39, %v2049_v37  ;;  %v665_v41 = vpop.f32.mrb[3].mxu0  ;;  %v1319_v52 = vmul.f32 %v2050_v39, %v2050_v39  ;;  %v1900_v56 = vpack.c.bf16 %v2353_v51, %v2348_v46  ;;  %v2357_v57 = vpop.f32.mrb[3].mxu1 }
  0xf9   : > { %v1815_v43 = vpack.c.bf16 %v665_v41, %v662_v38  ;;  %v1244_v44 = vadd.f32 %v665_v41, %v662_v38  ;;  %v1317_v45 = vmul.f32 %v665_v41, %v665_v41  ;;  %v1895_v59 = vpack.c.bf16 %v2357_v57, %v2351_v50 }
  0xfa   : > { %1972 = vst [vmem:[%s2345_s9 + $0x8] sm:$0xff] %v1820_v40   ;;  %1988 = vst [vmem:[%s2345_s9 + $0x88] sm:$0xff] %v1900_v56  }
  0xfb   : > { %1816 = vst [vmem:[%s2345_s9] sm:$0xff] %v1815_v43   ;;  %v1245_v48 = vadd.f32 %v2049_v37, %v1244_v44  ;;  %v1380_v49 = vadd.f32 %v1317_v45, %v1316_v42  ;;  %1987 = vst [vmem:[%s2345_s9 + $0x80] sm:$0xff] %v1895_v59  }
  0xfd   : > { %v1381_v53 = vadd.f32 %v1380_v49, %v1318_v47  ;;  %v2053_v54 = vpop.f32.mrb[4].mxu0  ;;  %v1246_v55 = vadd.f32 %v2050_v39, %v1245_v48  ;;  %v2364_v6 = vpop.f32.mrb[4].mxu1 }
  0xfe   : > { %v678_v58 = vpop.f32.mrb[5].mxu0  ;;  %v1322_v7 = vmul.f32 %v2053_v54, %v2053_v54  ;;  %v2367_v10 = vpop.f32.mrb[5].mxu1 }
  0xff   : > { %v1247_v60 = vadd.f32 %v1246_v55, %v678_v58  ;;  %v1320_v61 = vmul.f32 %v678_v58, %v678_v58  ;;  %v1382_v62 = vadd.f32 %v1381_v53, %v1319_v52  ;;  %v2054_v63 = vpop.f32.mrb[6].mxu0  ;;  %v2369_v11 = vpop.f32.mrb[6].mxu1 }
 0x100   : > { %v1830_v0 = vpack.c.bf16 %v2054_v63, %v2053_v54  ;;  %v681_v1 = vpop.f32.mrb[7].mxu0  ;;  %v1323_v12 = vmul.f32 %v2054_v63, %v2054_v63  ;;  %v1910_v16 = vpack.c.bf16 %v2369_v11, %v2364_v6  ;;  %v2373_v17 = vpop.f32.mrb[7].mxu1 }
 0x101   : > { %v1383_v2 = vadd.f32 %v1382_v62, %v1320_v61  ;;  %v1825_v3 = vpack.c.bf16 %v681_v1, %v678_v58  ;;  %v1248_v4 = vadd.f32 %v1247_v60, %v681_v1  ;;  %v1321_v5 = vmul.f32 %v681_v1, %v681_v1 }
 0x102   : > { %1974 = vst [vmem:[%s2345_s9 + $0x18] sm:$0xff] %v1830_v0   ;;  %v1905_v19 = vpack.c.bf16 %v2373_v17, %v2367_v10  ;;  %1990 = vst [vmem:[%s2345_s9 + $0x98] sm:$0xff] %v1910_v16  }
 0x103   : > { %1973 = vst [vmem:[%s2345_s9 + $0x10] sm:$0xff] %v1825_v3   ;;  %v1249_v8 = vadd.f32 %v2053_v54, %v1248_v4  ;;  %v1384_v9 = vadd.f32 %v1383_v2, %v1321_v5 }
 0x104   : > { %1989 = vst [vmem:[%s2345_s9 + $0x90] sm:$0xff] %v1905_v19  }
 0x105   : > { %v1385_v13 = vadd.f32 %v1384_v9, %v1322_v7  ;;  %v2057_v14 = vpop.f32.mrb[8].mxu0  ;;  %v1250_v15 = vadd.f32 %v2054_v63, %v1249_v8  ;;  %v2380_v30 = vpop.f32.mrb[8].mxu1 }
 0x106   : > { %v694_v18 = vpop.f32.mrb[9].mxu0  ;;  %v1326_v31 = vmul.f32 %v2057_v14, %v2057_v14  ;;  %v2383_v34 = vpop.f32.mrb[9].mxu1 }
 0x107   : > { %v1251_v20 = vadd.f32 %v1250_v15, %v694_v18  ;;  %v1324_v21 = vmul.f32 %v694_v18, %v694_v18  ;;  %v1386_v22 = vadd.f32 %v1385_v13, %v1323_v12  ;;  %v2058_v23 = vpop.f32.mrb[10].mxu0  ;;  %v2385_v35 = vpop.f32.mrb[10].mxu1 }
 0x108   : > { %v1840_v24 = vpack.c.bf16 %v2058_v23, %v2057_v14  ;;  %v697_v25 = vpop.f32.mrb[11].mxu0  ;;  %v1327_v36 = vmul.f32 %v2058_v23, %v2058_v23  ;;  %v1920_v40 = vpack.c.bf16 %v2385_v35, %v2380_v30  ;;  %v2389_v41 = vpop.f32.mrb[11].mxu1 }
 0x109   : > { %v1387_v26 = vadd.f32 %v1386_v22, %v1324_v21  ;;  %v1835_v27 = vpack.c.bf16 %v697_v25, %v694_v18  ;;  %v1252_v28 = vadd.f32 %v1251_v20, %v697_v25  ;;  %v1325_v29 = vmul.f32 %v697_v25, %v697_v25 }
 0x10a   : > { %1976 = vst [vmem:[%s2345_s9 + $0x28] sm:$0xff] %v1840_v24   ;;  %v1915_v43 = vpack.c.bf16 %v2389_v41, %v2383_v34  ;;  %1992 = vst [vmem:[%s2345_s9 + $0xa8] sm:$0xff] %v1920_v40  }
 0x10b   : > { %1975 = vst [vmem:[%s2345_s9 + $0x20] sm:$0xff] %v1835_v27   ;;  %v1253_v32 = vadd.f32 %v2057_v14, %v1252_v28  ;;  %v1388_v33 = vadd.f32 %v1387_v26, %v1325_v29 }
 0x10c   : > { %1991 = vst [vmem:[%s2345_s9 + $0xa0] sm:$0xff] %v1915_v43  }
 0x10d   : > { %v1389_v37 = vadd.f32 %v1388_v33, %v1326_v31  ;;  %v2061_v38 = vpop.f32.mrb[12].mxu0  ;;  %v1254_v39 = vadd.f32 %v2058_v23, %v1253_v32  ;;  %v2396_v58 = vpop.f32.mrb[12].mxu1 }
 0x10e   : > { %v710_v42 = vpop.f32.mrb[13].mxu0  ;;  %v1330_v59 = vmul.f32 %v2061_v38, %v2061_v38  ;;  %v2399_v62 = vpop.f32.mrb[13].mxu1 }
 0x10f   : > { %v1255_v44 = vadd.f32 %v1254_v39, %v710_v42  ;;  %v1328_v45 = vmul.f32 %v710_v42, %v710_v42  ;;  %v1390_v47 = vadd.f32 %v1389_v37, %v1327_v36  ;;  %v2062_v48 = vpop.f32.mrb[14].mxu0  ;;  %v2401_v63 = vpop.f32.mrb[14].mxu1 }
 0x110   : > { %v1850_v49 = vpack.c.bf16 %v2062_v48, %v2061_v38  ;;  %v713_v52 = vpop.f32.mrb[15].mxu0  ;;  %v1331_v0 = vmul.f32 %v2062_v48, %v2062_v48  ;;  %v1930_v4 = vpack.c.bf16 %v2401_v63, %v2396_v58  ;;  %v2405_v5 = vpop.f32.mrb[15].mxu1 }
 0x111   : > { %v1391_v53 = vadd.f32 %v1390_v47, %v1328_v45  ;;  %v1845_v54 = vpack.c.bf16 %v713_v52, %v710_v42  ;;  %v1256_v55 = vadd.f32 %v1255_v44, %v713_v52  ;;  %v1329_v56 = vmul.f32 %v713_v52, %v713_v52 }
 0x112   : > { %1978 = vst [vmem:[%s2345_s9 + $0x38] sm:$0xff] %v1850_v49   ;;  %v1925_v8 = vpack.c.bf16 %v2405_v5, %v2399_v62  ;;  %1994 = vst [vmem:[%s2345_s9 + $0xb8] sm:$0xff] %v1930_v4  }
 0x113   : > { %1977 = vst [vmem:[%s2345_s9 + $0x30] sm:$0xff] %v1845_v54   ;;  %v1257_v60 = vadd.f32 %v2061_v38, %v1256_v55  ;;  %v1392_v61 = vadd.f32 %v1391_v53, %v1329_v56 }
 0x114   : > { %1993 = vst [vmem:[%s2345_s9 + $0xb0] sm:$0xff] %v1925_v8  }
 0x115   : > { %v1393_v1 = vadd.f32 %v1392_v61, %v1330_v59  ;;  %v2065_v2 = vpop.f32.mrb[16].mxu0  ;;  %v1258_v3 = vadd.f32 %v2062_v48, %v1257_v60  ;;  %v2412_v22 = vpop.f32.mrb[16].mxu1 }
 0x116   : > { %v726_v7 = vpop.f32.mrb[17].mxu0  ;;  %v1334_v23 = vmul.f32 %v2065_v2, %v2065_v2  ;;  %v2415_v26 = vpop.f32.mrb[17].mxu1 }
 0x117   : > { %v1259_v9 = vadd.f32 %v1258_v3, %v726_v7  ;;  %v1332_v12 = vmul.f32 %v726_v7, %v726_v7  ;;  %v1394_v13 = vadd.f32 %v1393_v1, %v1331_v0  ;;  %v2066_v14 = vpop.f32.mrb[18].mxu0  ;;  %v2417_v27 = vpop.f32.mrb[18].mxu1 }
 0x118   : > { %v1860_v15 = vpack.c.bf16 %v2066_v14, %v2065_v2  ;;  %v729_v16 = vpop.f32.mrb[19].mxu0  ;;  %v1335_v28 = vmul.f32 %v2066_v14, %v2066_v14  ;;  %v1940_v33 = vpack.c.bf16 %v2417_v27, %v2412_v22  ;;  %v2421_v36 = vpop.f32.mrb[19].mxu1 }
 0x119   : > { %v1395_v18 = vadd.f32 %v1394_v13, %v1332_v12  ;;  %v1855_v19 = vpack.c.bf16 %v729_v16, %v726_v7  ;;  %v1260_v20 = vadd.f32 %v1259_v9, %v729_v16  ;;  %v1333_v21 = vmul.f32 %v729_v16, %v729_v16 }
 0x11a   : > { %1980 = vst [vmem:[%s2345_s9 + $0x48] sm:$0xff] %v1860_v15   ;;  %v1935_v38 = vpack.c.bf16 %v2421_v36, %v2415_v26  ;;  %1996 = vst [vmem:[%s2345_s9 + $0xc8] sm:$0xff] %v1940_v33  }
 0x11b   : > { %1979 = vst [vmem:[%s2345_s9 + $0x40] sm:$0xff] %v1855_v19   ;;  %v1261_v24 = vadd.f32 %v2065_v2, %v1260_v20  ;;  %v1396_v25 = vadd.f32 %v1395_v18, %v1333_v21 }
 0x11c   : > { %1995 = vst [vmem:[%s2345_s9 + $0xc0] sm:$0xff] %v1935_v38  }
 0x11d   : > { %v1397_v29 = vadd.f32 %v1396_v25, %v1334_v23  ;;  %v2069_v31 = vpop.f32.mrb[20].mxu0  ;;  %v1262_v32 = vadd.f32 %v2066_v14, %v1261_v24  ;;  %v2428_v53 = vpop.f32.mrb[20].mxu1 }
 0x11e   : > { %v742_v37 = vpop.f32.mrb[21].mxu0  ;;  %v1338_v54 = vmul.f32 %v2069_v31, %v2069_v31  ;;  %v2431_v59 = vpop.f32.mrb[21].mxu1 }
 0x11f   : > { %v1263_v39 = vadd.f32 %v1262_v32, %v742_v37  ;;  %v1336_v40 = vmul.f32 %v742_v37, %v742_v37  ;;  %v1398_v42 = vadd.f32 %v1397_v29, %v1335_v28  ;;  %v2070_v43 = vpop.f32.mrb[22].mxu0  ;;  %v2433_v60 = vpop.f32.mrb[22].mxu1 }
 0x120   : > { %v1870_v44 = vpack.c.bf16 %v2070_v43, %v2069_v31  ;;  %v745_v45 = vpop.f32.mrb[23].mxu0  ;;  %v1339_v61 = vmul.f32 %v2070_v43, %v2070_v43  ;;  %v1950_v3 = vpack.c.bf16 %v2433_v60, %v2428_v53  ;;  %v2437_v4 = vpop.f32.mrb[23].mxu1 }
 0x121   : > { %v1399_v47 = vadd.f32 %v1398_v42, %v1336_v40  ;;  %v1865_v48 = vpack.c.bf16 %v745_v45, %v742_v37  ;;  %v1264_v49 = vadd.f32 %v1263_v39, %v745_v45  ;;  %v1337_v52 = vmul.f32 %v745_v45, %v745_v45 }
 0x122   : > { %1982 = vst [vmem:[%s2345_s9 + $0x58] sm:$0xff] %v1870_v44   ;;  %v1945_v8 = vpack.c.bf16 %v2437_v4, %v2431_v59  ;;  %1998 = vst [vmem:[%s2345_s9 + $0xd8] sm:$0xff] %v1950_v3  }
 0x123   : > { %1981 = vst [vmem:[%s2345_s9 + $0x50] sm:$0xff] %v1865_v48   ;;  %v1265_v55 = vadd.f32 %v2069_v31, %v1264_v49  ;;  %v1400_v56 = vadd.f32 %v1399_v47, %v1337_v52 }
 0x124   : > { %1997 = vst [vmem:[%s2345_s9 + $0xd0] sm:$0xff] %v1945_v8   ;;  %v1348_v8 = vmul.f32 %v2351_v50, %v2351_v50 }
 0x125   : > { %v1401_v0 = vadd.f32 %v1400_v56, %v1338_v54  ;;  %v2073_v1 = vpop.f32.mrb[24].mxu0  ;;  %v1266_v2 = vadd.f32 %v2070_v43, %v1265_v55  ;;  %v2444_v23 = vpop.f32.mrb[24].mxu1 }
 0x126   : > { %v758_v7 = vpop.f32.mrb[25].mxu0  ;;  %v1342_v24 = vmul.f32 %v2073_v1, %v2073_v1  ;;  %v2447_v29 = vpop.f32.mrb[25].mxu1 }
 0x127   : > { %v1267_v9 = vadd.f32 %v1266_v2, %v758_v7  ;;  %v1340_v12 = vmul.f32 %v758_v7, %v758_v7  ;;  %v1402_v13 = vadd.f32 %v1401_v0, %v1339_v61  ;;  %v2074_v14 = vpop.f32.mrb[26].mxu0  ;;  %v2449_v31 = vpop.f32.mrb[26].mxu1 }
 0x128   : > { %v1880_v15 = vpack.c.bf16 %v2074_v14, %v2073_v1  ;;  %v761_v16 = vpop.f32.mrb[27].mxu0  ;;  %v1343_v32 = vmul.f32 %v2074_v14, %v2074_v14  ;;  %v1960_v39 = vpack.c.bf16 %v2449_v31, %v2444_v23  ;;  %v2453_v40 = vpop.f32.mrb[27].mxu1 }
 0x129   : > { %v1403_v18 = vadd.f32 %v1402_v13, %v1340_v12  ;;  %v1875_v19 = vpack.c.bf16 %v761_v16, %v758_v7  ;;  %v1268_v20 = vadd.f32 %v1267_v9, %v761_v16  ;;  %v1341_v21 = vmul.f32 %v761_v16, %v761_v16 }
 0x12a   : > { %1984 = vst [vmem:[%s2345_s9 + $0x68] sm:$0xff] %v1880_v15   ;;  %v1955_v43 = vpack.c.bf16 %v2453_v40, %v2447_v29  ;;  %2000 = vst [vmem:[%s2345_s9 + $0xe8] sm:$0xff] %v1960_v39   ;;  %v1352_v39 = vmul.f32 %v2367_v10, %v2367_v10 }
 0x12b   : > { %1983 = vst [vmem:[%s2345_s9 + $0x60] sm:$0xff] %v1875_v19   ;;  %v1269_v25 = vadd.f32 %v2073_v1, %v1268_v20  ;;  %v1404_v28 = vadd.f32 %v1403_v18, %v1341_v21 }
 0x12c   : > { %1999 = vst [vmem:[%s2345_s9 + $0xe0] sm:$0xff] %v1955_v43  }
 0x12d   : > { %v1405_v33 = vadd.f32 %v1404_v28, %v1342_v24  ;;  %v2077_v37 = vpop.f32.mrb[28].mxu0  ;;  %v1270_v38 = vadd.f32 %v2074_v14, %v1269_v25  ;;  %v2460_v0 = vpop.f32.mrb[28].mxu1  ;;  %v1349_v25 = vmul.f32 %v2357_v57, %v2357_v57  ;;  %v1350_v28 = vmul.f32 %v2348_v46, %v2348_v46 }
 0x12e   : > { %v774_v42 = vpop.f32.mrb[29].mxu0  ;;  %v1346_v1 = vmul.f32 %v2077_v37, %v2077_v37  ;;  %v2463_v7 = vpop.f32.mrb[29].mxu1 }
 0x12f   : > { %v1271_v44 = vadd.f32 %v1270_v38, %v774_v42  ;;  %v1344_v45 = vmul.f32 %v774_v42, %v774_v42  ;;  %v1406_v47 = vadd.f32 %v1405_v33, %v1343_v32  ;;  %v2078_v48 = vpop.f32.mrb[30].mxu0  ;;  %v2467_v9 = vpop.f32.mrb[30].mxu1 }
 0x130   : > { %v1890_v49 = vpack.c.bf16 %v2078_v48, %v2077_v37  ;;  %v777_v52 = vpop.f32.mrb[31].mxu0  ;;  %v1347_v12 = vmul.f32 %v2078_v48, %v2078_v48  ;;  %v1970_v15 = vpack.c.bf16 %v2467_v9, %v2460_v0  ;;  %v2471_v16 = vpop.f32.mrb[31].mxu1 }
 0x131   : > { %v1407_v54 = vadd.f32 %v1406_v47, %v1344_v45  ;;  %v1885_v55 = vpack.c.bf16 %v777_v52, %v774_v42  ;;  %v1272_v56 = vadd.f32 %v1271_v44, %v777_v52  ;;  %v1345_v61 = vmul.f32 %v777_v52, %v777_v52 }
 0x132   : > { %1986 = vst [vmem:[%s2345_s9 + $0x78] sm:$0xff] %v1890_v49   ;;  %v1965_v18 = vpack.c.bf16 %v2471_v16, %v2463_v7  ;;  %2002 = vst [vmem:[%s2345_s9 + $0xf8] sm:$0xff] %v1970_v15   ;;  %v1353_v45 = vmul.f32 %v2373_v17, %v2373_v17  ;;  %v1361_v15 = vmul.f32 %v2405_v5, %v2405_v5 }
 0x133   : > { %1985 = vst [vmem:[%s2345_s9 + $0x70] sm:$0xff] %v1885_v55   ;;  %v1273_v2 = vadd.f32 %v2077_v37, %v1272_v56  ;;  %v1408_v3 = vadd.f32 %v1407_v54, %v1345_v61  ;;  %v1351_v37 = vmul.f32 %v2353_v51, %v2353_v51  ;;  %v1357_v61 = vmul.f32 %v2389_v41, %v2389_v41 }
 0x134   : > { %2001 = vst [vmem:[%s2345_s9 + $0xf0] sm:$0xff] %v1965_v18  }
 0x135   : > { %v1409_v13 = vadd.f32 %v1408_v3, %v1346_v1  ;;  %v1274_v14 = vadd.f32 %v2078_v48, %v1273_v2 }
 0x137   : > { %v1275_v19 = vadd.f32 %v1274_v14, %v2351_v50  ;;  %v1410_v20 = vadd.f32 %v1409_v13, %v1347_v12 }
 0x139   : > { %v1411_v21 = vadd.f32 %v1410_v20, %v1348_v8  ;;  %v1276_v24 = vadd.f32 %v1275_v19, %v2357_v57 }
 0x13b   : > { %v1277_v32 = vadd.f32 %v2348_v46, %v1276_v24  ;;  %v1412_v33 = vadd.f32 %v1411_v21, %v1349_v25  ;;  %v1354_v46 = vmul.f32 %v2364_v6, %v2364_v6 }
 0x13d   : > { %v1413_v38 = vadd.f32 %v1412_v33, %v1350_v28  ;;  %v1278_v50 = vadd.f32 %v2353_v51, %v1277_v32  ;;  %v1355_v51 = vmul.f32 %v2369_v11, %v2369_v11  ;;  %v1365_v32 = vmul.f32 %v2421_v36, %v2421_v36 }
 0x13f   : > { %v1279_v42 = vadd.f32 %v1278_v50, %v2367_v10  ;;  %v1414_v43 = vadd.f32 %v1413_v38, %v1351_v37  ;;  %v1356_v10 = vmul.f32 %v2383_v34, %v2383_v34 }
 0x141   : > { %v1415_v44 = vadd.f32 %v1414_v43, %v1352_v39  ;;  %v1280_v57 = vadd.f32 %v1279_v42, %v2373_v17 }
 0x143   : > { %v1281_v47 = vadd.f32 %v2364_v6, %v1280_v57  ;;  %v1416_v48 = vadd.f32 %v1415_v44, %v1353_v45  ;;  %v1358_v6 = vmul.f32 %v2380_v30, %v2380_v30  ;;  %v1369_v44 = vmul.f32 %v2437_v4, %v2437_v4 }
 0x145   : > { %v1417_v49 = vadd.f32 %v1416_v48, %v1354_v46  ;;  %v1282_v52 = vadd.f32 %v2369_v11, %v1281_v47  ;;  %v1359_v11 = vmul.f32 %v2385_v35, %v2385_v35 }
 0x147   : > { %v1283_v54 = vadd.f32 %v1282_v52, %v2383_v34  ;;  %v1418_v55 = vadd.f32 %v1417_v49, %v1355_v51  ;;  %v1360_v34 = vmul.f32 %v2399_v62, %v2399_v62  ;;  %v1373_v52 = vmul.f32 %v2453_v40, %v2453_v40 }
 0x149   : > { %v1419_v56 = vadd.f32 %v1418_v55, %v1356_v10  ;;  %v1284_v17 = vadd.f32 %v1283_v54, %v2389_v41 }
 0x14b   : > { %v1285_v1 = vadd.f32 %v2380_v30, %v1284_v17  ;;  %v1420_v2 = vadd.f32 %v1419_v56, %v1357_v61  ;;  %v1362_v30 = vmul.f32 %v2396_v58, %v2396_v58 }
 0x14d   : > { %v1421_v3 = vadd.f32 %v1420_v2, %v1358_v6  ;;  %v1286_v8 = vadd.f32 %v2385_v35, %v1285_v1  ;;  %v1363_v35 = vmul.f32 %v2401_v63, %v2401_v63  ;;  %v1377_v1 = vmul.f32 %v2471_v16, %v2471_v16 }
 0x14f   : > { %v1287_v12 = vadd.f32 %v1286_v8, %v2399_v62  ;;  %v1422_v13 = vadd.f32 %v1421_v3, %v1359_v11  ;;  %v1364_v62 = vmul.f32 %v2415_v26, %v2415_v26 }
 0x151   : > { %v1423_v14 = vadd.f32 %v1422_v13, %v1360_v34  ;;  %v1288_v41 = vadd.f32 %v1287_v12, %v2405_v5 }
 0x153   : > { %v1289_v18 = vadd.f32 %v2396_v58, %v1288_v41  ;;  %v1424_v19 = vadd.f32 %v1423_v14, %v1361_v15  ;;  %v1366_v58 = vmul.f32 %v2412_v22, %v2412_v22 }
 0x155   : > { %v1425_v20 = vadd.f32 %v1424_v19, %v1362_v30  ;;  %v1290_v21 = vadd.f32 %v2401_v63, %v1289_v18  ;;  %v1367_v63 = vmul.f32 %v2417_v27, %v2417_v27  ;;  %v1243_v18 = vld [vmem:[%s2330_s29] sm:$0x1] }
 0x157   : > { %v1291_v24 = vadd.f32 %v1290_v21, %v2415_v26  ;;  %v1426_v25 = vadd.f32 %v1425_v20, %v1363_v35  ;;  %v1368_v26 = vmul.f32 %v2431_v59, %v2431_v59  ;;  %v1315_v20 = vld [vmem:[%s2336_s6] sm:$0x1] }
 0x159   : > { %v1427_v28 = vadd.f32 %v1426_v25, %v1364_v62  ;;  %v1292_v5 = vadd.f32 %v1291_v24, %v2421_v36 }
 0x15b   : > { %v1293_v33 = vadd.f32 %v2412_v22, %v1292_v5  ;;  %v1428_v37 = vadd.f32 %v1427_v28, %v1365_v32  ;;  %v1370_v22 = vmul.f32 %v2428_v53, %v2428_v53 }
 0x15d   : > { %v1429_v38 = vadd.f32 %v1428_v37, %v1366_v58  ;;  %v1294_v50 = vadd.f32 %v2417_v27, %v1293_v33  ;;  %v1371_v27 = vmul.f32 %v2433_v60, %v2433_v60 }
 0x15f   : > { %v1295_v39 = vadd.f32 %v1294_v50, %v2431_v59  ;;  %v1430_v42 = vadd.f32 %v1429_v38, %v1367_v63  ;;  %v1372_v59 = vmul.f32 %v2447_v29, %v2447_v29 }
 0x161   : > { %v1431_v43 = vadd.f32 %v1430_v42, %v1368_v26  ;;  %v1296_v36 = vadd.f32 %v1295_v39, %v2437_v4 }
 0x163   : > { %v1297_v57 = vadd.f32 %v2428_v53, %v1296_v36  ;;  %v1432_v45 = vadd.f32 %v1431_v43, %v1369_v44  ;;  %v1374_v53 = vmul.f32 %v2444_v23, %v2444_v23 }
 0x165   : > { %v1433_v46 = vadd.f32 %v1432_v45, %v1370_v22  ;;  %v1298_v47 = vadd.f32 %v2433_v60, %v1297_v57  ;;  %v1375_v60 = vmul.f32 %v2449_v31, %v2449_v31 }
 0x167   : > { %v1299_v48 = vadd.f32 %v1298_v47, %v2447_v29  ;;  %v1434_v51 = vadd.f32 %v1433_v46, %v1371_v27  ;;  %v1376_v29 = vmul.f32 %v2463_v7, %v2463_v7 }
 0x169   : > { %v1435_v49 = vadd.f32 %v1434_v51, %v1372_v59  ;;  %v1300_v4 = vadd.f32 %v1299_v48, %v2453_v40 }
 0x16b   : > { %v1301_v10 = vadd.f32 %v2444_v23, %v1300_v4  ;;  %v1436_v54 = vadd.f32 %v1435_v49, %v1373_v52  ;;  %v1378_v23 = vmul.f32 %v2460_v0, %v2460_v0 }
 0x16d   : > { %v1437_v55 = vadd.f32 %v1436_v54, %v1374_v53  ;;  %v1302_v56 = vadd.f32 %v2449_v31, %v1301_v10  ;;  %v1379_v31 = vmul.f32 %v2467_v9, %v2467_v9 }
 0x16f   : > { %v1303_v17 = vadd.f32 %v1302_v56, %v2463_v7  ;;  %v1438_v61 = vadd.f32 %v1437_v55, %v1375_v60 }
 0x171   : > { %v1439_v6 = vadd.f32 %v1438_v61, %v1376_v29  ;;  %v1304_v40 = vadd.f32 %v1303_v17, %v2471_v16 }
 0x173   : > { %v1305_v2 = vadd.f32 %v2460_v0, %v1304_v40  ;;  %v1440_v11 = vadd.f32 %v1439_v6, %v1377_v1 }
 0x175   : > { %v1306_v7 = vadd.f32 %v2467_v9, %v1305_v2  ;;  %v1441_v3 = vadd.f32 %v1440_v11, %v1378_v23 }
 0x177   : > { %v1307_v8 = vrot.slane %v1306_v7, 4  ;;  %v1442_v34 = vadd.f32 %v1441_v3, %v1379_v31 }
 0x179   : > { %v1308_v12 = vadd.f32 %v1307_v8, %v1306_v7  ;;  %v1443_v16 = vrot.slane %v1442_v34, 4 }
 0x17b   : > { %v1309_v13 = vrot.slane %v1308_v12, 2  ;;  %v1444_v14 = vadd.f32 %v1443_v16, %v1442_v34 }
 0x17d   : > { %v1310_v41 = vadd.f32 %v1309_v13, %v1308_v12  ;;  %v1445_v15 = vrot.slane %v1444_v14, 2 }
 0x17f   : > { %v1311_v30 = vrot.slane %v1310_v41, 1  ;;  %v1446_v0 = vadd.f32 %v1445_v15, %v1444_v14 }
 0x181   : > { %v1312_v19 = vadd.f32 %v1311_v30, %v1310_v41  ;;  %v1447_v35 = vrot.slane %v1446_v0, 1 }
 0x183   : > { %v1313_v21 = vadd.f32 %v1312_v19, %v1243_v18  ;;  %v1448_v62 = vadd.f32 %v1447_v35, %v1446_v0 }
 0x185   : > { %1314 = vst [vmem:[%s2330_s29] sm:$0x1] %v1313_v21  ;;  %v1449_v9 = vadd.f32 %v1448_v62, %v1315_v20 }
 0x187   : > { %1450 = vst [vmem:[%s2336_s6] sm:$0x1] %v1449_v9 }
 0x188 PF: > { %s15_s17 = sadd.s32 1, %s2202_s17   ;;  %s2589_s15 = smov %s2198_s16 }
 0x189   : > { %p12_p5 = scmp.ge.s32.totalorder %s15_s17, 6   ;;  %s2590_s16 = smov %s2592_s18 }
 0x18b   :  { %14 = sbr.rel (!%p12_p5) target bundleno = 2 (0x2), region = 89 }

// kernel: generator_celeba_forward.16
= control target key start
LH: loop header
LB: loop body
LE: loop exit
PB: predicated region body
PF: predicated region fallthrough
CT: control target
= control target key end

     0   :  { %s2533_s12 = smov 0   ;;  %s2965_s0 = inlined_call_operand.vmem [shape: bf16[2048,128], index: 0, kind: input, shape index: {}]   ;;  %s2966_s1 = inlined_call_operand.vmem [shape: f32[1,128], index: 1, kind: input, shape index: {}]   ;;  %s2967_s2 = inlined_call_operand.vmem [shape: f32[1,128], index: 2, kind: input, shape index: {}]   ;;  %s2968_s3 = inlined_call_operand.vmem [shape: bf16[2048,128], index: 3, kind: output, shape index: {}]  }
   0x1 LB: > { %s1524_s13 = sadd.s32 4294967295, %s2511_s12   ;;  %p1528_p0 = scmp.ge.s32.totalorder %s2511_s12, 1  ;;  %s2511_s12 = sphi %s2533_s12, %s13_s12  }
   0x2   : > { %p138_p1 = scmp.lt.s32.totalorder %s2511_s12, 3 }
   0x4   : > { %p139_p2 = pnand %p1528_p0, %p138_p1 }
   0x5   : > { %s1529_s14 = sshll.u32 (!%p139_p2), %s1524_s13, 7  ;;  %v2554_v0 = vld [vmem:[%s2966_s1] ss:$0 sm:$0xff] (!%p139_p2) }
   0x6   : > { %142 = sbr.rel (%p139_p2) target bundleno = 167 (0xa7), region = 32  ;;  %p163_p3 = scmp.lt.s32.totalorder (!%p139_p2), %s1529_s14, 255  ;;  %v2563_v9 = vld [vmem:[%s2967_s2] ss:$0 sm:$0xff] (!%p139_p2) }
   0xd   : > { %s2970_s14 = smov (!%p163_p3, %s1529_s14), 255 }
   0xe   : > { %s1530_s15 = sshll.u32 %s2970_s14, 2 }
   0xf   : > { %s2549_s18 = scalar_lea.vmem %s2965_s0, %s1530_s15  ;;  %s2588_s25 = scalar_lea.vmem %s2968_s3, %s1530_s15 }
  0x10   : > { %v1794_v1 = vld [vmem:[%s2549_s18] sm:$0xff]   ;;  %v2369_v2 = vld [vmem:[%s2549_s18 + $0x8] sm:$0xff]   ;;  %v2370_v3 = vld [vmem:[%s2549_s18 + $0x10] sm:$0xff]  }
  0x11   : > { %v1795_v4 = vunpack.c.l.bf16 %v1794_v1  ;;  %v1796_v5 = vunpack.c.h.bf16 %v1794_v1  ;;  %v1799_v6 = vunpack.c.l.bf16 %v2369_v2  ;;  %v1800_v7 = vunpack.c.h.bf16 %v2369_v2  ;;  %v2371_v8 = vld [vmem:[%s2549_s18 + $0x18] sm:$0xff]   ;;  %v2372_v30 = vld [vmem:[%s2549_s18 + $0x20] sm:$0xff]   ;;  %v2373_v35 = vld [vmem:[%s2549_s18 + $0x28] sm:$0xff]  }
  0x12   : > { %v1803_v10 = vunpack.c.l.bf16 %v2370_v3  ;;  %v1804_v11 = vunpack.c.h.bf16 %v2370_v3  ;;  %v1807_v12 = vunpack.c.l.bf16 %v2371_v8  ;;  %v1808_v13 = vunpack.c.h.bf16 %v2371_v8  ;;  %v2374_v40 = vld [vmem:[%s2549_s18 + $0x30] sm:$0xff]   ;;  %v2375_v45 = vld [vmem:[%s2549_s18 + $0x38] sm:$0xff]   ;;  %v2376_v3 = vld [vmem:[%s2549_s18 + $0x40] sm:$0xff]  }
  0x13   : > { %v437_v14 = vmul.f32 %v1795_v4, %v2554_v0  ;;  %v438_v15 = vmul.f32 %v1796_v5, %v2554_v0  ;;  %v439_v16 = vmul.f32 %v1799_v6, %v2554_v0  ;;  %v440_v17 = vmul.f32 %v1800_v7, %v2554_v0 }
  0x14   : > { %v441_v18 = vmul.f32 %v1803_v10, %v2554_v0  ;;  %v442_v19 = vmul.f32 %v1804_v11, %v2554_v0  ;;  %v443_v20 = vmul.f32 %v1807_v12, %v2554_v0  ;;  %v444_v21 = vmul.f32 %v1808_v13, %v2554_v0  ;;  %v2377_v13 = vld [vmem:[%s2549_s18 + $0x48] sm:$0xff]  }
  0x15   : > { %v572_v22 = vadd.f32 %v2563_v9, %v437_v14  ;;  %v573_v23 = vadd.f32 %v2563_v9, %v438_v15  ;;  %v574_v24 = vadd.f32 %v2563_v9, %v439_v16  ;;  %v575_v25 = vadd.f32 %v2563_v9, %v440_v17 }
  0x16   : > { %v576_v26 = vadd.f32 %v2563_v9, %v441_v18  ;;  %v577_v27 = vadd.f32 %v2563_v9, %v442_v19  ;;  %v578_v28 = vadd.f32 %v2563_v9, %v443_v20  ;;  %v579_v29 = vadd.f32 %v2563_v9, %v444_v21  ;;  %v2378_v18 = vld [vmem:[%s2549_s18 + $0x50] sm:$0xff]  }
  0x17   : > { %v700_v31 = vmax.f32 %v572_v22, 0.0  ;;  %v701_v32 = vmax.f32 %v573_v23, 0.0  ;;  %v702_v33 = vmax.f32 %v574_v24, 0.0  ;;  %v703_v34 = vmax.f32 %v575_v25, 0.0  ;;  %v2379_v23 = vld [vmem:[%s2549_s18 + $0x58] sm:$0xff]  }
  0x18   : > { %v704_v36 = vmax.f32 %v576_v26, 0.0  ;;  %v705_v37 = vmax.f32 %v577_v27, 0.0  ;;  %v706_v38 = vmax.f32 %v578_v28, 0.0  ;;  %v707_v39 = vmax.f32 %v579_v29, 0.0 }
  0x19   : > { %v2052_v41 = vpack.c.bf16 %v701_v32, %v700_v31  ;;  %v2057_v42 = vpack.c.bf16 %v703_v34, %v702_v33  ;;  %v1811_v43 = vunpack.c.l.bf16 %v2372_v30  ;;  %v1812_v44 = vunpack.c.h.bf16 %v2372_v30 }
  0x1a   : > { %v2062_v46 = vpack.c.bf16 %v705_v37, %v704_v36  ;;  %v2067_v47 = vpack.c.bf16 %v707_v39, %v706_v38  ;;  %v1815_v48 = vunpack.c.l.bf16 %v2373_v35  ;;  %v1816_v49 = vunpack.c.h.bf16 %v2373_v35 }
  0x1b   : > { %2053 = vst [vmem:[%s2588_s25] sm:$0xff] %v2052_v41   ;;  %2432 = vst [vmem:[%s2588_s25 + $0x8] sm:$0xff] %v2057_v42   ;;  %v445_v50 = vmul.f32 %v1811_v43, %v2554_v0  ;;  %v446_v51 = vmul.f32 %v1812_v44, %v2554_v0  ;;  %v1819_v52 = vunpack.c.l.bf16 %v2374_v40  ;;  %v1820_v53 = vunpack.c.h.bf16 %v2374_v40  ;;  %v2380_v40 = vld [vmem:[%s2549_s18 + $0x60] sm:$0xff]  }
  0x1c   : > { %2433 = vst [vmem:[%s2588_s25 + $0x10] sm:$0xff] %v2062_v46   ;;  %2434 = vst [vmem:[%s2588_s25 + $0x18] sm:$0xff] %v2067_v47   ;;  %v447_v54 = vmul.f32 %v1815_v48, %v2554_v0  ;;  %v448_v55 = vmul.f32 %v1816_v49, %v2554_v0  ;;  %v1823_v56 = vunpack.c.l.bf16 %v2375_v45  ;;  %v1824_v57 = vunpack.c.h.bf16 %v2375_v45 }
  0x1d   : > { %v580_v58 = vadd.f32 %v2563_v9, %v445_v50  ;;  %v581_v59 = vadd.f32 %v2563_v9, %v446_v51  ;;  %v449_v60 = vmul.f32 %v1819_v52, %v2554_v0  ;;  %v450_v61 = vmul.f32 %v1820_v53, %v2554_v0  ;;  %v2381_v53 = vld [vmem:[%s2549_s18 + $0x68] sm:$0xff]  }
  0x1e   : > { %v582_v62 = vadd.f32 %v2563_v9, %v447_v54  ;;  %v583_v63 = vadd.f32 %v2563_v9, %v448_v55  ;;  %v451_v1 = vmul.f32 %v1823_v56, %v2554_v0  ;;  %v452_v2 = vmul.f32 %v1824_v57, %v2554_v0 }
  0x1f   : > { %v708_v4 = vmax.f32 %v580_v58, 0.0  ;;  %v709_v5 = vmax.f32 %v581_v59, 0.0  ;;  %v584_v6 = vadd.f32 %v2563_v9, %v449_v60  ;;  %v585_v7 = vadd.f32 %v2563_v9, %v450_v61  ;;  %v2382_v58 = vld [vmem:[%s2549_s18 + $0x70] sm:$0xff]  }
  0x20   : > { %v710_v8 = vmax.f32 %v582_v62, 0.0  ;;  %v711_v10 = vmax.f32 %v583_v63, 0.0  ;;  %v586_v11 = vadd.f32 %v2563_v9, %v451_v1  ;;  %v587_v12 = vadd.f32 %v2563_v9, %v452_v2  ;;  %v2383_v63 = vld [vmem:[%s2549_s18 + $0x78] sm:$0xff]  }
  0x21   : > { %v2072_v14 = vpack.c.bf16 %v709_v5, %v708_v4  ;;  %v712_v15 = vmax.f32 %v584_v6, 0.0  ;;  %v713_v16 = vmax.f32 %v585_v7, 0.0  ;;  %v1827_v17 = vunpack.c.l.bf16 %v2376_v3 }
  0x22   : > { %v2077_v19 = vpack.c.bf16 %v711_v10, %v710_v8  ;;  %v714_v20 = vmax.f32 %v586_v11, 0.0  ;;  %v715_v21 = vmax.f32 %v587_v12, 0.0  ;;  %v1828_v22 = vunpack.c.h.bf16 %v2376_v3 }
  0x23   : > { %2435 = vst [vmem:[%s2588_s25 + $0x20] sm:$0xff] %v2072_v14   ;;  %v2082_v24 = vpack.c.bf16 %v713_v16, %v712_v15  ;;  %v453_v25 = vmul.f32 %v1827_v17, %v2554_v0  ;;  %v1831_v26 = vunpack.c.l.bf16 %v2377_v13  ;;  %v1832_v27 = vunpack.c.h.bf16 %v2377_v13  ;;  %v2384_v14 = vld [vmem:[%s2549_s18 + $0x80] sm:$0xff]  }
  0x24   : > { %2436 = vst [vmem:[%s2588_s25 + $0x28] sm:$0xff] %v2077_v19   ;;  %v2087_v28 = vpack.c.bf16 %v715_v21, %v714_v20  ;;  %v454_v29 = vmul.f32 %v1828_v22, %v2554_v0  ;;  %v1835_v30 = vunpack.c.l.bf16 %v2378_v18  ;;  %v1836_v31 = vunpack.c.h.bf16 %v2378_v18 }
  0x25   : > { %2437 = vst [vmem:[%s2588_s25 + $0x30] sm:$0xff] %v2082_v24   ;;  %v588_v32 = vadd.f32 %v2563_v9, %v453_v25  ;;  %v455_v33 = vmul.f32 %v1831_v26, %v2554_v0  ;;  %v456_v34 = vmul.f32 %v1832_v27, %v2554_v0  ;;  %v1839_v35 = vunpack.c.l.bf16 %v2379_v23 }
  0x26   : > { %2438 = vst [vmem:[%s2588_s25 + $0x38] sm:$0xff] %v2087_v28   ;;  %v589_v36 = vadd.f32 %v2563_v9, %v454_v29  ;;  %v457_v37 = vmul.f32 %v1835_v30, %v2554_v0  ;;  %v458_v38 = vmul.f32 %v1836_v31, %v2554_v0  ;;  %v1840_v39 = vunpack.c.h.bf16 %v2379_v23  ;;  %v2385_v31 = vld [vmem:[%s2549_s18 + $0x88] sm:$0xff]  }
  0x27   : > { %v716_v41 = vmax.f32 %v588_v32, 0.0  ;;  %v590_v42 = vadd.f32 %v2563_v9, %v455_v33  ;;  %v591_v43 = vadd.f32 %v2563_v9, %v456_v34  ;;  %v459_v44 = vmul.f32 %v1839_v35, %v2554_v0 }
  0x28   : > { %v717_v45 = vmax.f32 %v589_v36, 0.0  ;;  %v592_v46 = vadd.f32 %v2563_v9, %v457_v37  ;;  %v593_v47 = vadd.f32 %v2563_v9, %v458_v38  ;;  %v460_v48 = vmul.f32 %v1840_v39, %v2554_v0  ;;  %v2386_v36 = vld [vmem:[%s2549_s18 + $0x90] sm:$0xff]  }
  0x29   : > { %v718_v49 = vmax.f32 %v590_v42, 0.0  ;;  %v719_v50 = vmax.f32 %v591_v43, 0.0  ;;  %v594_v51 = vadd.f32 %v2563_v9, %v459_v44  ;;  %v1843_v52 = vunpack.c.l.bf16 %v2380_v40 }
  0x2a   : > { %v2092_v54 = vpack.c.bf16 %v717_v45, %v716_v41  ;;  %v720_v55 = vmax.f32 %v592_v46, 0.0  ;;  %v721_v56 = vmax.f32 %v593_v47, 0.0  ;;  %v595_v57 = vadd.f32 %v2563_v9, %v460_v48  ;;  %v2387_v41 = vld [vmem:[%s2549_s18 + $0x98] sm:$0xff]  }
  0x2b   : > { %v2097_v59 = vpack.c.bf16 %v719_v50, %v718_v49  ;;  %v722_v60 = vmax.f32 %v594_v51, 0.0  ;;  %v1844_v61 = vunpack.c.h.bf16 %v2380_v40  ;;  %v461_v62 = vmul.f32 %v1843_v52, %v2554_v0 }
  0x2c   : > { %2439 = vst [vmem:[%s2588_s25 + $0x40] sm:$0xff] %v2092_v54   ;;  %v2102_v1 = vpack.c.bf16 %v721_v56, %v720_v55  ;;  %v723_v2 = vmax.f32 %v595_v57, 0.0  ;;  %v1847_v3 = vunpack.c.l.bf16 %v2381_v53  ;;  %v1848_v4 = vunpack.c.h.bf16 %v2381_v53  ;;  %v2388_v54 = vld [vmem:[%s2549_s18 + $0xa0] sm:$0xff]  }
  0x2d   : > { %2440 = vst [vmem:[%s2588_s25 + $0x48] sm:$0xff] %v2097_v59   ;;  %v462_v5 = vmul.f32 %v1844_v61, %v2554_v0  ;;  %v596_v6 = vadd.f32 %v2563_v9, %v461_v62  ;;  %v1851_v7 = vunpack.c.l.bf16 %v2382_v58  ;;  %v1852_v8 = vunpack.c.h.bf16 %v2382_v58 }
  0x2e   : > { %2441 = vst [vmem:[%s2588_s25 + $0x50] sm:$0xff] %v2102_v1   ;;  %v2107_v10 = vpack.c.bf16 %v723_v2, %v722_v60  ;;  %v463_v11 = vmul.f32 %v1847_v3, %v2554_v0  ;;  %v464_v12 = vmul.f32 %v1848_v4, %v2554_v0  ;;  %v1855_v13 = vunpack.c.l.bf16 %v2383_v63  ;;  %v2389_v4 = vld [vmem:[%s2549_s18 + $0xa8] sm:$0xff]  }
  0x2f   : > { %v597_v15 = vadd.f32 %v2563_v9, %v462_v5  ;;  %v724_v16 = vmax.f32 %v596_v6, 0.0  ;;  %v465_v17 = vmul.f32 %v1851_v7, %v2554_v0  ;;  %v466_v18 = vmul.f32 %v1852_v8, %v2554_v0 }
  0x30   : > { %2442 = vst [vmem:[%s2588_s25 + $0x58] sm:$0xff] %v2107_v10   ;;  %v598_v19 = vadd.f32 %v2563_v9, %v463_v11  ;;  %v599_v20 = vadd.f32 %v2563_v9, %v464_v12  ;;  %v1856_v21 = vunpack.c.h.bf16 %v2383_v63  ;;  %v467_v22 = vmul.f32 %v1855_v13, %v2554_v0 }
  0x31   : > { %v725_v23 = vmax.f32 %v597_v15, 0.0  ;;  %v600_v24 = vadd.f32 %v2563_v9, %v465_v17  ;;  %v601_v25 = vadd.f32 %v2563_v9, %v466_v18  ;;  %v1859_v26 = vunpack.c.l.bf16 %v2384_v14 }
  0x32   : > { %v726_v27 = vmax.f32 %v598_v19, 0.0  ;;  %v727_v28 = vmax.f32 %v599_v20, 0.0  ;;  %v468_v29 = vmul.f32 %v1856_v21, %v2554_v0  ;;  %v602_v30 = vadd.f32 %v2563_v9, %v467_v22  ;;  %v2391_v19 = vld [vmem:[%s2549_s18 + $0xb8] sm:$0xff]  }
  0x33   : > { %v2112_v32 = vpack.c.bf16 %v725_v23, %v724_v16  ;;  %v728_v33 = vmax.f32 %v600_v24, 0.0  ;;  %v729_v34 = vmax.f32 %v601_v25, 0.0  ;;  %v1860_v35 = vunpack.c.h.bf16 %v2384_v14  ;;  %v2390_v14 = vld [vmem:[%s2549_s18 + $0xb0] sm:$0xff]  }
  0x34   : > { %v2117_v37 = vpack.c.bf16 %v727_v28, %v726_v27  ;;  %v603_v38 = vadd.f32 %v2563_v9, %v468_v29  ;;  %v730_v39 = vmax.f32 %v602_v30, 0.0  ;;  %v469_v40 = vmul.f32 %v1859_v26, %v2554_v0 }
  0x35   : > { %2443 = vst [vmem:[%s2588_s25 + $0x60] sm:$0xff] %v2112_v32   ;;  %v2122_v42 = vpack.c.bf16 %v729_v34, %v728_v33  ;;  %v470_v43 = vmul.f32 %v1860_v35, %v2554_v0  ;;  %v1863_v44 = vunpack.c.l.bf16 %v2385_v31  ;;  %v1864_v45 = vunpack.c.h.bf16 %v2385_v31  ;;  %v2392_v32 = vld [vmem:[%s2549_s18 + $0xc0] sm:$0xff]  }
  0x36   : > { %2444 = vst [vmem:[%s2588_s25 + $0x68] sm:$0xff] %v2117_v37   ;;  %v731_v46 = vmax.f32 %v603_v38, 0.0  ;;  %v604_v47 = vadd.f32 %v2563_v9, %v469_v40  ;;  %v1867_v48 = vunpack.c.l.bf16 %v2386_v36  ;;  %v1868_v49 = vunpack.c.h.bf16 %v2386_v36 }
  0x37   : > { %2445 = vst [vmem:[%s2588_s25 + $0x70] sm:$0xff] %v2122_v42   ;;  %v605_v50 = vadd.f32 %v2563_v9, %v470_v43  ;;  %v471_v51 = vmul.f32 %v1863_v44, %v2554_v0  ;;  %v472_v52 = vmul.f32 %v1864_v45, %v2554_v0  ;;  %v1871_v53 = vunpack.c.l.bf16 %v2387_v41  ;;  %v2393_v45 = vld [vmem:[%s2549_s18 + $0xc8] sm:$0xff]  }
  0x38   : > { %v2127_v55 = vpack.c.bf16 %v731_v46, %v730_v39  ;;  %v732_v56 = vmax.f32 %v604_v47, 0.0  ;;  %v473_v57 = vmul.f32 %v1867_v48, %v2554_v0  ;;  %v474_v58 = vmul.f32 %v1868_v49, %v2554_v0 }
  0x39   : > { %v733_v59 = vmax.f32 %v605_v50, 0.0  ;;  %v606_v60 = vadd.f32 %v2563_v9, %v471_v51  ;;  %v607_v61 = vadd.f32 %v2563_v9, %v472_v52  ;;  %v1872_v62 = vunpack.c.h.bf16 %v2387_v41 }
  0x3a   : > { %2446 = vst [vmem:[%s2588_s25 + $0x78] sm:$0xff] %v2127_v55   ;;  %v608_v63 = vadd.f32 %v2563_v9, %v473_v57  ;;  %v609_v1 = vadd.f32 %v2563_v9, %v474_v58  ;;  %v475_v2 = vmul.f32 %v1871_v53, %v2554_v0  ;;  %v1875_v3 = vunpack.c.l.bf16 %v2388_v54 }
  0x3b   : > { %v2132_v5 = vpack.c.bf16 %v733_v59, %v732_v56  ;;  %v734_v6 = vmax.f32 %v606_v60, 0.0  ;;  %v735_v7 = vmax.f32 %v607_v61, 0.0  ;;  %v476_v8 = vmul.f32 %v1872_v62, %v2554_v0 }
  0x3c   : > { %v736_v10 = vmax.f32 %v608_v63, 0.0  ;;  %v737_v11 = vmax.f32 %v609_v1, 0.0  ;;  %v610_v12 = vadd.f32 %v2563_v9, %v475_v2  ;;  %v1876_v13 = vunpack.c.h.bf16 %v2388_v54  ;;  %v2394_v54 = vld [vmem:[%s2549_s18 + $0xd0] sm:$0xff]   ;;  %v2395_v63 = vld [vmem:[%s2549_s18 + $0xd8] sm:$0xff]  }
  0x3d   : > { %2447 = vst [vmem:[%s2588_s25 + $0x80] sm:$0xff] %v2132_v5   ;;  %v2137_v15 = vpack.c.bf16 %v735_v7, %v734_v6  ;;  %v611_v16 = vadd.f32 %v2563_v9, %v476_v8  ;;  %v477_v17 = vmul.f32 %v1875_v3, %v2554_v0  ;;  %v1879_v18 = vunpack.c.l.bf16 %v2389_v4 }
  0x3e   : > { %v2142_v20 = vpack.c.bf16 %v737_v11, %v736_v10  ;;  %v738_v21 = vmax.f32 %v610_v12, 0.0  ;;  %v478_v22 = vmul.f32 %v1876_v13, %v2554_v0  ;;  %v1880_v23 = vunpack.c.h.bf16 %v2389_v4  ;;  %v2396_v10 = vld [vmem:[%s2549_s18 + $0xe0] sm:$0xff]  }
  0x3f   : > { %2448 = vst [vmem:[%s2588_s25 + $0x88] sm:$0xff] %v2137_v15   ;;  %v739_v24 = vmax.f32 %v611_v16, 0.0  ;;  %v612_v25 = vadd.f32 %v2563_v9, %v477_v17  ;;  %v479_v26 = vmul.f32 %v1879_v18, %v2554_v0  ;;  %v1883_v27 = vunpack.c.l.bf16 %v2390_v14 }
  0x40   : > { %2449 = vst [vmem:[%s2588_s25 + $0x90] sm:$0xff] %v2142_v20   ;;  %v613_v28 = vadd.f32 %v2563_v9, %v478_v22  ;;  %v480_v29 = vmul.f32 %v1880_v23, %v2554_v0  ;;  %v1884_v30 = vunpack.c.h.bf16 %v2390_v14  ;;  %v1887_v31 = vunpack.c.l.bf16 %v2391_v19  ;;  %v2397_v23 = vld [vmem:[%s2549_s18 + $0xe8] sm:$0xff]  }
  0x41   : > { %v2147_v33 = vpack.c.bf16 %v739_v24, %v738_v21  ;;  %v740_v34 = vmax.f32 %v612_v25, 0.0  ;;  %v614_v35 = vadd.f32 %v2563_v9, %v479_v26  ;;  %v481_v36 = vmul.f32 %v1883_v27, %v2554_v0 }
  0x42   : > { %v741_v37 = vmax.f32 %v613_v28, 0.0  ;;  %v615_v38 = vadd.f32 %v2563_v9, %v480_v29  ;;  %v482_v39 = vmul.f32 %v1884_v30, %v2554_v0  ;;  %v1888_v40 = vunpack.c.h.bf16 %v2391_v19 }
  0x43   : > { %2450 = vst [vmem:[%s2588_s25 + $0x98] sm:$0xff] %v2147_v33   ;;  %v742_v41 = vmax.f32 %v614_v35, 0.0  ;;  %v616_v42 = vadd.f32 %v2563_v9, %v481_v36  ;;  %v483_v43 = vmul.f32 %v1887_v31, %v2554_v0  ;;  %v1891_v44 = vunpack.c.l.bf16 %v2392_v32 }
  0x44   : > { %v2152_v46 = vpack.c.bf16 %v741_v37, %v740_v34  ;;  %v743_v47 = vmax.f32 %v615_v38, 0.0  ;;  %v617_v48 = vadd.f32 %v2563_v9, %v482_v39  ;;  %v484_v49 = vmul.f32 %v1888_v40, %v2554_v0 }
  0x45   : > { %v744_v50 = vmax.f32 %v616_v42, 0.0  ;;  %v618_v51 = vadd.f32 %v2563_v9, %v483_v43  ;;  %v1892_v52 = vunpack.c.h.bf16 %v2392_v32  ;;  %v485_v53 = vmul.f32 %v1891_v44, %v2554_v0  ;;  %v2398_v32 = vld [vmem:[%s2549_s18 + $0xf0] sm:$0xff]  }
  0x46   : > { %2451 = vst [vmem:[%s2588_s25 + $0xa0] sm:$0xff] %v2152_v46   ;;  %v2157_v55 = vpack.c.bf16 %v743_v47, %v742_v41  ;;  %v745_v56 = vmax.f32 %v617_v48, 0.0  ;;  %v619_v57 = vadd.f32 %v2563_v9, %v484_v49  ;;  %v1895_v58 = vunpack.c.l.bf16 %v2393_v45  ;;  %v2399_v41 = vld [vmem:[%s2549_s18 + $0xf8] sm:$0xff]  }
  0x47   : > { %v746_v59 = vmax.f32 %v618_v51, 0.0  ;;  %v486_v60 = vmul.f32 %v1892_v52, %v2554_v0  ;;  %v620_v61 = vadd.f32 %v2563_v9, %v485_v53  ;;  %v1896_v62 = vunpack.c.h.bf16 %v2393_v45 }
  0x48   : > { %2452 = vst [vmem:[%s2588_s25 + $0xa8] sm:$0xff] %v2157_v55   ;;  %v2162_v1 = vpack.c.bf16 %v745_v56, %v744_v50  ;;  %v747_v2 = vmax.f32 %v619_v57, 0.0  ;;  %v487_v3 = vmul.f32 %v1895_v58, %v2554_v0  ;;  %v1899_v4 = vunpack.c.l.bf16 %v2394_v54  ;;  %v2400_v50 = vld [vmem:[%s2549_s18 + $0x100] sm:$0xff]  }
  0x49   : > { %v621_v5 = vadd.f32 %v2563_v9, %v486_v60  ;;  %v748_v6 = vmax.f32 %v620_v61, 0.0  ;;  %v488_v7 = vmul.f32 %v1896_v62, %v2554_v0  ;;  %v1900_v8 = vunpack.c.h.bf16 %v2394_v54 }
  0x4a   : > { %2453 = vst [vmem:[%s2588_s25 + $0xb0] sm:$0xff] %v2162_v1   ;;  %v2167_v11 = vpack.c.bf16 %v747_v2, %v746_v59  ;;  %v622_v12 = vadd.f32 %v2563_v9, %v487_v3  ;;  %v489_v13 = vmul.f32 %v1899_v4, %v2554_v0  ;;  %v1903_v14 = vunpack.c.l.bf16 %v2395_v63 }
  0x4b   : > { %v749_v15 = vmax.f32 %v621_v5, 0.0  ;;  %v623_v16 = vadd.f32 %v2563_v9, %v488_v7  ;;  %v490_v17 = vmul.f32 %v1900_v8, %v2554_v0  ;;  %v1904_v18 = vunpack.c.h.bf16 %v2395_v63  ;;  %v2401_v63 = vld [vmem:[%s2549_s18 + $0x108] sm:$0xff]  }
  0x4c   : > { %2454 = vst [vmem:[%s2588_s25 + $0xb8] sm:$0xff] %v2167_v11   ;;  %v750_v19 = vmax.f32 %v622_v12, 0.0  ;;  %v624_v20 = vadd.f32 %v2563_v9, %v489_v13  ;;  %v491_v21 = vmul.f32 %v1903_v14, %v2554_v0  ;;  %v1907_v22 = vunpack.c.l.bf16 %v2396_v10 }
  0x4d   : > { %v2172_v24 = vpack.c.bf16 %v749_v15, %v748_v6  ;;  %v751_v25 = vmax.f32 %v623_v16, 0.0  ;;  %v625_v26 = vadd.f32 %v2563_v9, %v490_v17  ;;  %v492_v27 = vmul.f32 %v1904_v18, %v2554_v0 }
  0x4e   : > { %v752_v28 = vmax.f32 %v624_v20, 0.0  ;;  %v626_v29 = vadd.f32 %v2563_v9, %v491_v21  ;;  %v1908_v30 = vunpack.c.h.bf16 %v2396_v10  ;;  %v493_v31 = vmul.f32 %v1907_v22, %v2554_v0  ;;  %v2402_v10 = vld [vmem:[%s2549_s18 + $0x110] sm:$0xff]  }
  0x4f   : > { %2455 = vst [vmem:[%s2588_s25 + $0xc0] sm:$0xff] %v2172_v24   ;;  %v2177_v33 = vpack.c.bf16 %v751_v25, %v750_v19  ;;  %v753_v34 = vmax.f32 %v625_v26, 0.0  ;;  %v627_v35 = vadd.f32 %v2563_v9, %v492_v27  ;;  %v1911_v36 = vunpack.c.l.bf16 %v2397_v23  ;;  %v2403_v19 = vld [vmem:[%s2549_s18 + $0x118] sm:$0xff]  }
  0x50   : > { %v754_v37 = vmax.f32 %v626_v29, 0.0  ;;  %v494_v38 = vmul.f32 %v1908_v30, %v2554_v0  ;;  %v628_v39 = vadd.f32 %v2563_v9, %v493_v31  ;;  %v1912_v40 = vunpack.c.h.bf16 %v2397_v23 }
  0x51   : > { %2456 = vst [vmem:[%s2588_s25 + $0xc8] sm:$0xff] %v2177_v33   ;;  %v2182_v42 = vpack.c.bf16 %v753_v34, %v752_v28  ;;  %v755_v43 = vmax.f32 %v627_v35, 0.0  ;;  %v495_v44 = vmul.f32 %v1911_v36, %v2554_v0  ;;  %v1915_v45 = vunpack.c.l.bf16 %v2398_v32  ;;  %v2404_v28 = vld [vmem:[%s2549_s18 + $0x120] sm:$0xff]  }
  0x52   : > { %v629_v46 = vadd.f32 %v2563_v9, %v494_v38  ;;  %v756_v47 = vmax.f32 %v628_v39, 0.0  ;;  %v496_v48 = vmul.f32 %v1912_v40, %v2554_v0  ;;  %v1916_v49 = vunpack.c.h.bf16 %v2398_v32 }
  0x53   : > { %2457 = vst [vmem:[%s2588_s25 + $0xd0] sm:$0xff] %v2182_v42   ;;  %v2187_v51 = vpack.c.bf16 %v755_v43, %v754_v37  ;;  %v630_v52 = vadd.f32 %v2563_v9, %v495_v44  ;;  %v497_v53 = vmul.f32 %v1915_v45, %v2554_v0  ;;  %v1919_v54 = vunpack.c.l.bf16 %v2399_v41 }
  0x54   : > { %v757_v55 = vmax.f32 %v629_v46, 0.0  ;;  %v631_v56 = vadd.f32 %v2563_v9, %v496_v48  ;;  %v498_v57 = vmul.f32 %v1916_v49, %v2554_v0  ;;  %v1920_v58 = vunpack.c.h.bf16 %v2399_v41  ;;  %v2405_v41 = vld [vmem:[%s2549_s18 + $0x128] sm:$0xff]  }
  0x55   : > { %2458 = vst [vmem:[%s2588_s25 + $0xd8] sm:$0xff] %v2187_v51   ;;  %v758_v59 = vmax.f32 %v630_v52, 0.0  ;;  %v632_v60 = vadd.f32 %v2563_v9, %v497_v53  ;;  %v499_v61 = vmul.f32 %v1919_v54, %v2554_v0  ;;  %v1923_v62 = vunpack.c.l.bf16 %v2400_v50 }
  0x56   : > { %v2192_v1 = vpack.c.bf16 %v757_v55, %v756_v47  ;;  %v759_v2 = vmax.f32 %v631_v56, 0.0  ;;  %v633_v3 = vadd.f32 %v2563_v9, %v498_v57  ;;  %v500_v4 = vmul.f32 %v1920_v58, %v2554_v0 }
  0x57   : > { %v760_v5 = vmax.f32 %v632_v60, 0.0  ;;  %v634_v6 = vadd.f32 %v2563_v9, %v499_v61  ;;  %v1924_v7 = vunpack.c.h.bf16 %v2400_v50  ;;  %v501_v8 = vmul.f32 %v1923_v62, %v2554_v0  ;;  %v2406_v50 = vld [vmem:[%s2549_s18 + $0x130] sm:$0xff]  }
  0x58   : > { %2459 = vst [vmem:[%s2588_s25 + $0xe0] sm:$0xff] %v2192_v1   ;;  %v2197_v11 = vpack.c.bf16 %v759_v2, %v758_v59  ;;  %v761_v12 = vmax.f32 %v633_v3, 0.0  ;;  %v635_v13 = vadd.f32 %v2563_v9, %v500_v4  ;;  %v1927_v14 = vunpack.c.l.bf16 %v2401_v63  ;;  %v2407_v59 = vld [vmem:[%s2549_s18 + $0x138] sm:$0xff]  }
  0x59   : > { %v762_v15 = vmax.f32 %v634_v6, 0.0  ;;  %v502_v16 = vmul.f32 %v1924_v7, %v2554_v0  ;;  %v636_v17 = vadd.f32 %v2563_v9, %v501_v8  ;;  %v1928_v18 = vunpack.c.h.bf16 %v2401_v63 }
  0x5a   : > { %2460 = vst [vmem:[%s2588_s25 + $0xe8] sm:$0xff] %v2197_v11   ;;  %v2202_v20 = vpack.c.bf16 %v761_v12, %v760_v5  ;;  %v763_v21 = vmax.f32 %v635_v13, 0.0  ;;  %v503_v22 = vmul.f32 %v1927_v14, %v2554_v0  ;;  %v1931_v23 = vunpack.c.l.bf16 %v2402_v10  ;;  %v2408_v5 = vld [vmem:[%s2549_s18 + $0x140] sm:$0xff]  }
  0x5b   : > { %v637_v24 = vadd.f32 %v2563_v9, %v502_v16  ;;  %v764_v25 = vmax.f32 %v636_v17, 0.0  ;;  %v504_v26 = vmul.f32 %v1928_v18, %v2554_v0  ;;  %v1932_v27 = vunpack.c.h.bf16 %v2402_v10 }
  0x5c   : > { %2461 = vst [vmem:[%s2588_s25 + $0xf0] sm:$0xff] %v2202_v20   ;;  %v2207_v29 = vpack.c.bf16 %v763_v21, %v762_v15  ;;  %v638_v30 = vadd.f32 %v2563_v9, %v503_v22  ;;  %v505_v31 = vmul.f32 %v1931_v23, %v2554_v0  ;;  %v1935_v32 = vunpack.c.l.bf16 %v2403_v19 }
  0x5d   : > { %v765_v33 = vmax.f32 %v637_v24, 0.0  ;;  %v639_v34 = vadd.f32 %v2563_v9, %v504_v26  ;;  %v506_v35 = vmul.f32 %v1932_v27, %v2554_v0  ;;  %v1936_v36 = vunpack.c.h.bf16 %v2403_v19  ;;  %v2409_v19 = vld [vmem:[%s2549_s18 + $0x148] sm:$0xff]  }
  0x5e   : > { %2462 = vst [vmem:[%s2588_s25 + $0xf8] sm:$0xff] %v2207_v29   ;;  %v766_v37 = vmax.f32 %v638_v30, 0.0  ;;  %v640_v38 = vadd.f32 %v2563_v9, %v505_v31  ;;  %v507_v39 = vmul.f32 %v1935_v32, %v2554_v0  ;;  %v1939_v40 = vunpack.c.l.bf16 %v2404_v28 }
  0x5f   : > { %v2212_v42 = vpack.c.bf16 %v765_v33, %v764_v25  ;;  %v767_v43 = vmax.f32 %v639_v34, 0.0  ;;  %v641_v44 = vadd.f32 %v2563_v9, %v506_v35  ;;  %v508_v45 = vmul.f32 %v1936_v36, %v2554_v0 }
  0x60   : > { %v768_v46 = vmax.f32 %v640_v38, 0.0  ;;  %v642_v47 = vadd.f32 %v2563_v9, %v507_v39  ;;  %v1940_v48 = vunpack.c.h.bf16 %v2404_v28  ;;  %v509_v49 = vmul.f32 %v1939_v40, %v2554_v0  ;;  %v2410_v28 = vld [vmem:[%s2549_s18 + $0x150] sm:$0xff]  }
  0x61   : > { %2463 = vst [vmem:[%s2588_s25 + $0x100] sm:$0xff] %v2212_v42   ;;  %v2217_v51 = vpack.c.bf16 %v767_v43, %v766_v37  ;;  %v769_v52 = vmax.f32 %v641_v44, 0.0  ;;  %v643_v53 = vadd.f32 %v2563_v9, %v508_v45  ;;  %v1943_v54 = vunpack.c.l.bf16 %v2405_v41  ;;  %v2411_v37 = vld [vmem:[%s2549_s18 + $0x158] sm:$0xff]  }
  0x62   : > { %v770_v55 = vmax.f32 %v642_v47, 0.0  ;;  %v510_v56 = vmul.f32 %v1940_v48, %v2554_v0  ;;  %v644_v57 = vadd.f32 %v2563_v9, %v509_v49  ;;  %v1944_v58 = vunpack.c.h.bf16 %v2405_v41 }
  0x63   : > { %2464 = vst [vmem:[%s2588_s25 + $0x108] sm:$0xff] %v2217_v51   ;;  %v2222_v60 = vpack.c.bf16 %v769_v52, %v768_v46  ;;  %v771_v61 = vmax.f32 %v643_v53, 0.0  ;;  %v511_v62 = vmul.f32 %v1943_v54, %v2554_v0  ;;  %v1947_v63 = vunpack.c.l.bf16 %v2406_v50  ;;  %v2412_v46 = vld [vmem:[%s2549_s18 + $0x160] sm:$0xff]  }
  0x64   : > { %v645_v1 = vadd.f32 %v2563_v9, %v510_v56  ;;  %v772_v2 = vmax.f32 %v644_v57, 0.0  ;;  %v512_v3 = vmul.f32 %v1944_v58, %v2554_v0  ;;  %v1948_v4 = vunpack.c.h.bf16 %v2406_v50 }
  0x65   : > { %2465 = vst [vmem:[%s2588_s25 + $0x110] sm:$0xff] %v2222_v60   ;;  %v2227_v6 = vpack.c.bf16 %v771_v61, %v770_v55  ;;  %v646_v7 = vadd.f32 %v2563_v9, %v511_v62  ;;  %v513_v8 = vmul.f32 %v1947_v63, %v2554_v0  ;;  %v1951_v10 = vunpack.c.l.bf16 %v2407_v59 }
  0x66   : > { %v773_v11 = vmax.f32 %v645_v1, 0.0  ;;  %v647_v12 = vadd.f32 %v2563_v9, %v512_v3  ;;  %v514_v13 = vmul.f32 %v1948_v4, %v2554_v0  ;;  %v1952_v14 = vunpack.c.h.bf16 %v2407_v59  ;;  %v2413_v59 = vld [vmem:[%s2549_s18 + $0x168] sm:$0xff]  }
  0x67   : > { %2466 = vst [vmem:[%s2588_s25 + $0x118] sm:$0xff] %v2227_v6   ;;  %v774_v15 = vmax.f32 %v646_v7, 0.0  ;;  %v648_v16 = vadd.f32 %v2563_v9, %v513_v8  ;;  %v515_v17 = vmul.f32 %v1951_v10, %v2554_v0  ;;  %v1955_v18 = vunpack.c.l.bf16 %v2408_v5 }
  0x68   : > { %v2232_v20 = vpack.c.bf16 %v773_v11, %v772_v2  ;;  %v775_v21 = vmax.f32 %v647_v12, 0.0  ;;  %v649_v22 = vadd.f32 %v2563_v9, %v514_v13  ;;  %v516_v23 = vmul.f32 %v1952_v14, %v2554_v0 }
  0x69   : > { %v776_v24 = vmax.f32 %v648_v16, 0.0  ;;  %v650_v25 = vadd.f32 %v2563_v9, %v515_v17  ;;  %v1956_v26 = vunpack.c.h.bf16 %v2408_v5  ;;  %v517_v27 = vmul.f32 %v1955_v18, %v2554_v0  ;;  %v2414_v5 = vld [vmem:[%s2549_s18 + $0x170] sm:$0xff]  }
  0x6a   : > { %2467 = vst [vmem:[%s2588_s25 + $0x120] sm:$0xff] %v2232_v20   ;;  %v2237_v29 = vpack.c.bf16 %v775_v21, %v774_v15  ;;  %v777_v30 = vmax.f32 %v649_v22, 0.0  ;;  %v651_v31 = vadd.f32 %v2563_v9, %v516_v23  ;;  %v1959_v32 = vunpack.c.l.bf16 %v2409_v19  ;;  %v2415_v15 = vld [vmem:[%s2549_s18 + $0x178] sm:$0xff]  }
  0x6b   : > { %v778_v33 = vmax.f32 %v650_v25, 0.0  ;;  %v518_v34 = vmul.f32 %v1956_v26, %v2554_v0  ;;  %v652_v35 = vadd.f32 %v2563_v9, %v517_v27  ;;  %v1960_v36 = vunpack.c.h.bf16 %v2409_v19 }
  0x6c   : > { %2468 = vst [vmem:[%s2588_s25 + $0x128] sm:$0xff] %v2237_v29   ;;  %v2242_v38 = vpack.c.bf16 %v777_v30, %v776_v24  ;;  %v779_v39 = vmax.f32 %v651_v31, 0.0  ;;  %v519_v40 = vmul.f32 %v1959_v32, %v2554_v0  ;;  %v1963_v41 = vunpack.c.l.bf16 %v2410_v28  ;;  %v2416_v24 = vld [vmem:[%s2549_s18 + $0x180] sm:$0xff]  }
  0x6d   : > { %v653_v42 = vadd.f32 %v2563_v9, %v518_v34  ;;  %v780_v43 = vmax.f32 %v652_v35, 0.0  ;;  %v520_v44 = vmul.f32 %v1960_v36, %v2554_v0  ;;  %v1964_v45 = vunpack.c.h.bf16 %v2410_v28  ;;  %v2851_v35 = vld [vmem:[%s2966_s1] ss:$0 sm:$0xff] }
  0x6e   : > { %2469 = vst [vmem:[%s2588_s25 + $0x130] sm:$0xff] %v2242_v38   ;;  %v2247_v47 = vpack.c.bf16 %v779_v39, %v778_v33  ;;  %v654_v48 = vadd.f32 %v2563_v9, %v519_v40  ;;  %v521_v49 = vmul.f32 %v1963_v41, %v2554_v0  ;;  %v1967_v50 = vunpack.c.l.bf16 %v2411_v37  ;;  %v2417_v38 = vld [vmem:[%s2549_s18 + $0x188] sm:$0xff]  }
  0x6f   : > { %v781_v51 = vmax.f32 %v653_v42, 0.0  ;;  %v655_v52 = vadd.f32 %v2563_v9, %v520_v44  ;;  %v522_v53 = vmul.f32 %v1964_v45, %v2554_v0  ;;  %v1968_v54 = vunpack.c.h.bf16 %v2411_v37 }
  0x70   : > { %2470 = vst [vmem:[%s2588_s25 + $0x138] sm:$0xff] %v2247_v47   ;;  %v782_v55 = vmax.f32 %v654_v48, 0.0  ;;  %v656_v56 = vadd.f32 %v2563_v9, %v521_v49  ;;  %v523_v57 = vmul.f32 %v1967_v50, %v2554_v0  ;;  %v1971_v58 = vunpack.c.l.bf16 %v2412_v46  ;;  %v2418_v47 = vld [vmem:[%s2549_s18 + $0x190] sm:$0xff]  }
  0x71   : > { %v2252_v60 = vpack.c.bf16 %v781_v51, %v780_v43  ;;  %v783_v61 = vmax.f32 %v655_v52, 0.0  ;;  %v657_v62 = vadd.f32 %v2563_v9, %v522_v53  ;;  %v524_v63 = vmul.f32 %v1968_v54, %v2554_v0  ;;  %v2860_v43 = vld [vmem:[%s2967_s2] ss:$0 sm:$0xff] }
  0x72   : > { %v784_v1 = vmax.f32 %v656_v56, 0.0  ;;  %v658_v2 = vadd.f32 %v2563_v9, %v523_v57  ;;  %v1972_v3 = vunpack.c.h.bf16 %v2412_v46  ;;  %v525_v4 = vmul.f32 %v1971_v58, %v2554_v0 }
  0x73   : > { %2471 = vst [vmem:[%s2588_s25 + $0x140] sm:$0xff] %v2252_v60   ;;  %v2257_v6 = vpack.c.bf16 %v783_v61, %v782_v55  ;;  %v785_v7 = vmax.f32 %v657_v62, 0.0  ;;  %v659_v8 = vadd.f32 %v2563_v9, %v524_v63  ;;  %v1975_v10 = vunpack.c.l.bf16 %v2413_v59  ;;  %v2419_v55 = vld [vmem:[%s2549_s18 + $0x198] sm:$0xff]  }
  0x74   : > { %v786_v11 = vmax.f32 %v658_v2, 0.0  ;;  %v526_v12 = vmul.f32 %v1972_v3, %v2554_v0  ;;  %v660_v13 = vadd.f32 %v2563_v9, %v525_v4  ;;  %v1976_v14 = vunpack.c.h.bf16 %v2413_v59 }
  0x75   : > { %2472 = vst [vmem:[%s2588_s25 + $0x148] sm:$0xff] %v2257_v6   ;;  %v2262_v16 = vpack.c.bf16 %v785_v7, %v784_v1  ;;  %v787_v17 = vmax.f32 %v659_v8, 0.0  ;;  %v527_v18 = vmul.f32 %v1975_v10, %v2554_v0  ;;  %v1979_v19 = vunpack.c.l.bf16 %v2414_v5  ;;  %v2420_v1 = vld [vmem:[%s2549_s18 + $0x1a0] sm:$0xff]  }
  0x76   : > { %v661_v20 = vadd.f32 %v2563_v9, %v526_v12  ;;  %v788_v21 = vmax.f32 %v660_v13, 0.0  ;;  %v528_v22 = vmul.f32 %v1976_v14, %v2554_v0  ;;  %v1980_v23 = vunpack.c.h.bf16 %v2414_v5 }
  0x77   : > { %2473 = vst [vmem:[%s2588_s25 + $0x150] sm:$0xff] %v2262_v16   ;;  %v2267_v25 = vpack.c.bf16 %v787_v17, %v786_v11  ;;  %v662_v26 = vadd.f32 %v2563_v9, %v527_v18  ;;  %v529_v27 = vmul.f32 %v1979_v19, %v2554_v0  ;;  %v1983_v28 = vunpack.c.l.bf16 %v2415_v15 }
  0x78   : > { %v789_v29 = vmax.f32 %v661_v20, 0.0  ;;  %v663_v30 = vadd.f32 %v2563_v9, %v528_v22  ;;  %v530_v31 = vmul.f32 %v1980_v23, %v2554_v0  ;;  %v1984_v32 = vunpack.c.h.bf16 %v2415_v15  ;;  %v2421_v15 = vld [vmem:[%s2549_s18 + $0x1a8] sm:$0xff]  }
  0x79   : > { %2474 = vst [vmem:[%s2588_s25 + $0x158] sm:$0xff] %v2267_v25   ;;  %v790_v33 = vmax.f32 %v662_v26, 0.0  ;;  %v664_v34 = vadd.f32 %v2563_v9, %v529_v27  ;;  %v531_v36 = vmul.f32 %v2851_v35, %v1983_v28  ;;  %v1987_v37 = vunpack.c.l.bf16 %v2416_v24 }
  0x7a   : > { %v2272_v39 = vpack.c.bf16 %v789_v29, %v788_v21  ;;  %v791_v40 = vmax.f32 %v663_v30, 0.0  ;;  %v665_v0 = vadd.f32 %v2563_v9, %v530_v31  ;;  %v532_v41 = vmul.f32 %v2851_v35, %v1984_v32 }
  0x7b   : > { %v792_v42 = vmax.f32 %v664_v34, 0.0  ;;  %v666_v44 = vadd.f32 %v2860_v43, %v531_v36  ;;  %v1988_v45 = vunpack.c.h.bf16 %v2416_v24  ;;  %v533_v46 = vmul.f32 %v2851_v35, %v1987_v37  ;;  %v2422_v24 = vld [vmem:[%s2549_s18 + $0x1b0] sm:$0xff]  }
  0x7c   : > { %2475 = vst [vmem:[%s2588_s25 + $0x160] sm:$0xff] %v2272_v39   ;;  %v2277_v48 = vpack.c.bf16 %v791_v40, %v790_v33  ;;  %v793_v49 = vmax.f32 %v665_v0, 0.0  ;;  %v667_v9 = vadd.f32 %v2860_v43, %v532_v41  ;;  %v1991_v50 = vunpack.c.l.bf16 %v2417_v38  ;;  %v2423_v33 = vld [vmem:[%s2549_s18 + $0x1b8] sm:$0xff]  }
  0x7d   : > { %v794_v51 = vmax.f32 %v666_v44, 0.0  ;;  %v534_v52 = vmul.f32 %v2851_v35, %v1988_v45  ;;  %v668_v53 = vadd.f32 %v2860_v43, %v533_v46  ;;  %v1992_v54 = vunpack.c.h.bf16 %v2417_v38 }
  0x7e   : > { %2476 = vst [vmem:[%s2588_s25 + $0x168] sm:$0xff] %v2277_v48   ;;  %v2282_v56 = vpack.c.bf16 %v793_v49, %v792_v42  ;;  %v795_v57 = vmax.f32 %v667_v9, 0.0  ;;  %v535_v58 = vmul.f32 %v2851_v35, %v1991_v50  ;;  %v1995_v59 = vunpack.c.l.bf16 %v2418_v47  ;;  %v2424_v42 = vld [vmem:[%s2549_s18 + $0x1c0] sm:$0xff]  }
  0x7f   : > { %v669_v60 = vadd.f32 %v2860_v43, %v534_v52  ;;  %v796_v61 = vmax.f32 %v668_v53, 0.0  ;;  %v536_v62 = vmul.f32 %v2851_v35, %v1992_v54  ;;  %v1996_v63 = vunpack.c.h.bf16 %v2418_v47 }
  0x80   : > { %2477 = vst [vmem:[%s2588_s25 + $0x170] sm:$0xff] %v2282_v56   ;;  %v2287_v2 = vpack.c.bf16 %v795_v57, %v794_v51  ;;  %v670_v3 = vadd.f32 %v2860_v43, %v535_v58  ;;  %v537_v4 = vmul.f32 %v2851_v35, %v1995_v59  ;;  %v1999_v5 = vunpack.c.l.bf16 %v2419_v55 }
  0x81   : > { %v797_v6 = vmax.f32 %v669_v60, 0.0  ;;  %v671_v7 = vadd.f32 %v2860_v43, %v536_v62  ;;  %v538_v8 = vmul.f32 %v2851_v35, %v1996_v63  ;;  %v2000_v10 = vunpack.c.h.bf16 %v2419_v55  ;;  %v2425_v55 = vld [vmem:[%s2549_s18 + $0x1c8] sm:$0xff]  }
  0x82   : > { %2478 = vst [vmem:[%s2588_s25 + $0x178] sm:$0xff] %v2287_v2   ;;  %v798_v11 = vmax.f32 %v670_v3, 0.0  ;;  %v672_v12 = vadd.f32 %v2860_v43, %v537_v4  ;;  %v539_v13 = vmul.f32 %v2851_v35, %v1999_v5  ;;  %v2003_v14 = vunpack.c.l.bf16 %v2420_v1 }
  0x83   : > { %v2292_v16 = vpack.c.bf16 %v797_v6, %v796_v61  ;;  %v799_v17 = vmax.f32 %v671_v7, 0.0  ;;  %v673_v18 = vadd.f32 %v2860_v43, %v538_v8  ;;  %v540_v19 = vmul.f32 %v2851_v35, %v2000_v10 }
  0x84   : > { %v800_v20 = vmax.f32 %v672_v12, 0.0  ;;  %v674_v21 = vadd.f32 %v2860_v43, %v539_v13  ;;  %v2004_v22 = vunpack.c.h.bf16 %v2420_v1  ;;  %v541_v23 = vmul.f32 %v2851_v35, %v2003_v14  ;;  %v2426_v1 = vld [vmem:[%s2549_s18 + $0x1d0] sm:$0xff]  }
  0x85   : > { %2479 = vst [vmem:[%s2588_s25 + $0x180] sm:$0xff] %v2292_v16   ;;  %v2297_v25 = vpack.c.bf16 %v799_v17, %v798_v11  ;;  %v801_v26 = vmax.f32 %v673_v18, 0.0  ;;  %v675_v27 = vadd.f32 %v2860_v43, %v540_v19  ;;  %v2007_v28 = vunpack.c.l.bf16 %v2421_v15  ;;  %v2427_v11 = vld [vmem:[%s2549_s18 + $0x1d8] sm:$0xff]  }
  0x86   : > { %v802_v29 = vmax.f32 %v674_v21, 0.0  ;;  %v542_v30 = vmul.f32 %v2851_v35, %v2004_v22  ;;  %v676_v31 = vadd.f32 %v2860_v43, %v541_v23  ;;  %v2008_v32 = vunpack.c.h.bf16 %v2421_v15 }
  0x87   : > { %2480 = vst [vmem:[%s2588_s25 + $0x188] sm:$0xff] %v2297_v25   ;;  %v2302_v34 = vpack.c.bf16 %v801_v26, %v800_v20  ;;  %v803_v36 = vmax.f32 %v675_v27, 0.0  ;;  %v543_v37 = vmul.f32 %v2851_v35, %v2007_v28  ;;  %v2011_v38 = vunpack.c.l.bf16 %v2422_v24  ;;  %v2428_v20 = vld [vmem:[%s2549_s18 + $0x1e0] sm:$0xff]  }
  0x88   : > { %v677_v39 = vadd.f32 %v2860_v43, %v542_v30  ;;  %v804_v40 = vmax.f32 %v676_v31, 0.0  ;;  %v544_v0 = vmul.f32 %v2851_v35, %v2008_v32  ;;  %v2012_v41 = vunpack.c.h.bf16 %v2422_v24 }
  0x89   : > { %2481 = vst [vmem:[%s2588_s25 + $0x190] sm:$0xff] %v2302_v34   ;;  %v2307_v44 = vpack.c.bf16 %v803_v36, %v802_v29  ;;  %v678_v45 = vadd.f32 %v2860_v43, %v543_v37  ;;  %v545_v46 = vmul.f32 %v2851_v35, %v2011_v38  ;;  %v2015_v47 = vunpack.c.l.bf16 %v2423_v33 }
  0x8a   : > { %v805_v48 = vmax.f32 %v677_v39, 0.0  ;;  %v679_v49 = vadd.f32 %v2860_v43, %v544_v0  ;;  %v546_v9 = vmul.f32 %v2851_v35, %v2012_v41  ;;  %v2016_v50 = vunpack.c.h.bf16 %v2423_v33  ;;  %v2429_v33 = vld [vmem:[%s2549_s18 + $0x1e8] sm:$0xff]  }
  0x8b   : > { %2482 = vst [vmem:[%s2588_s25 + $0x198] sm:$0xff] %v2307_v44   ;;  %v806_v51 = vmax.f32 %v678_v45, 0.0  ;;  %v680_v52 = vadd.f32 %v2860_v43, %v545_v46  ;;  %v547_v53 = vmul.f32 %v2851_v35, %v2015_v47  ;;  %v2019_v54 = vunpack.c.l.bf16 %v2424_v42 }
  0x8c   : > { %v2312_v56 = vpack.c.bf16 %v805_v48, %v804_v40  ;;  %v807_v57 = vmax.f32 %v679_v49, 0.0  ;;  %v681_v58 = vadd.f32 %v2860_v43, %v546_v9  ;;  %v548_v59 = vmul.f32 %v2851_v35, %v2016_v50 }
  0x8d   : > { %v808_v60 = vmax.f32 %v680_v52, 0.0  ;;  %v682_v61 = vadd.f32 %v2860_v43, %v547_v53  ;;  %v2020_v62 = vunpack.c.h.bf16 %v2424_v42  ;;  %v549_v63 = vmul.f32 %v2851_v35, %v2019_v54  ;;  %v2430_v42 = vld [vmem:[%s2549_s18 + $0x1f0] sm:$0xff]  }
  0x8e   : > { %2483 = vst [vmem:[%s2588_s25 + $0x1a0] sm:$0xff] %v2312_v56   ;;  %v2317_v2 = vpack.c.bf16 %v807_v57, %v806_v51  ;;  %v809_v3 = vmax.f32 %v681_v58, 0.0  ;;  %v683_v4 = vadd.f32 %v2860_v43, %v548_v59  ;;  %v2023_v5 = vunpack.c.l.bf16 %v2425_v55  ;;  %v2431_v51 = vld [vmem:[%s2549_s18 + $0x1f8] sm:$0xff]  }
  0x8f   : > { %v810_v6 = vmax.f32 %v682_v61, 0.0  ;;  %v550_v7 = vmul.f32 %v2851_v35, %v2020_v62  ;;  %v684_v8 = vadd.f32 %v2860_v43, %v549_v63  ;;  %v2024_v10 = vunpack.c.h.bf16 %v2425_v55 }
  0x90   : > { %2484 = vst [vmem:[%s2588_s25 + $0x1a8] sm:$0xff] %v2317_v2   ;;  %v2322_v12 = vpack.c.bf16 %v809_v3, %v808_v60  ;;  %v811_v13 = vmax.f32 %v683_v4, 0.0  ;;  %v551_v14 = vmul.f32 %v2851_v35, %v2023_v5  ;;  %v2027_v15 = vunpack.c.l.bf16 %v2426_v1 }
  0x91   : > { %v685_v16 = vadd.f32 %v2860_v43, %v550_v7  ;;  %v812_v17 = vmax.f32 %v684_v8, 0.0  ;;  %v552_v18 = vmul.f32 %v2851_v35, %v2024_v10  ;;  %v2028_v19 = vunpack.c.h.bf16 %v2426_v1 }
  0x92   : > { %2485 = vst [vmem:[%s2588_s25 + $0x1b0] sm:$0xff] %v2322_v12   ;;  %v2327_v21 = vpack.c.bf16 %v811_v13, %v810_v6  ;;  %v686_v22 = vadd.f32 %v2860_v43, %v551_v14  ;;  %v553_v23 = vmul.f32 %v2851_v35, %v2027_v15  ;;  %v2031_v24 = vunpack.c.l.bf16 %v2427_v11 }
  0x93   : > { %v813_v25 = vmax.f32 %v685_v16, 0.0  ;;  %v687_v26 = vadd.f32 %v2860_v43, %v552_v18  ;;  %v554_v27 = vmul.f32 %v2851_v35, %v2028_v19  ;;  %v2032_v28 = vunpack.c.h.bf16 %v2427_v11 }
  0x94   : > { %2486 = vst [vmem:[%s2588_s25 + $0x1b8] sm:$0xff] %v2327_v21   ;;  %v814_v29 = vmax.f32 %v686_v22, 0.0  ;;  %v688_v30 = vadd.f32 %v2860_v43, %v553_v23  ;;  %v555_v31 = vmul.f32 %v2851_v35, %v2031_v24  ;;  %v2035_v32 = vunpack.c.l.bf16 %v2428_v20 }
  0x95   : > { %v2332_v34 = vpack.c.bf16 %v813_v25, %v812_v17  ;;  %v815_v36 = vmax.f32 %v687_v26, 0.0  ;;  %v689_v37 = vadd.f32 %v2860_v43, %v554_v27  ;;  %v556_v38 = vmul.f32 %v2851_v35, %v2032_v28 }
  0x96   : > { %v816_v39 = vmax.f32 %v688_v30, 0.0  ;;  %v690_v40 = vadd.f32 %v2860_v43, %v555_v31  ;;  %v2036_v0 = vunpack.c.h.bf16 %v2428_v20  ;;  %v557_v41 = vmul.f32 %v2851_v35, %v2035_v32 }
  0x97   : > { %2487 = vst [vmem:[%s2588_s25 + $0x1c0] sm:$0xff] %v2332_v34   ;;  %v2337_v44 = vpack.c.bf16 %v815_v36, %v814_v29  ;;  %v817_v45 = vmax.f32 %v689_v37, 0.0  ;;  %v691_v46 = vadd.f32 %v2860_v43, %v556_v38  ;;  %v2039_v47 = vunpack.c.l.bf16 %v2429_v33 }
  0x98   : > { %v818_v48 = vmax.f32 %v690_v40, 0.0  ;;  %v558_v49 = vmul.f32 %v2851_v35, %v2036_v0  ;;  %v692_v9 = vadd.f32 %v2860_v43, %v557_v41  ;;  %v2040_v50 = vunpack.c.h.bf16 %v2429_v33 }
  0x99   : > { %2488 = vst [vmem:[%s2588_s25 + $0x1c8] sm:$0xff] %v2337_v44   ;;  %v2342_v52 = vpack.c.bf16 %v817_v45, %v816_v39  ;;  %v819_v53 = vmax.f32 %v691_v46, 0.0  ;;  %v559_v54 = vmul.f32 %v2851_v35, %v2039_v47  ;;  %v2043_v55 = vunpack.c.l.bf16 %v2430_v42 }
  0x9a   : > { %v693_v56 = vadd.f32 %v2860_v43, %v558_v49  ;;  %v820_v57 = vmax.f32 %v692_v9, 0.0  ;;  %v560_v58 = vmul.f32 %v2851_v35, %v2040_v50  ;;  %v2044_v59 = vunpack.c.h.bf16 %v2430_v42 }
  0x9b   : > { %2489 = vst [vmem:[%s2588_s25 + $0x1d0] sm:$0xff] %v2342_v52   ;;  %v2347_v60 = vpack.c.bf16 %v819_v53, %v818_v48  ;;  %v694_v61 = vadd.f32 %v2860_v43, %v559_v54  ;;  %v561_v62 = vmul.f32 %v2851_v35, %v2043_v55  ;;  %v2047_v63 = vunpack.c.l.bf16 %v2431_v51 }
  0x9c   : > { %v821_v1 = vmax.f32 %v693_v56, 0.0  ;;  %v695_v2 = vadd.f32 %v2860_v43, %v560_v58  ;;  %v562_v3 = vmul.f32 %v2851_v35, %v2044_v59  ;;  %v2048_v4 = vunpack.c.h.bf16 %v2431_v51 }
  0x9d   : > { %2490 = vst [vmem:[%s2588_s25 + $0x1d8] sm:$0xff] %v2347_v60   ;;  %v822_v5 = vmax.f32 %v694_v61, 0.0  ;;  %v696_v6 = vadd.f32 %v2860_v43, %v561_v62  ;;  %v563_v7 = vmul.f32 %v2851_v35, %v2047_v63 }
  0x9e   : > { %v2352_v8 = vpack.c.bf16 %v821_v1, %v820_v57  ;;  %v823_v10 = vmax.f32 %v695_v2, 0.0  ;;  %v697_v11 = vadd.f32 %v2860_v43, %v562_v3  ;;  %v564_v12 = vmul.f32 %v2851_v35, %v2048_v4 }
  0x9f   : > { %v824_v13 = vmax.f32 %v696_v6, 0.0  ;;  %v698_v14 = vadd.f32 %v2860_v43, %v563_v7 }
  0xa0   : > { %2491 = vst [vmem:[%s2588_s25 + $0x1e0] sm:$0xff] %v2352_v8   ;;  %v2357_v15 = vpack.c.bf16 %v823_v10, %v822_v5  ;;  %v825_v16 = vmax.f32 %v697_v11, 0.0  ;;  %v699_v17 = vadd.f32 %v2860_v43, %v564_v12 }
  0xa1   : > { %v826_v18 = vmax.f32 %v698_v14, 0.0 }
  0xa2   : > { %2492 = vst [vmem:[%s2588_s25 + $0x1e8] sm:$0xff] %v2357_v15   ;;  %v2362_v19 = vpack.c.bf16 %v825_v16, %v824_v13  ;;  %v827_v20 = vmax.f32 %v699_v17, 0.0 }
  0xa4   : > { %2493 = vst [vmem:[%s2588_s25 + $0x1f0] sm:$0xff] %v2362_v19   ;;  %v2367_v21 = vpack.c.bf16 %v827_v20, %v826_v18 }
  0xa6   : > { %2494 = vst [vmem:[%s2588_s25 + $0x1f8] sm:$0xff] %v2367_v21  }
  0xa7 PF: > { %s13_s12 = sadd.s32 1, %s2511_s12  }
  0xa8   : > { %p10_p4 = scmp.ge.s32.totalorder %s13_s12, 4  }
  0xaa   :  { %12 = sbr.rel (!%p10_p4) target bundleno = 1 (0x1), region = 62 }

// kernel: generator_celeba_forward.17
= control target key start
LH: loop header
LB: loop body
LE: loop exit
PB: predicated region body
PF: predicated region fallthrough
CT: control target
= control target key end

     0   :  { %s1505_s9 = smov 0   ;;  %s1507_s10 = smov 0   ;;  %s1695_s0 = inlined_call_operand.vmem [shape: bf16[4,2048,32], index: 0, kind: input, shape index: {}]   ;;  %s1696_s1 = inlined_call_operand.vmem [shape: bf16[4,32,128], index: 1, kind: input, shape index: {}]   ;;  %s1697_s2 = inlined_call_operand.vmem [shape: f32[4,2048,128], index: 2, kind: output, shape index: {}]  }
   0x1   :  { %s1509_s11 = smov 0   ;;  %s1511_s12 = smov 0  }
   0x2   :  { %s1513_s13 = smov 0  }
   0x3 LB: > { %s21_s14 = sadd.s32 1, %s1480_s11  ;;  %s24_s15 = sadd.s32 1, %s1484_s12  ;;  %s1488_s13 = sphi %s1513_s13, %s12_s13   ;;  %s1484_s12 = sphi %s1511_s12, %s1701_s12   ;;  %s1480_s11 = sphi %s1509_s11, %s1700_s11   ;;  %s1476_s10 = sphi %s1507_s10, %s1699_s10   ;;  %s1472_s9 = sphi %s1505_s9, %s1698_s9  }
   0x4   : > { %p22_p0 = scmp.ge.s32.totalorder %s21_s14, 4  ;;  %p1064_p1 = scmp.ge.s32.totalorder %s1488_s13, 1 }
   0x5   : > { %p143_p2 = scmp.lt.s32.totalorder %s1488_s13, 17 }
   0x6   : > { %s1703_s14 = smov (%p22_p0, %s21_s14), 0  ;;  %s1705_s15 = smov (!%p22_p0, %s24_s15), %s1484_s12 }
   0x7   : > { %p144_p3 = pnand %p1064_p1, %p143_p2  ;;  %p26_p4 = scmp.ge.s32.totalorder %s1705_s15, 4 }
   0x8   : > { %s1065_s16 = sshll.u32 (!%p144_p3), %s1472_s9, 6  ;;  %p179_p5 = scmp.lt.s32.totalorder (!%p144_p3), %s1476_s10, 3  ;;  %vm444_vm0 = vcmask (!%p144_p3), 261120  }
   0x9   : > { %s1707_s15 = smov (%p26_p4, %s1705_s15), 0  ;;  %147 = sbr.rel (%p144_p3) target bundleno = 318 (0x13e), region = 28 }
   0xa   : > { %p181_p6 = scmp.lt.s32.totalorder (!%p144_p3), %s1065_s16, 255 }
  0x10   : > { %s1709_s10 = smov (!%p179_p5, %s1476_s10), 3  ;;  %s1711_s16 = smov (!%p181_p6, %s1065_s16), 255 }
  0x11   : > { %s1066_s17 = sshll.u32 %s1709_s10, 8  ;;  %s1141_s18 = sshll.u32 %s1709_s10, 4 }
  0x12   : > { %s1535_s19 = sadd.s32 %s1066_s17, %s1711_s16  ;;  %s192_s22 = scalar_lea.vmem %s1696_s1, %s1141_s18 }
  0x13   : > { %s1067_s23 = sshll.u32 %s1535_s19, 2  ;;  %v1288_v0 = vld [vmem:[%s192_s22] sm:$0xff]   ;;  %v1289_v1 = vld [vmem:[%s192_s22 + $0x8] sm:$0xff]   ;;  %s1072_s27 = sshll.u32 %s1535_s19, 3 }
  0x14   : > { %s1544_s26 = scalar_lea.vmem %s1695_s0, %s1067_s23  ;;  %1176 = vmatprep.subr.bf16.mxu0 %v1288_v0  ;;  %1244 = vmatprep.subr.bf16.mxu1 %v1288_v0  ;;  %s1614_s30 = scalar_lea.vmem %s1697_s2, %s1072_s27 }
  0x15   : > { %v1290_v2 = vld [vmem:[%s1544_s26] sm:$0xff]   ;;  %1177 = vmatpush3.bf16.msra.mxu0 %v1288_v0  ;;  %1246 = vmatpush3.bf16.msra.mxu1 %v1288_v0  ;;  %v1292_v4 = vld [vmem:[%s1544_s26 + $0x8] sm:$0xff]   ;;  %v1294_v6 = vld [vmem:[%s1544_s26 + $0x10] sm:$0xff]  }
  0x16   : > { %v1291_v3 = vld [vmem:[%s1544_s26 + $0x80] sm:$0xff]   ;;  %1178 = vmatprep.subr.bf16.mxu0 %v1289_v1  ;;  %1245 = vmatprep.subr.bf16.mxu1 %v1289_v1  ;;  %v1293_v5 = vld [vmem:[%s1544_s26 + $0x88] sm:$0xff]   ;;  %v1295_v7 = vld [vmem:[%s1544_s26 + $0x90] sm:$0xff]  }
  0x17   : > { %1180 = vmatprep.mubr.msk.bf16.mxu0 %vm444_vm0, %v1290_v2  ;;  %1212 = vmatprep.mubr.msk.bf16.mxu1 %vm444_vm0, %v1291_v3  ;;  %v1296_v8 = vld [vmem:[%s1544_s26 + $0x18] sm:$0xff]   ;;  %v1298_v10 = vld [vmem:[%s1544_s26 + $0x20] sm:$0xff]   ;;  %v1300_v12 = vld [vmem:[%s1544_s26 + $0x28] sm:$0xff]  }
  0x18   : > { %v1297_v9 = vld [vmem:[%s1544_s26 + $0x98] sm:$0xff]   ;;  %v1299_v11 = vld [vmem:[%s1544_s26 + $0xa0] sm:$0xff]   ;;  %v1301_v13 = vld [vmem:[%s1544_s26 + $0xa8] sm:$0xff]  }
  0x19   : > { %1179 = vmatpush3.bf16.msra.mxu0 %v1289_v1  ;;  %1247 = vmatpush3.bf16.msra.mxu1 %v1289_v1  ;;  %v1302_v14 = vld [vmem:[%s1544_s26 + $0x30] sm:$0xff]   ;;  %v1304_v16 = vld [vmem:[%s1544_s26 + $0x38] sm:$0xff]   ;;  %v1306_v18 = vld [vmem:[%s1544_s26 + $0x40] sm:$0xff]  }
  0x1a   : > { %v1303_v15 = vld [vmem:[%s1544_s26 + $0xb0] sm:$0xff]   ;;  %v1305_v17 = vld [vmem:[%s1544_s26 + $0xb8] sm:$0xff]   ;;  %v1307_v19 = vld [vmem:[%s1544_s26 + $0xc0] sm:$0xff]  }
  0x1b   : > { %v1308_v20 = vld [vmem:[%s1544_s26 + $0x48] sm:$0xff]   ;;  %v1310_v22 = vld [vmem:[%s1544_s26 + $0x50] sm:$0xff]   ;;  %v1312_v24 = vld [vmem:[%s1544_s26 + $0x58] sm:$0xff]  }
  0x1c   : > { %1181 = vmatmul.mubr.msk.bf16.vlgmr.msra.gmra.mrb[0].mxu0 %vm444_vm0, %v1292_v4  ;;  %1213 = vmatmul.mubr.msk.bf16.vlgmr.msra.gmra.mrb[0].mxu1 %vm444_vm0, %v1293_v5  ;;  %v1309_v21 = vld [vmem:[%s1544_s26 + $0xc8] sm:$0xff]   ;;  %v1311_v23 = vld [vmem:[%s1544_s26 + $0xd0] sm:$0xff]   ;;  %v1313_v25 = vld [vmem:[%s1544_s26 + $0xd8] sm:$0xff]  }
  0x1d   : > { %1184 = vmatprep.mubr.msk.bf16.mxu0 %vm444_vm0, %v1294_v6  ;;  %1216 = vmatprep.mubr.msk.bf16.mxu1 %vm444_vm0, %v1295_v7  ;;  %v1314_v26 = vld [vmem:[%s1544_s26 + $0x60] sm:$0xff]   ;;  %v1316_v28 = vld [vmem:[%s1544_s26 + $0x68] sm:$0xff]   ;;  %v1318_v30 = vld [vmem:[%s1544_s26 + $0x70] sm:$0xff]  }
  0x1e   : > { %v1315_v27 = vld [vmem:[%s1544_s26 + $0xe0] sm:$0xff]   ;;  %v1317_v29 = vld [vmem:[%s1544_s26 + $0xe8] sm:$0xff]   ;;  %v1319_v31 = vld [vmem:[%s1544_s26 + $0xf0] sm:$0xff]  }
  0x1f   : > { %v1320_v32 = vld [vmem:[%s1544_s26 + $0x78] sm:$0xff]  }
  0x20   : > { %v1321_v33 = vld [vmem:[%s1544_s26 + $0xf8] sm:$0xff]  }
  0x24   : > { %1185 = vmatmul.mubr.msk.bf16.gmra.mrb[4].mxu0 %vm444_vm0, %v1296_v8  ;;  %1217 = vmatmul.mubr.msk.bf16.gmra.mrb[4].mxu1 %vm444_vm0, %v1297_v9 }
  0x25   : > { %1188 = vmatprep.mubr.msk.bf16.mxu0 %vm444_vm0, %v1298_v10  ;;  %1220 = vmatprep.mubr.msk.bf16.mxu1 %vm444_vm0, %v1299_v11 }
  0x2c   : > { %1189 = vmatmul.mubr.msk.bf16.gmra.mrb[8].mxu0 %vm444_vm0, %v1300_v12  ;;  %1221 = vmatmul.mubr.msk.bf16.gmra.mrb[8].mxu1 %vm444_vm0, %v1301_v13 }
  0x2d   : > { %1192 = vmatprep.mubr.msk.bf16.mxu0 %vm444_vm0, %v1302_v14  ;;  %1224 = vmatprep.mubr.msk.bf16.mxu1 %vm444_vm0, %v1303_v15 }
  0x34   : > { %1193 = vmatmul.mubr.msk.bf16.gmra.mrb[12].mxu0 %vm444_vm0, %v1304_v16  ;;  %1225 = vmatmul.mubr.msk.bf16.gmra.mrb[12].mxu1 %vm444_vm0, %v1305_v17 }
  0x35   : > { %1196 = vmatprep.mubr.msk.bf16.mxu0 %vm444_vm0, %v1306_v18  ;;  %1228 = vmatprep.mubr.msk.bf16.mxu1 %vm444_vm0, %v1307_v19 }
  0x3c   : > { %1197 = vmatmul.mubr.msk.bf16.gmra.mrb[16].mxu0 %vm444_vm0, %v1308_v20  ;;  %1229 = vmatmul.mubr.msk.bf16.gmra.mrb[16].mxu1 %vm444_vm0, %v1309_v21 }
  0x3d   : > { %1200 = vmatprep.mubr.msk.bf16.mxu0 %vm444_vm0, %v1310_v22  ;;  %1232 = vmatprep.mubr.msk.bf16.mxu1 %vm444_vm0, %v1311_v23 }
  0x44   : > { %1201 = vmatmul.mubr.msk.bf16.gmra.mrb[20].mxu0 %vm444_vm0, %v1312_v24  ;;  %1233 = vmatmul.mubr.msk.bf16.gmra.mrb[20].mxu1 %vm444_vm0, %v1313_v25 }
  0x45   : > { %1204 = vmatprep.mubr.msk.bf16.mxu0 %vm444_vm0, %v1314_v26  ;;  %1236 = vmatprep.mubr.msk.bf16.mxu1 %vm444_vm0, %v1315_v27 }
  0x4c   : > { %1205 = vmatmul.mubr.msk.bf16.gmra.mrb[24].mxu0 %vm444_vm0, %v1316_v28  ;;  %1237 = vmatmul.mubr.msk.bf16.gmra.mrb[24].mxu1 %vm444_vm0, %v1317_v29 }
  0x4d   : > { %1208 = vmatprep.mubr.msk.bf16.mxu0 %vm444_vm0, %v1318_v30  ;;  %1240 = vmatprep.mubr.msk.bf16.mxu1 %vm444_vm0, %v1319_v31 }
  0x54   : > { %1209 = vmatmul.mubr.msk.bf16.gmra.mrb[28].mxu0 %vm444_vm0, %v1320_v32  ;;  %1241 = vmatmul.mubr.msk.bf16.gmra.mrb[28].mxu1 %vm444_vm0, %v1321_v33 }
  0xef   : > { %v1182_v34 = vpop.f32.mrb[0].mxu0  ;;  %v1214_v35 = vpop.f32.mrb[0].mxu1 }
  0xf0   : > { %1322 = vtanh.f32 %v1182_v34  ;;  %v575_v36 = vpop.f32.mrb[1].mxu0  ;;  %v703_v37 = vpop.f32.mrb[1].mxu1 }
  0xf1   : > { %1324 = vtanh.f32 %v1214_v35  ;;  %v1183_v38 = vpop.f32.mrb[2].mxu0  ;;  %v1215_v39 = vpop.f32.mrb[2].mxu1 }
  0xf2   : > { %1326 = vtanh.f32 %v575_v36  ;;  %v578_v40 = vpop.f32.mrb[3].mxu0  ;;  %v706_v41 = vpop.f32.mrb[3].mxu1 }
  0xf3   : > { %1328 = vtanh.f32 %v703_v37 }
  0xf4   : > { %1330 = vtanh.f32 %v1183_v38 }
  0xf5   : > { %1332 = vtanh.f32 %v1215_v39 }
  0xf6   : > { %1334 = vtanh.f32 %v578_v40 }
  0xf7   : > { %1336 = vtanh.f32 %v706_v41  ;;  %v1186_v42 = vpop.f32.mrb[4].mxu0  ;;  %v1218_v43 = vpop.f32.mrb[4].mxu1 }
  0xf8   : > { %1338 = vtanh.f32 %v1186_v42  ;;  %v591_v44 = vpop.f32.mrb[5].mxu0  ;;  %v719_v45 = vpop.f32.mrb[5].mxu1 }
  0xf9   : > { %1340 = vtanh.f32 %v1218_v43  ;;  %v1187_v46 = vpop.f32.mrb[6].mxu0  ;;  %v1219_v47 = vpop.f32.mrb[6].mxu1 }
  0xfa   : > { %v1323_v48 = vpop.eup %1322  ;;  %1342 = vtanh.f32 %v591_v44  ;;  %v594_v49 = vpop.f32.mrb[7].mxu0 }
  0xfb   : > { %v722_v50 = vpop.f32.mrb[7].mxu1  ;;  %v1325_v51 = vpop.eup %1324  ;;  %896 = vst [vmem:[%s1614_s30 + $0x10] sm:$0xff] %v1323_v48  ;;  %1344 = vtanh.f32 %v719_v45 }
  0xfc   : > { %v1327_v52 = vpop.eup %1326  ;;  %928 = vst [vmem:[%s1614_s30 + $0x110] sm:$0xff] %v1325_v51  ;;  %1346 = vtanh.f32 %v1187_v46 }
  0xfd   : > { %v1329_v53 = vpop.eup %1328  ;;  %894 = vst [vmem:[%s1614_s30] sm:$0xff] %v1327_v52  ;;  %1348 = vtanh.f32 %v1219_v47 }
  0xfe   : > { %v1331_v54 = vpop.eup %1330  ;;  %926 = vst [vmem:[%s1614_s30 + $0x100] sm:$0xff] %v1329_v53  ;;  %1350 = vtanh.f32 %v594_v49 }
  0xff   : > { %v1333_v55 = vpop.eup %1332  ;;  %897 = vst [vmem:[%s1614_s30 + $0x18] sm:$0xff] %v1331_v54  ;;  %1352 = vtanh.f32 %v722_v50  ;;  %v1190_v56 = vpop.f32.mrb[8].mxu0 }
 0x100   : > { %v1222_v57 = vpop.f32.mrb[8].mxu1  ;;  %v1335_v58 = vpop.eup %1334  ;;  %929 = vst [vmem:[%s1614_s30 + $0x118] sm:$0xff] %v1333_v55  ;;  %1354 = vtanh.f32 %v1190_v56 }
 0x101   : > { %v607_v59 = vpop.f32.mrb[9].mxu0  ;;  %v735_v60 = vpop.f32.mrb[9].mxu1  ;;  %895 = vst [vmem:[%s1614_s30 + $0x8] sm:$0xff] %v1335_v58  ;;  %1356 = vtanh.f32 %v1222_v57 }
 0x102   : > { %v1337_v61 = vpop.eup %1336  ;;  %v1191_v62 = vpop.f32.mrb[10].mxu0  ;;  %1358 = vtanh.f32 %v607_v59 }
 0x103   : > { %v1223_v63 = vpop.f32.mrb[10].mxu1  ;;  %v1339_v0 = vpop.eup %1338  ;;  %927 = vst [vmem:[%s1614_s30 + $0x108] sm:$0xff] %v1337_v61  ;;  %1360 = vtanh.f32 %v735_v60 }
 0x104   : > { %v610_v1 = vpop.f32.mrb[11].mxu0  ;;  %v738_v2 = vpop.f32.mrb[11].mxu1  ;;  %900 = vst [vmem:[%s1614_s30 + $0x30] sm:$0xff] %v1339_v0  ;;  %1362 = vtanh.f32 %v1191_v62 }
 0x105   : > { %v1341_v3 = vpop.eup %1340  ;;  %1364 = vtanh.f32 %v1223_v63 }
 0x106   : > { %v1343_v4 = vpop.eup %1342  ;;  %932 = vst [vmem:[%s1614_s30 + $0x130] sm:$0xff] %v1341_v3  ;;  %1366 = vtanh.f32 %v610_v1 }
 0x107   : > { %v1345_v5 = vpop.eup %1344  ;;  %898 = vst [vmem:[%s1614_s30 + $0x20] sm:$0xff] %v1343_v4  ;;  %1368 = vtanh.f32 %v738_v2  ;;  %v1194_v8 = vpop.f32.mrb[12].mxu0 }
 0x108   : > { %v1347_v6 = vpop.eup %1346  ;;  %930 = vst [vmem:[%s1614_s30 + $0x120] sm:$0xff] %v1345_v5  ;;  %v1226_v9 = vpop.f32.mrb[12].mxu1  ;;  %1370 = vtanh.f32 %v1194_v8 }
 0x109   : > { %v1349_v7 = vpop.eup %1348  ;;  %901 = vst [vmem:[%s1614_s30 + $0x38] sm:$0xff] %v1347_v6  ;;  %v623_v11 = vpop.f32.mrb[13].mxu0  ;;  %1372 = vtanh.f32 %v1226_v9 }
 0x10a   : > { %v1351_v10 = vpop.eup %1350  ;;  %933 = vst [vmem:[%s1614_s30 + $0x138] sm:$0xff] %v1349_v7  ;;  %v751_v12 = vpop.f32.mrb[13].mxu1  ;;  %1374 = vtanh.f32 %v623_v11 }
 0x10b   : > { %v1353_v13 = vpop.eup %1352  ;;  %899 = vst [vmem:[%s1614_s30 + $0x28] sm:$0xff] %v1351_v10  ;;  %v1195_v14 = vpop.f32.mrb[14].mxu0  ;;  %1376 = vtanh.f32 %v751_v12 }
 0x10c   : > { %v1227_v15 = vpop.f32.mrb[14].mxu1  ;;  %v1355_v16 = vpop.eup %1354  ;;  %931 = vst [vmem:[%s1614_s30 + $0x128] sm:$0xff] %v1353_v13  ;;  %1378 = vtanh.f32 %v1195_v14 }
 0x10d   : > { %v626_v17 = vpop.f32.mrb[15].mxu0  ;;  %v754_v18 = vpop.f32.mrb[15].mxu1  ;;  %904 = vst [vmem:[%s1614_s30 + $0x50] sm:$0xff] %v1355_v16  ;;  %1380 = vtanh.f32 %v1227_v15 }
 0x10e   : > { %v1357_v19 = vpop.eup %1356  ;;  %1382 = vtanh.f32 %v626_v17 }
 0x10f   : > { %v1359_v20 = vpop.eup %1358  ;;  %936 = vst [vmem:[%s1614_s30 + $0x150] sm:$0xff] %v1357_v19  ;;  %1384 = vtanh.f32 %v754_v18  ;;  %v1198_v24 = vpop.f32.mrb[16].mxu0 }
 0x110   : > { %v1361_v21 = vpop.eup %1360  ;;  %902 = vst [vmem:[%s1614_s30 + $0x40] sm:$0xff] %v1359_v20  ;;  %v1230_v25 = vpop.f32.mrb[16].mxu1  ;;  %1386 = vtanh.f32 %v1198_v24 }
 0x111   : > { %v1363_v22 = vpop.eup %1362  ;;  %934 = vst [vmem:[%s1614_s30 + $0x140] sm:$0xff] %v1361_v21  ;;  %v639_v27 = vpop.f32.mrb[17].mxu0  ;;  %1388 = vtanh.f32 %v1230_v25 }
 0x112   : > { %v1365_v23 = vpop.eup %1364  ;;  %905 = vst [vmem:[%s1614_s30 + $0x58] sm:$0xff] %v1363_v22  ;;  %v767_v28 = vpop.f32.mrb[17].mxu1  ;;  %1390 = vtanh.f32 %v639_v27 }
 0x113   : > { %v1367_v26 = vpop.eup %1366  ;;  %937 = vst [vmem:[%s1614_s30 + $0x158] sm:$0xff] %v1365_v23  ;;  %v1199_v30 = vpop.f32.mrb[18].mxu0  ;;  %1392 = vtanh.f32 %v767_v28 }
 0x114   : > { %v1369_v29 = vpop.eup %1368  ;;  %903 = vst [vmem:[%s1614_s30 + $0x48] sm:$0xff] %v1367_v26  ;;  %v1231_v31 = vpop.f32.mrb[18].mxu1  ;;  %1394 = vtanh.f32 %v1199_v30 }
 0x115   : > { %v1371_v32 = vpop.eup %1370  ;;  %935 = vst [vmem:[%s1614_s30 + $0x148] sm:$0xff] %v1369_v29  ;;  %v642_v33 = vpop.f32.mrb[19].mxu0  ;;  %1396 = vtanh.f32 %v1231_v31 }
 0x116   : > { %v770_v34 = vpop.f32.mrb[19].mxu1  ;;  %v1373_v35 = vpop.eup %1372  ;;  %908 = vst [vmem:[%s1614_s30 + $0x70] sm:$0xff] %v1371_v32  ;;  %1398 = vtanh.f32 %v642_v33 }
 0x117   : > { %v1375_v36 = vpop.eup %1374  ;;  %940 = vst [vmem:[%s1614_s30 + $0x170] sm:$0xff] %v1373_v35  ;;  %1400 = vtanh.f32 %v770_v34  ;;  %v1202_v40 = vpop.f32.mrb[20].mxu0 }
 0x118   : > { %v1377_v37 = vpop.eup %1376  ;;  %906 = vst [vmem:[%s1614_s30 + $0x60] sm:$0xff] %v1375_v36  ;;  %v1234_v41 = vpop.f32.mrb[20].mxu1  ;;  %1402 = vtanh.f32 %v1202_v40 }
 0x119   : > { %v1379_v38 = vpop.eup %1378  ;;  %938 = vst [vmem:[%s1614_s30 + $0x160] sm:$0xff] %v1377_v37  ;;  %v655_v43 = vpop.f32.mrb[21].mxu0  ;;  %1404 = vtanh.f32 %v1234_v41 }
 0x11a   : > { %v1381_v39 = vpop.eup %1380  ;;  %909 = vst [vmem:[%s1614_s30 + $0x78] sm:$0xff] %v1379_v38  ;;  %v783_v44 = vpop.f32.mrb[21].mxu1  ;;  %1406 = vtanh.f32 %v655_v43 }
 0x11b   : > { %v1383_v42 = vpop.eup %1382  ;;  %941 = vst [vmem:[%s1614_s30 + $0x178] sm:$0xff] %v1381_v39  ;;  %v1203_v46 = vpop.f32.mrb[22].mxu0  ;;  %1408 = vtanh.f32 %v783_v44 }
 0x11c   : > { %v1385_v45 = vpop.eup %1384  ;;  %907 = vst [vmem:[%s1614_s30 + $0x68] sm:$0xff] %v1383_v42  ;;  %v1235_v47 = vpop.f32.mrb[22].mxu1  ;;  %1410 = vtanh.f32 %v1203_v46 }
 0x11d   : > { %v1387_v48 = vpop.eup %1386  ;;  %939 = vst [vmem:[%s1614_s30 + $0x168] sm:$0xff] %v1385_v45  ;;  %v658_v49 = vpop.f32.mrb[23].mxu0  ;;  %1412 = vtanh.f32 %v1235_v47 }
 0x11e   : > { %v786_v50 = vpop.f32.mrb[23].mxu1  ;;  %v1389_v51 = vpop.eup %1388  ;;  %912 = vst [vmem:[%s1614_s30 + $0x90] sm:$0xff] %v1387_v48  ;;  %1414 = vtanh.f32 %v658_v49 }
 0x11f   : > { %v1391_v52 = vpop.eup %1390  ;;  %944 = vst [vmem:[%s1614_s30 + $0x190] sm:$0xff] %v1389_v51  ;;  %1416 = vtanh.f32 %v786_v50  ;;  %v1206_v56 = vpop.f32.mrb[24].mxu0 }
 0x120   : > { %v1393_v53 = vpop.eup %1392  ;;  %910 = vst [vmem:[%s1614_s30 + $0x80] sm:$0xff] %v1391_v52  ;;  %v1238_v57 = vpop.f32.mrb[24].mxu1  ;;  %1418 = vtanh.f32 %v1206_v56 }
 0x121   : > { %v1395_v54 = vpop.eup %1394  ;;  %942 = vst [vmem:[%s1614_s30 + $0x180] sm:$0xff] %v1393_v53  ;;  %v671_v59 = vpop.f32.mrb[25].mxu0  ;;  %1420 = vtanh.f32 %v1238_v57 }
 0x122   : > { %v1397_v55 = vpop.eup %1396  ;;  %913 = vst [vmem:[%s1614_s30 + $0x98] sm:$0xff] %v1395_v54  ;;  %v799_v60 = vpop.f32.mrb[25].mxu1  ;;  %1422 = vtanh.f32 %v671_v59 }
 0x123   : > { %v1399_v58 = vpop.eup %1398  ;;  %945 = vst [vmem:[%s1614_s30 + $0x198] sm:$0xff] %v1397_v55  ;;  %v1207_v62 = vpop.f32.mrb[26].mxu0  ;;  %1424 = vtanh.f32 %v799_v60 }
 0x124   : > { %v1401_v61 = vpop.eup %1400  ;;  %911 = vst [vmem:[%s1614_s30 + $0x88] sm:$0xff] %v1399_v58  ;;  %v1239_v63 = vpop.f32.mrb[26].mxu1  ;;  %1426 = vtanh.f32 %v1207_v62 }
 0x125   : > { %v1403_v0 = vpop.eup %1402  ;;  %943 = vst [vmem:[%s1614_s30 + $0x188] sm:$0xff] %v1401_v61  ;;  %v674_v1 = vpop.f32.mrb[27].mxu0  ;;  %1428 = vtanh.f32 %v1239_v63 }
 0x126   : > { %v802_v2 = vpop.f32.mrb[27].mxu1  ;;  %v1405_v3 = vpop.eup %1404  ;;  %916 = vst [vmem:[%s1614_s30 + $0xb0] sm:$0xff] %v1403_v0  ;;  %1430 = vtanh.f32 %v674_v1 }
 0x127   : > { %v1407_v4 = vpop.eup %1406  ;;  %948 = vst [vmem:[%s1614_s30 + $0x1b0] sm:$0xff] %v1405_v3  ;;  %1432 = vtanh.f32 %v802_v2  ;;  %v1210_v8 = vpop.f32.mrb[28].mxu0 }
 0x128   : > { %v1409_v5 = vpop.eup %1408  ;;  %914 = vst [vmem:[%s1614_s30 + $0xa0] sm:$0xff] %v1407_v4  ;;  %v1242_v9 = vpop.f32.mrb[28].mxu1  ;;  %1434 = vtanh.f32 %v1210_v8 }
 0x129   : > { %v1411_v6 = vpop.eup %1410  ;;  %946 = vst [vmem:[%s1614_s30 + $0x1a0] sm:$0xff] %v1409_v5  ;;  %v687_v11 = vpop.f32.mrb[29].mxu0  ;;  %1436 = vtanh.f32 %v1242_v9 }
 0x12a   : > { %v1413_v7 = vpop.eup %1412  ;;  %917 = vst [vmem:[%s1614_s30 + $0xb8] sm:$0xff] %v1411_v6  ;;  %v815_v12 = vpop.f32.mrb[29].mxu1  ;;  %1438 = vtanh.f32 %v687_v11 }
 0x12b   : > { %v1415_v10 = vpop.eup %1414  ;;  %949 = vst [vmem:[%s1614_s30 + $0x1b8] sm:$0xff] %v1413_v7  ;;  %v1211_v14 = vpop.f32.mrb[30].mxu0  ;;  %1440 = vtanh.f32 %v815_v12 }
 0x12c   : > { %v1417_v13 = vpop.eup %1416  ;;  %915 = vst [vmem:[%s1614_s30 + $0xa8] sm:$0xff] %v1415_v10  ;;  %v1243_v15 = vpop.f32.mrb[30].mxu1  ;;  %1442 = vtanh.f32 %v1211_v14 }
 0x12d   : > { %v1419_v16 = vpop.eup %1418  ;;  %947 = vst [vmem:[%s1614_s30 + $0x1a8] sm:$0xff] %v1417_v13  ;;  %v690_v17 = vpop.f32.mrb[31].mxu0  ;;  %1444 = vtanh.f32 %v1243_v15 }
 0x12e   : > { %v818_v18 = vpop.f32.mrb[31].mxu1  ;;  %v1421_v19 = vpop.eup %1420  ;;  %920 = vst [vmem:[%s1614_s30 + $0xd0] sm:$0xff] %v1419_v16  ;;  %1446 = vtanh.f32 %v690_v17 }
 0x12f   : > { %v1423_v20 = vpop.eup %1422  ;;  %952 = vst [vmem:[%s1614_s30 + $0x1d0] sm:$0xff] %v1421_v19  ;;  %1448 = vtanh.f32 %v818_v18 }
 0x130   : > { %v1425_v21 = vpop.eup %1424  ;;  %918 = vst [vmem:[%s1614_s30 + $0xc0] sm:$0xff] %v1423_v20 }
 0x131   : > { %v1427_v22 = vpop.eup %1426  ;;  %950 = vst [vmem:[%s1614_s30 + $0x1c0] sm:$0xff] %v1425_v21 }
 0x132   : > { %v1429_v23 = vpop.eup %1428  ;;  %921 = vst [vmem:[%s1614_s30 + $0xd8] sm:$0xff] %v1427_v22 }
 0x133   : > { %v1431_v24 = vpop.eup %1430  ;;  %953 = vst [vmem:[%s1614_s30 + $0x1d8] sm:$0xff] %v1429_v23 }
 0x134   : > { %v1433_v25 = vpop.eup %1432  ;;  %919 = vst [vmem:[%s1614_s30 + $0xc8] sm:$0xff] %v1431_v24 }
 0x135   : > { %v1435_v26 = vpop.eup %1434  ;;  %951 = vst [vmem:[%s1614_s30 + $0x1c8] sm:$0xff] %v1433_v25 }
 0x136   : > { %v1437_v27 = vpop.eup %1436  ;;  %924 = vst [vmem:[%s1614_s30 + $0xf0] sm:$0xff] %v1435_v26 }
 0x137   : > { %v1439_v28 = vpop.eup %1438  ;;  %956 = vst [vmem:[%s1614_s30 + $0x1f0] sm:$0xff] %v1437_v27 }
 0x138   : > { %v1441_v29 = vpop.eup %1440  ;;  %922 = vst [vmem:[%s1614_s30 + $0xe0] sm:$0xff] %v1439_v28 }
 0x139   : > { %v1443_v30 = vpop.eup %1442  ;;  %954 = vst [vmem:[%s1614_s30 + $0x1e0] sm:$0xff] %v1441_v29 }
 0x13a   : > { %v1445_v31 = vpop.eup %1444  ;;  %925 = vst [vmem:[%s1614_s30 + $0xf8] sm:$0xff] %v1443_v30 }
 0x13b   : > { %v1447_v32 = vpop.eup %1446  ;;  %957 = vst [vmem:[%s1614_s30 + $0x1f8] sm:$0xff] %v1445_v31 }
 0x13c   : > { %v1449_v33 = vpop.eup %1448  ;;  %923 = vst [vmem:[%s1614_s30 + $0xe8] sm:$0xff] %v1447_v32 }
 0x13d   : > { %955 = vst [vmem:[%s1614_s30 + $0x1e8] sm:$0xff] %v1449_v33 }
 0x13e PF: > { %s12_s13 = sadd.s32 1, %s1488_s13   ;;  %s1698_s9 = smov %s1480_s11 }
 0x13f   : > { %p9_p7 = scmp.ge.s32.totalorder %s12_s13, 18   ;;  %s1699_s10 = smov %s1484_s12 }
 0x140   : > { %s1700_s11 = smov %s1703_s14  ;;  %s1701_s12 = smov %s1707_s15 }
 0x141   :  { %11 = sbr.rel (!%p9_p7) target bundleno = 3 (0x3), region = 61 }

</bundles_post_ra>
